<compile_context>
chip_gen: v7x
topology: tpu7x:2x2x1
jax: 0.10.0
libtpu: 0.0.40
codegen_flags: <defaults>
</compile_context>

<pallas_src>
import functools
import math

import jax
import jax.numpy as jnp
from jax.experimental import pallas as pl
from jax.experimental.pallas import tpu as pltpu

ENCODED_SIZE = 50   # rff.layers.GaussianEncoding(input_size=1, encoded_size=50)
PAD_E = 64          # encoded half padded to a sublane/lane-friendly width


# ---------------------------------------------------------------------------
# Pallas kernel: fused forward of BOTH ModifiedMLP_Blocks (pqmax pre-folded)
# ---------------------------------------------------------------------------
def fused_mlp_kernel(x_ref, b_ref, wuvz_ref, buvz_ref, wmid_ref, bmid_ref,
                     wlast_ref, blast_ref, out_ref, *, T, n_mid, H2):
    # x: (1, tn) lane-dense row of sample positions -> normalize x/T*2 - 1.
    x = x_ref[...].astype(jnp.float32) * (2.0 / T) - 1.0            # (1, tn)

    # Fused Gaussian Fourier phases for both blocks (2*pi folded into B at init
    # time).  Rows [0:50) -> block1, rows [64:114) -> block2, remaining rows
    # are zero phase; the matching fused-weight columns are exact zeros so the
    # cos(0)=1 junk never contributes.
    vp = b_ref[...] * x                                              # (128, tn)
    enc = jnp.concatenate([jnp.cos(vp).astype(jnp.bfloat16),
                           jnp.sin(vp).astype(jnp.bfloat16)],
                          axis=0)                                    # (256, tn)

    # One fused dot for U / V / Z0 of both blocks: (384, 256) @ (256, tn),
    # f32 accumulation, one tanh over the whole (384, tn) result.
    uvz = jnp.tanh(
        jnp.dot(wuvz_ref[...], enc, preferred_element_type=jnp.float32)
        + buvz_ref[...])                                             # (384, tn)

    U = uvz[0:H2]                                                    # (128, tn)
    V = uvz[H2:2 * H2]
    Z = uvz[2 * H2:3 * H2]
    dUV = V - U                                                      # loop-invariant
    h = U + Z * dUV                                                  # == (1-Z)*U + Z*V

    # Remaining Hs[1:-1] layers act on the running hidden state
    # (block-diagonal, transposed 128x128 weights).
    for i in range(n_mid):
        Z = jnp.tanh(
            jnp.dot(wmid_ref[i], h.astype(jnp.bfloat16),
                    preferred_element_type=jnp.float32) + bmid_ref[i])
        h = U + Z * dUV

    # Final layer (pqmax folded into the weights): lane-dense (8, tn) output,
    # rows 0 / 1 carry p / q, rows 2..7 are zero padding.
    out_ref[...] = (jnp.dot(wlast_ref[...], h.astype(jnp.bfloat16),
                            preferred_element_type=jnp.float32)
                    + blast_ref[...]).astype(out_ref.dtype)


# ---------------------------------------------------------------------------
# Wrapper: one pallas_call computing both blocks, batch tiled on the lane axis
# ---------------------------------------------------------------------------
def modified_mlp(x, fused, *, T, tile_n=2048):
    N = x.shape[0]
    n_mid = fused["WmidT"].shape[0]
    H2 = fused["WmidT"].shape[1]
    OR = fused["WlastT"].shape[0]            # padded output rows (>= 2*dout)
    dout = fused["dout"]

    def rup(v, m):
        return ((v + m - 1) // m) * m

    # Lane-dense batch tiling (tn is a multiple of 128).  Small batches run as
    # a single grid step; larger batches always get >= 2 tiles so the
    # "parallel" grid axis can be sharded across v7x's two TensorCores.
    if N <= 256:
        tn = rup(max(N, 128), 128)
    else:
        tn = min(tile_n, rup(pl.cdiv(N, 2), 128))
    n_tiles = pl.cdiv(N, tn)
    Np = n_tiles * tn

    xr = x.reshape(1, N).astype(jnp.float32)
    if Np != N:
        xr = jnp.pad(xr, ((0, 0), (0, Np - N)))

    kernel = functools.partial(fused_mlp_kernel, T=T, n_mid=n_mid, H2=H2)

    def resident(a):
        return pl.BlockSpec(a.shape, lambda i, _nd=a.ndim: (0,) * _nd)

    weights = (fused["Bcol"],
               fused["WuvzT"], fused["buvz"],
               fused["WmidT"], fused["bmidT"],
               fused["WlastT"], fused["blastT"])

    out = pl.pallas_call(
        kernel,
        out_shape=jax.ShapeDtypeStruct((OR, Np), jnp.float32),
        grid=(n_tiles,),
        in_specs=[pl.BlockSpec((1, tn), lambda i: (0, i))]
                 + [resident(w) for w in weights],
        out_specs=pl.BlockSpec((OR, tn), lambda i: (0, i)),
        compiler_params=pltpu.CompilerParams(
            dimension_semantics=("parallel",)),   # shards batch over v7x's 2 TCs
    )(xr, *weights)

    p = out[0:dout, :N].T                      # (N, dout)
    q = out[dout:2 * dout, :N].T
    return p, q


# ---------------------------------------------------------------------------
# Parameter construction (synthetic, mirrors the PyTorch module shapes)
# ---------------------------------------------------------------------------
def init_block_params(key, layers_size, sigma):
    d0, H, dout = layers_size[0], layers_size[1], layers_size[-1]
    assert d0 == 2 * ENCODED_SIZE, "layers_size[0] must equal 2*encoded_size=100"
    assert all(s == H for s in layers_size[1:-1]), "hidden widths must match"
    n_hs = len(layers_size) - 1
    n_mid = n_hs - 2
    assert n_mid >= 1

    kit = iter(jax.random.split(key, 9 + 2 * n_mid))

    def xavier(k, fi, fo):
        lim = math.sqrt(6.0 / (fi + fo))
        return jax.random.uniform(k, (fi, fo), jnp.float32, -lim, lim)

    def bias(k, fi, fo):
        lim = 1.0 / math.sqrt(fi)
        return jax.random.uniform(k, (1, fo), jnp.float32, -lim, lim)

    # Fourier matrix b ~ N(0, sigma^2), stored as a (1, 50) row.
    B = sigma * jax.random.normal(next(kit), (1, ENCODED_SIZE), jnp.float32)

    WU = xavier(next(kit), d0, H); bU = bias(next(kit), d0, H)
    WV = xavier(next(kit), d0, H); bV = bias(next(kit), d0, H)
    W0 = xavier(next(kit), d0, H); b0 = bias(next(kit), d0, H)
    Wmid = jnp.stack([xavier(next(kit), H, H) for _ in range(n_mid)])
    bmid = jnp.stack([bias(next(kit), H, H) for _ in range(n_mid)])
    Wlast = xavier(next(kit), H, dout); blast = bias(next(kit), H, dout)

    return dict(B=B, WU=WU, bU=bU, WV=WV, bV=bV, W0=W0, b0=b0,
                Wmid=Wmid, bmid=bmid, Wlast=Wlast, blast=blast)


def fuse_params(p1, p2, *, pqmax):
    """Pack both blocks into transposed, lane/sublane-aligned fused params.

    Done once at init time: matmul weights -> bf16 (transposed, block-diagonal),
    biases / Fourier phases -> f32 columns.  pqmax is folded into the final
    layer.  Junk padding rows/columns are exact zeros.
    """
    E, PE = ENCODED_SIZE, PAD_E
    H = p1["WU"].shape[1]
    H2 = 2 * H
    assert H % 8 == 0
    n_mid = p1["Wmid"].shape[0]
    dout = p1["Wlast"].shape[1]
    two_pi = 2.0 * math.pi

    # Phase column (2*PE, 1): rows [0:E) block1, [PE:PE+E) block2, 2*pi folded.
    Bcol = jnp.zeros((2 * PE, 1), jnp.float32)
    Bcol = Bcol.at[:E, 0].set(two_pi * p1["B"][0])
    Bcol = Bcol.at[PE:PE + E, 0].set(two_pi * p2["B"][0])

    # Fused first-stage weight, transposed: rows [U1|U2|V1|V2|Z1|Z2] (each H),
    # cols [cos1|cos2|sin1|sin2] (each PE, only the first E of each nonzero).
    Wuvz = jnp.zeros((3 * H2, 4 * PE), jnp.float32)

    def put(W, w, row0, blk):
        c0 = blk * PE
        s0 = 2 * PE + blk * PE
        W = W.at[row0:row0 + H, c0:c0 + E].set(w[:E].T)     # cos part
        W = W.at[row0:row0 + H, s0:s0 + E].set(w[E:].T)     # sin part
        return W

    Wuvz = put(Wuvz, p1["WU"], 0, 0);          Wuvz = put(Wuvz, p2["WU"], H, 1)
    Wuvz = put(Wuvz, p1["WV"], H2, 0);         Wuvz = put(Wuvz, p2["WV"], H2 + H, 1)
    Wuvz = put(Wuvz, p1["W0"], 2 * H2, 0);     Wuvz = put(Wuvz, p2["W0"], 2 * H2 + H, 1)
    Wuvz = Wuvz.astype(jnp.bfloat16)

    def col(b1, b2):
        return jnp.concatenate([b1[0], b2[0]], axis=0).reshape(H2, 1)   # f32

    buvz = jnp.concatenate([col(p1["bU"], p2["bU"]),
                            col(p1["bV"], p2["bV"]),
                            col(p1["b0"], p2["b0"])], axis=0)           # (3*H2, 1)

    # Middle layers: block-diagonal, transposed (y_T = W^T @ h_T).
    def bd_T(w1, w2):
        W = jnp.zeros((H2, H2), jnp.float32)
        W = W.at[:H, :H].set(w1.T)
        W = W.at[H:, H:].set(w2.T)
        return W.astype(jnp.bfloat16)

    WmidT = jnp.stack([bd_T(p1["Wmid"][i], p2["Wmid"][i]) for i in range(n_mid)])
    bmidT = jnp.stack([col(p1["bmid"][i], p2["bmid"][i]) for i in range(n_mid)])

    # Final layer: pqmax folded, transposed, padded to >= 8 output rows so the
    # output slab is (8, tn) lane-dense.  Rows [0:dout) = p, [dout:2*dout) = q.
    OR = max(8, ((2 * dout + 7) // 8) * 8)
    WlastT = jnp.zeros((OR, H2), jnp.float32)
    WlastT = WlastT.at[0:dout, :H].set(pqmax * p1["Wlast"].T)
    WlastT = WlastT.at[dout:2 * dout, H:].set(pqmax * p2["Wlast"].T)
    WlastT = WlastT.astype(jnp.bfloat16)
    blastT = jnp.zeros((OR, 1), jnp.float32)
    blastT = blastT.at[0:dout, 0].set(pqmax * p1["blast"][0])
    blastT = blastT.at[dout:2 * dout, 0].set(pqmax * p2["blast"][0])

    return dict(Bcol=Bcol, WuvzT=Wuvz, buvz=buvz,
                WmidT=WmidT, bmidT=bmidT,
                WlastT=WlastT, blastT=blastT, dout=dout)


# ---------------------------------------------------------------------------
# Pure-JAX reference (mirrors the PyTorch forward exactly, f32 HIGHEST)
# ---------------------------------------------------------------------------
def ref_block(x, p, *, T, pqmax):
    hp = jax.lax.Precision.HIGHEST
    x = x / T * 2.0 - 1.0
    vp = 2.0 * math.pi * (x * p["B"])
    xe = jnp.concatenate([jnp.cos(vp), jnp.sin(vp)], axis=-1)
    U = jnp.tanh(jnp.dot(xe, p["WU"], precision=hp) + p["bU"])
    V = jnp.tanh(jnp.dot(xe, p["WV"], precision=hp) + p["bV"])
    Z = jnp.tanh(jnp.dot(xe, p["W0"], precision=hp) + p["b0"])
    h = (1.0 - Z) * U + Z * V
    for i in range(p["Wmid"].shape[0]):
        Z = jnp.tanh(jnp.dot(h, p["Wmid"][i], precision=hp) + p["bmid"][i])
        h = (1.0 - Z) * U + Z * V
    out = jnp.dot(h, p["Wlast"], precision=hp) + p["blast"]
    return pqmax * out


if __name__ == "__main__":
    key = jax.random.PRNGKey(0)
    layers_size = [100, 64, 64, 64, 1]   # [fourier-out, hidden x3, out]
    T, pqmax, sigma = 2.0, 1.5, 1.0
    N = 64

    k_x, k1, k2 = jax.random.split(key, 3)
    x = jax.random.uniform(k_x, (N, 1), jnp.float32, 0.0, T)

    params1 = init_block_params(k1, layers_size, sigma)
    params2 = init_block_params(k2, layers_size, sigma)
    fused = fuse_params(params1, params2, pqmax=pqmax)

    p, q = modified_mlp(x, fused, T=T)
    jax.block_until_ready((p, q))

    p_ref = ref_block(x, params1, T=T, pqmax=pqmax)
    q_ref = ref_block(x, params2, T=T, pqmax=pqmax)

    assert p.shape == (N, 1) and q.shape == (N, 1)
    # bf16 weights/activations (f32 accumulation) vs f32 HIGHEST reference.
    assert jnp.allclose(p, p_ref, atol=3e-2, rtol=3e-2)
    assert jnp.allclose(q, q_ref, atol=3e-2, rtol=3e-2)

    print("KERNEL_OK")
</pallas_src>

<mosaic_0001>
module attributes {stable_mosaic.version = 11 : i64} {
  func.func @fused_mlp_kernel(%arg0: i32, %arg1: memref<1x128xf32, #tpu.memory_space<vmem>>, %arg2: memref<128x1xf32, #tpu.memory_space<vmem>>, %arg3: memref<384x256xbf16, #tpu.memory_space<vmem>>, %arg4: memref<384x1xf32, #tpu.memory_space<vmem>>, %arg5: memref<2x128x128xbf16, #tpu.memory_space<vmem>>, %arg6: memref<2x128x1xf32, #tpu.memory_space<vmem>>, %arg7: memref<8x128xbf16, #tpu.memory_space<vmem>>, %arg8: memref<8x1xf32, #tpu.memory_space<vmem>>, %arg9: memref<8x128xf32, #tpu.memory_space<vmem>>) attributes {dimension_semantics = [#tpu.dimension_semantics<parallel>], iteration_bounds = array<i64: 1>, scalar_prefetch = 0 : i64, scratch_operands = 0 : i64, tpu.core_type = #tpu.core_type<tc>, window_params = [{transform_indices = @transform_0, window_bounds = array<i64: 1, 128>}, {pipeline_mode = #tpu.pipeline_mode<synchronous>, transform_indices = @transform_1, window_bounds = array<i64: 128, 1>}, {pipeline_mode = #tpu.pipeline_mode<synchronous>, transform_indices = @transform_2, window_bounds = array<i64: 384, 256>}, {pipeline_mode = #tpu.pipeline_mode<synchronous>, transform_indices = @transform_3, window_bounds = array<i64: 384, 1>}, {pipeline_mode = #tpu.pipeline_mode<synchronous>, transform_indices = @transform_4, window_bounds = array<i64: 2, 128, 128>}, {pipeline_mode = #tpu.pipeline_mode<synchronous>, transform_indices = @transform_5, window_bounds = array<i64: 2, 128, 1>}, {pipeline_mode = #tpu.pipeline_mode<synchronous>, transform_indices = @transform_6, window_bounds = array<i64: 8, 128>}, {pipeline_mode = #tpu.pipeline_mode<synchronous>, transform_indices = @transform_7, window_bounds = array<i64: 8, 1>}, {transform_indices = @transform_8, window_bounds = array<i64: 8, 128>}]} {
    %c0 = arith.constant 0 : index
    %c0_0 = arith.constant 0 : index
    %0 = vector.load %arg1[%c0, %c0_0] : memref<1x128xf32, #tpu.memory_space<vmem>>, vector<1x128xf32>
    %cst = arith.constant 1.000000e+00 : f32
    %1 = vector.broadcast %cst : f32 to vector<1x128xf32>
    %2 = arith.mulf %0, %1 : vector<1x128xf32>
    %cst_1 = arith.constant 1.000000e+00 : f32
    %3 = vector.broadcast %cst_1 : f32 to vector<1x128xf32>
    %4 = arith.subf %2, %3 : vector<1x128xf32>
    %c0_2 = arith.constant 0 : index
    %c0_3 = arith.constant 0 : index
    %5 = vector.load %arg2[%c0_2, %c0_3] : memref<128x1xf32, #tpu.memory_space<vmem>>, vector<128x1xf32>
    %6 = vector.broadcast %5 : vector<128x1xf32> to vector<128x128xf32>
    %7 = vector.broadcast %4 : vector<1x128xf32> to vector<128x128xf32>
    %8 = arith.mulf %6, %7 : vector<128x128xf32>
    %9 = math.cos %8 : vector<128x128xf32>
    %10 = arith.truncf %9 : vector<128x128xf32> to vector<128x128xbf16>
    %11 = math.sin %8 : vector<128x128xf32>
    %12 = arith.truncf %11 : vector<128x128xf32> to vector<128x128xbf16>
    %13 = tpu.concatenate %10, %12 in 0 : vector<128x128xbf16>, vector<128x128xbf16> -> vector<256x128xbf16>
    %c0_4 = arith.constant 0 : index
    %c0_5 = arith.constant 0 : index
    %14 = vector.load %arg3[%c0_4, %c0_5] : memref<384x256xbf16, #tpu.memory_space<vmem>>, vector<384x256xbf16>
    %cst_6 = arith.constant dense<0.000000e+00> : vector<384x128xf32>
    %15 = tpu.matmul %14, %13, %cst_6 {dimension_numbers = #tpu.dot_dimension_numbers<[1], [0], [0], [1], [0, 0, 1, 1], [], []>} : vector<384x256xbf16>, vector<256x128xbf16>, vector<384x128xf32> -> vector<384x128xf32>
    %c0_7 = arith.constant 0 : index
    %c0_8 = arith.constant 0 : index
    %16 = vector.load %arg4[%c0_7, %c0_8] : memref<384x1xf32, #tpu.memory_space<vmem>>, vector<384x1xf32>
    %17 = vector.broadcast %16 : vector<384x1xf32> to vector<384x128xf32>
    %18 = arith.addf %15, %17 : vector<384x128xf32>
    %19 = math.tanh %18 : vector<384x128xf32>
    %20 = vector.extract_strided_slice %19 {offsets = [0, 0], sizes = [128, 128], strides = [1, 1]} : vector<384x128xf32> to vector<128x128xf32>
    %21 = vector.extract_strided_slice %19 {offsets = [128, 0], sizes = [128, 128], strides = [1, 1]} : vector<384x128xf32> to vector<128x128xf32>
    %22 = vector.extract_strided_slice %19 {offsets = [256, 0], sizes = [128, 128], strides = [1, 1]} : vector<384x128xf32> to vector<128x128xf32>
    %23 = arith.subf %21, %20 : vector<128x128xf32>
    %24 = arith.mulf %22, %23 : vector<128x128xf32>
    %25 = arith.addf %20, %24 : vector<128x128xf32>
    %c0_9 = arith.constant 0 : index
    %c0_10 = arith.constant 0 : index
    %c0_11 = arith.constant 0 : index
    %26 = vector.load %arg5[%c0_9, %c0_10, %c0_11] : memref<2x128x128xbf16, #tpu.memory_space<vmem>>, vector<1x128x128xbf16>
    %27 = vector.shape_cast %26 : vector<1x128x128xbf16> to vector<128x128xbf16>
    %28 = arith.truncf %25 : vector<128x128xf32> to vector<128x128xbf16>
    %cst_12 = arith.constant dense<0.000000e+00> : vector<128x128xf32>
    %29 = tpu.matmul %27, %28, %cst_12 {dimension_numbers = #tpu.dot_dimension_numbers<[1], [0], [0], [1], [0, 0, 1, 1], [], []>} : vector<128x128xbf16>, vector<128x128xbf16>, vector<128x128xf32> -> vector<128x128xf32>
    %c0_13 = arith.constant 0 : index
    %c0_14 = arith.constant 0 : index
    %c0_15 = arith.constant 0 : index
    %30 = vector.load %arg6[%c0_13, %c0_14, %c0_15] : memref<2x128x1xf32, #tpu.memory_space<vmem>>, vector<1x128x1xf32>
    %31 = vector.shape_cast %30 : vector<1x128x1xf32> to vector<128x1xf32>
    %32 = vector.broadcast %31 : vector<128x1xf32> to vector<128x128xf32>
    %33 = arith.addf %29, %32 : vector<128x128xf32>
    %34 = math.tanh %33 : vector<128x128xf32>
    %35 = arith.mulf %34, %23 : vector<128x128xf32>
    %36 = arith.addf %20, %35 : vector<128x128xf32>
    %c1 = arith.constant 1 : index
    %c0_16 = arith.constant 0 : index
    %c0_17 = arith.constant 0 : index
    %37 = vector.load %arg5[%c1, %c0_16, %c0_17] : memref<2x128x128xbf16, #tpu.memory_space<vmem>>, vector<1x128x128xbf16>
    %38 = vector.shape_cast %37 : vector<1x128x128xbf16> to vector<128x128xbf16>
    %39 = arith.truncf %36 : vector<128x128xf32> to vector<128x128xbf16>
    %cst_18 = arith.constant dense<0.000000e+00> : vector<128x128xf32>
    %40 = tpu.matmul %38, %39, %cst_18 {dimension_numbers = #tpu.dot_dimension_numbers<[1], [0], [0], [1], [0, 0, 1, 1], [], []>} : vector<128x128xbf16>, vector<128x128xbf16>, vector<128x128xf32> -> vector<128x128xf32>
    %c1_19 = arith.constant 1 : index
    %c0_20 = arith.constant 0 : index
    %c0_21 = arith.constant 0 : index
    %41 = vector.load %arg6[%c1_19, %c0_20, %c0_21] : memref<2x128x1xf32, #tpu.memory_space<vmem>>, vector<1x128x1xf32>
    %42 = vector.shape_cast %41 : vector<1x128x1xf32> to vector<128x1xf32>
    %43 = vector.broadcast %42 : vector<128x1xf32> to vector<128x128xf32>
    %44 = arith.addf %40, %43 : vector<128x128xf32>
    %45 = math.tanh %44 : vector<128x128xf32>
    %46 = arith.mulf %45, %23 : vector<128x128xf32>
    %47 = arith.addf %20, %46 : vector<128x128xf32>
    %c0_22 = arith.constant 0 : index
    %c0_23 = arith.constant 0 : index
    %48 = vector.load %arg7[%c0_22, %c0_23] : memref<8x128xbf16, #tpu.memory_space<vmem>>, vector<8x128xbf16>
    %49 = arith.truncf %47 : vector<128x128xf32> to vector<128x128xbf16>
    %cst_24 = arith.constant dense<0.000000e+00> : vector<8x128xf32>
    %50 = tpu.matmul %48, %49, %cst_24 {dimension_numbers = #tpu.dot_dimension_numbers<[1], [0], [0], [1], [0, 0, 1, 1], [], []>} : vector<8x128xbf16>, vector<128x128xbf16>, vector<8x128xf32> -> vector<8x128xf32>
    %c0_25 = arith.constant 0 : index
    %c0_26 = arith.constant 0 : index
    %51 = vector.load %arg8[%c0_25, %c0_26] : memref<8x1xf32, #tpu.memory_space<vmem>>, vector<8x1xf32>
    %52 = vector.broadcast %51 : vector<8x1xf32> to vector<8x128xf32>
    %53 = arith.addf %50, %52 : vector<8x128xf32>
    %c0_27 = arith.constant 0 : index
    %c0_28 = arith.constant 0 : index
    %54 = vector.load %arg9[%c0_27, %c0_28] : memref<8x128xf32, #tpu.memory_space<vmem>>, vector<8x128xf32>
    tpu.vector_store %arg9[%c0_27, %c0_28], %53 {strides = array<i32>} : memref<8x128xf32, #tpu.memory_space<vmem>>, vector<8x128xf32>,
    return
  }
  func.func @transform_0(%arg0: i32) -> (i32, i32) {
    %c0_i32 = arith.constant 0 : i32
    %c0_i32_0 = arith.constant 0 : i32
    return %c0_i32, %arg0 : i32, i32
  }
  func.func @transform_1(%arg0: i32) -> (i32, i32) {
    %c0_i32 = arith.constant 0 : i32
    %c0_i32_0 = arith.constant 0 : i32
    %c0_i32_1 = arith.constant 0 : i32
    return %c0_i32, %c0_i32_0 : i32, i32
  }
  func.func @transform_2(%arg0: i32) -> (i32, i32) {
    %c0_i32 = arith.constant 0 : i32
    %c0_i32_0 = arith.constant 0 : i32
    %c0_i32_1 = arith.constant 0 : i32
    return %c0_i32, %c0_i32_0 : i32, i32
  }
  func.func @transform_3(%arg0: i32) -> (i32, i32) {
    %c0_i32 = arith.constant 0 : i32
    %c0_i32_0 = arith.constant 0 : i32
    %c0_i32_1 = arith.constant 0 : i32
    return %c0_i32, %c0_i32_0 : i32, i32
  }
  func.func @transform_4(%arg0: i32) -> (i32, i32, i32) {
    %c0_i32 = arith.constant 0 : i32
    %c0_i32_0 = arith.constant 0 : i32
    %c0_i32_1 = arith.constant 0 : i32
    %c0_i32_2 = arith.constant 0 : i32
    return %c0_i32, %c0_i32_0, %c0_i32_1 : i32, i32, i32
  }
  func.func @transform_5(%arg0: i32) -> (i32, i32, i32) {
    %c0_i32 = arith.constant 0 : i32
    %c0_i32_0 = arith.constant 0 : i32
    %c0_i32_1 = arith.constant 0 : i32
    %c0_i32_2 = arith.constant 0 : i32
    return %c0_i32, %c0_i32_0, %c0_i32_1 : i32, i32, i32
  }
  func.func @transform_6(%arg0: i32) -> (i32, i32) {
    %c0_i32 = arith.constant 0 : i32
    %c0_i32_0 = arith.constant 0 : i32
    %c0_i32_1 = arith.constant 0 : i32
    return %c0_i32, %c0_i32_0 : i32, i32
  }
  func.func @transform_7(%arg0: i32) -> (i32, i32) {
    %c0_i32 = arith.constant 0 : i32
    %c0_i32_0 = arith.constant 0 : i32
    %c0_i32_1 = arith.constant 0 : i32
    return %c0_i32, %c0_i32_0 : i32, i32
  }
  func.func @transform_8(%arg0: i32) -> (i32, i32) {
    %c0_i32 = arith.constant 0 : i32
    %c0_i32_0 = arith.constant 0 : i32
    return %c0_i32, %arg0 : i32, i32
  }
}

</mosaic_0001>

<bundles_post_ra>
// kernel: tpu_custom_call.1
= control target key start
LH: loop header
LB: loop body
LE: loop exit
PB: predicated region body
PF: predicated region fallthrough
CT: control target
= control target key end

     0   :  { %v8593_v2 = vmov 0   ;;  %s8584_s0 = inlined_call_operand.vmem [shape: f32[1,128], index: 0, kind: input, shape index: {}]   ;;  %s8585_s1 = inlined_call_operand.vmem [shape: f32[128,1], index: 1, kind: input, shape index: {}]   ;;  %s8586_s2 = inlined_call_operand.vmem [shape: bf16[384,256], index: 2, kind: input, shape index: {}]   ;;  %s8587_s3 = inlined_call_operand.vmem [shape: f32[384,1], index: 3, kind: input, shape index: {}]   ;;  %s8588_s4 = inlined_call_operand.vmem [shape: bf16[2,128,128], index: 4, kind: input, shape index: {}]   ;;  %s8589_s5 = inlined_call_operand.vmem [shape: f32[2,128,1], index: 5, kind: input, shape index: {}]   ;;  %s8590_s6 = inlined_call_operand.vmem [shape: bf16[8,128], index: 6, kind: input, shape index: {}]   ;;  %s8591_s7 = inlined_call_operand.vmem [shape: f32[8,1], index: 7, kind: input, shape index: {}]   ;;  %s8592_s8 = inlined_call_operand.hbm [shape: f32[8,128], index: 8, kind: output, shape index: {}]  }
   0x1   :  { %v35_v0 = vld [vmem:[%s8585_s1 + $0x10] sm:$0xff]  ;;  %v33_v1 = vld [vmem:[%s8585_s1] sm:$0xff]  ;;  %5531 = vset.pattern.permute.xlu1 %v8593_v2  ;;  %5530 = vset.pattern.permute.xlu0 %v8593_v2  ;;  %v36_v3 = vld [vmem:[%s8585_s1 + $0x18] sm:$0xff] }
   0x2   :  { %61 = vperm.xlu1 %5531, %v35_v0   ;;  %51 = vperm.xlu0 %5530, %v33_v1   ;;  %v34_v4 = vld [vmem:[%s8585_s1 + $0x8] sm:$0xff]  ;;  %v37_v6 = vld [vmem:[%s8585_s1 + $0x20] sm:$0xff]  ;;  %v40_v7 = vld [vmem:[%s8585_s1 + $0x38] sm:$0xff] }
   0x3   :  { %4055 = vmatprep.subr.bf16.mxu0 %v8593_v2  ;;  %5424 = vmatprep.subr.bf16.mxu1 %v8593_v2  ;;  %v38_v5 = vld [vmem:[%s8585_s1 + $0x28] sm:$0xff]  ;;  %v39_v8 = vld [vmem:[%s8585_s1 + $0x30] sm:$0xff]  ;;  %v41_v10 = vld [vmem:[%s8585_s1 + $0x40] sm:$0xff] }
   0x4   :  { %v42_v9 = vld [vmem:[%s8585_s1 + $0x48] sm:$0xff]  ;;  %v44_v11 = vld [vmem:[%s8585_s1 + $0x58] sm:$0xff]  ;;  %v43_v12 = vld [vmem:[%s8585_s1 + $0x50] sm:$0xff] }
   0x5   :  { %v46_v13 = vld [vmem:[%s8585_s1 + $0x68] sm:$0xff]  ;;  %v45_v14 = vld [vmem:[%s8585_s1 + $0x60] sm:$0xff]  ;;  %v48_v15 = vld [vmem:[%s8585_s1 + $0x78] sm:$0xff] }
   0x6   :  { %66 = vperm.xlu1 %5531, %v36_v3   ;;  %56 = vperm.xlu0 %5530, %v34_v4   ;;  %v47_v16 = vld [vmem:[%s8585_s1 + $0x70] sm:$0xff]  ;;  %v3528_v17 = vld [vmem:[%s8587_s3 + $0x8] sm:$0xff]  ;;  %v3527_v18 = vld [vmem:[%s8587_s3] sm:$0xff] }
   0x7   :  { %v3544_v19 = vld [vmem:[%s8587_s3 + $0x88] sm:$0xff]  ;;  %v3543_v20 = vld [vmem:[%s8587_s3 + $0x80] sm:$0xff]  ;;  %v3530_v23 = vld [vmem:[%s8587_s3 + $0x18] sm:$0xff] }
   0x8   :  { %v3560_v21 = vld [vmem:[%s8587_s3 + $0x108] sm:$0xff]  ;;  %v3559_v22 = vld [vmem:[%s8587_s3 + $0x100] sm:$0xff]  ;;  %v3529_v24 = vld [vmem:[%s8587_s3 + $0x10] sm:$0xff] }
   0x9   :  { %v3546_v25 = vld [vmem:[%s8587_s3 + $0x98] sm:$0xff]  ;;  %v3545_v26 = vld [vmem:[%s8587_s3 + $0x90] sm:$0xff] }
   0xa   :  { %76 = vperm.xlu1 %5531, %v38_v5   ;;  %71 = vperm.xlu0 %5530, %v37_v6  }
   0xe   :  { %86 = vperm.xlu1 %5531, %v40_v7   ;;  %81 = vperm.xlu0 %5530, %v39_v8  }
  0x12   :  { %96 = vperm.xlu1 %5531, %v42_v9   ;;  %91 = vperm.xlu0 %5530, %v41_v10  }
  0x16   :  { %106 = vperm.xlu1 %5531, %v44_v11   ;;  %101 = vperm.xlu0 %5530, %v43_v12  }
  0x1a   :  { %116 = vperm.xlu1 %5531, %v46_v13   ;;  %111 = vperm.xlu0 %5530, %v45_v14  }
  0x1e   :  { %126 = vperm.xlu1 %5531, %v48_v15   ;;  %121 = vperm.xlu0 %5530, %v47_v16  }
  0x22   :  { %3582 = vperm.xlu1 %5531, %v3528_v17   ;;  %3577 = vperm.xlu0 %5530, %v3527_v18  }
  0x26   :  { %3662 = vperm.xlu1 %5531, %v3544_v19   ;;  %3657 = vperm.xlu0 %5530, %v3543_v20  }
  0x2a   :  { %3742 = vperm.xlu1 %5531, %v3560_v21   ;;  %3737 = vperm.xlu0 %5530, %v3559_v22  }
  0x2e   :  { %3592 = vperm.xlu1 %5531, %v3530_v23   ;;  %3587 = vperm.xlu0 %5530, %v3529_v24  }
  0x2f   :  { %13 = vsyncpa [#allocation3], 0  ;;  %v3562_v27 = vld [vmem:[%s8587_s3 + $0x118] sm:$0xff]  ;;  %v3561_v28 = vld [vmem:[%s8587_s3 + $0x110] sm:$0xff]  ;;  %v130_v59 = vlaneseq  ;;  %s5877_s26 = smov [#allocation2]  }
  0x30   :  { %v3532_v29 = vld [vmem:[%s8587_s3 + $0x28] sm:$0xff]  ;;  %v3531_v30 = vld [vmem:[%s8587_s3 + $0x20] sm:$0xff]  ;;  %v3534_v35 = vld [vmem:[%s8587_s3 + $0x38] sm:$0xff]  ;;  %s5066_s27 = sshll.u32 %s5877_s26, 4  ;;  %s5067_s27 = int_to_ptr.vmem [resolvable:$true] %s5066_s27 }
  0x31   :  { %v3548_v31 = vld [vmem:[%s8587_s3 + $0xa8] sm:$0xff]  ;;  %v3547_v32 = vld [vmem:[%s8587_s3 + $0xa0] sm:$0xff]  ;;  %v3533_v36 = vld [vmem:[%s8587_s3 + $0x30] sm:$0xff]  ;;  %v131_v62 = vshrl.u32 %v130_v59, 7  ;;  %v8607_v59 = vmov 2102212464   ;;  %p5849_p1 = scmp.lt.s32.totalorder %s5067_s27, %s5067_s27 }
  0x32   :  { %3672 = vperm.xlu1 %5531, %v3546_v25   ;;  %3667 = vperm.xlu0 %5530, %v3545_v26   ;;  %v3564_v33 = vld [vmem:[%s8587_s3 + $0x128] sm:$0xff]  ;;  %v3563_v34 = vld [vmem:[%s8587_s3 + $0x120] sm:$0xff]  ;;  %v3550_v37 = vld [vmem:[%s8587_s3 + $0xb8] sm:$0xff]  ;;  %s5844_s28 = scalar_lea.vmem %s5067_s27, 128 }
  0x33   :  { %v3549_v38 = vld [vmem:[%s8587_s3 + $0xb0] sm:$0xff]  ;;  %v3566_v39 = vld [vmem:[%s8587_s3 + $0x138] sm:$0xff]  ;;  %v3536_v41 = vld [vmem:[%s8587_s3 + $0x48] sm:$0xff]  ;;  %v132_v3 = vsub.s32 0, %v131_v62  ;;  %p5845_p0 = scmp.ne.s32.totalorder %s5067_s27, %s5844_s28  ;;  %p5850_p2 = scmp.lt.s32.totalorder %s5844_s28, %s5844_s28 }
  0x34   :  { %v3565_v40 = vld [vmem:[%s8587_s3 + $0x130] sm:$0xff]  ;;  %v3535_v42 = vld [vmem:[%s8587_s3 + $0x40] sm:$0xff]  ;;  %v3552_v43 = vld [vmem:[%s8587_s3 + $0xc8] sm:$0xff] }
  0x35   :  { %v3551_v44 = vld [vmem:[%s8587_s3 + $0xc0] sm:$0xff]  ;;  %v3568_v45 = vld [vmem:[%s8587_s3 + $0x148] sm:$0xff]  ;;  %v3538_v47 = vld [vmem:[%s8587_s3 + $0x58] sm:$0xff]  ;;  %p5851_p3 = por %p5850_p2, %p5849_p1 }
  0x36   :  { %3752 = vperm.xlu1 %5531, %v3562_v27   ;;  %3747 = vperm.xlu0 %5530, %v3561_v28   ;;  %v3567_v46 = vld [vmem:[%s8587_s3 + $0x140] sm:$0xff]  ;;  %v3537_v48 = vld [vmem:[%s8587_s3 + $0x50] sm:$0xff]  ;;  %v3554_v49 = vld [vmem:[%s8587_s3 + $0xd8] sm:$0xff] }
  0x37   :  { %v3553_v50 = vld [vmem:[%s8587_s3 + $0xd0] sm:$0xff]  ;;  %v3570_v51 = vld [vmem:[%s8587_s3 + $0x158] sm:$0xff]  ;;  %v3540_v53 = vld [vmem:[%s8587_s3 + $0x68] sm:$0xff]  ;;  %p5852_p4 = pnand %p5851_p3, %p5845_p0 }
  0x38   :  { %v3569_v52 = vld [vmem:[%s8587_s3 + $0x150] sm:$0xff]  ;;  %v3539_v54 = vld [vmem:[%s8587_s3 + $0x60] sm:$0xff]  ;;  %v3556_v55 = vld [vmem:[%s8587_s3 + $0xe8] sm:$0xff] }
  0x39   :  { %v3555_v56 = vld [vmem:[%s8587_s3 + $0xe0] sm:$0xff]  ;;  %v3572_v57 = vld [vmem:[%s8587_s3 + $0x168] sm:$0xff]  ;;  %v3542_v60 = vld [vmem:[%s8587_s3 + $0x78] sm:$0xff] }
  0x3a   :  { %3602 = vperm.xlu1 %5531, %v3532_v29   ;;  %3597 = vperm.xlu0 %5530, %v3531_v30   ;;  %v3571_v58 = vld [vmem:[%s8587_s3 + $0x160] sm:$0xff]  ;;  %v3541_v61 = vld [vmem:[%s8587_s3 + $0x70] sm:$0xff]  ;;  %v3558_v63 = vld [vmem:[%s8587_s3 + $0xf8] sm:$0xff] }
  0x3b   :  { %v3557_v0 = vld [vmem:[%s8587_s3 + $0xf0] sm:$0xff]  ;;  %v31_v1 = vld [vmem:[%s8584_s0] sm:$0x1]  ;;  %v3574_v5 = vld [vmem:[%s8587_s3 + $0x178] sm:$0xff] }
  0x3c   :  { %v5074_v4 = vadd.f32 -1.0, %v31_v1  ;;  %v3573_v6 = vld [vmem:[%s8587_s3 + $0x170] sm:$0xff]  ;;  %v4401_v8 = vld [vmem:[%s8589_s5 + $0x8] sm:$0xff]  ;;  %v4400_v9 = vld [vmem:[%s8589_s5] sm:$0xff] }
  0x3d   :  { %v4403_v14 = vld [vmem:[%s8589_s5 + $0x18] sm:$0xff]  ;;  %v4402_v15 = vld [vmem:[%s8589_s5 + $0x10] sm:$0xff]  ;;  %v4405_v26 = vld [vmem:[%s8589_s5 + $0x28] sm:$0xff] }
  0x3e   :  { %3682 = vperm.xlu1 %5531, %v3548_v31   ;;  %3677 = vperm.xlu0 %5530, %v3547_v32   ;;  %v6122_v7 = vrot.slane %v5074_v4, %v132_v3  ;;  %v4404_v27 = vld [vmem:[%s8589_s5 + $0x20] sm:$0xff] }
  0x42   :  { %3762 = vperm.xlu1 %5531, %v3564_v33   ;;  %3757 = vperm.xlu0 %5530, %v3563_v34  }
  0x46   :  { %3612 = vperm.xlu1 %5531, %v3534_v35   ;;  %3607 = vperm.xlu0 %5530, %v3533_v36  }
  0x4a   :  { %3692 = vperm.xlu1 %5531, %v3550_v37   ;;  %3687 = vperm.xlu0 %5530, %v3549_v38  }
  0x4e   :  { %3772 = vperm.xlu1 %5531, %v3566_v39   ;;  %3767 = vperm.xlu0 %5530, %v3565_v40   ;;  %v4407_v39 = vld [vmem:[%s8589_s5 + $0x38] sm:$0xff]  ;;  %v4406_v40 = vld [vmem:[%s8589_s5 + $0x30] sm:$0xff] }
  0x52   :  { %3622 = vperm.xlu1 %5531, %v3536_v41   ;;  %3617 = vperm.xlu0 %5530, %v3535_v42  }
  0x56   :  { %3702 = vperm.xlu1 %5531, %v3552_v43   ;;  %3697 = vperm.xlu0 %5530, %v3551_v44  }
  0x5a   :  { %3782 = vperm.xlu1 %5531, %v3568_v45   ;;  %3777 = vperm.xlu0 %5530, %v3567_v46  }
  0x5e   :  { %3632 = vperm.xlu1 %5531, %v3538_v47   ;;  %3627 = vperm.xlu0 %5530, %v3537_v48  }
  0x62   :  { %3712 = vperm.xlu1 %5531, %v3554_v49   ;;  %3707 = vperm.xlu0 %5530, %v3553_v50  }
  0x66   :  { %3792 = vperm.xlu1 %5531, %v3570_v51   ;;  %3787 = vperm.xlu0 %5530, %v3569_v52  }
  0x6a   :  { %3642 = vperm.xlu1 %5531, %v3540_v53   ;;  %3637 = vperm.xlu0 %5530, %v3539_v54   ;;  %v8601_v53 = vmov 683565275  }
  0x6e   :  { %3722 = vperm.xlu1 %5531, %v3556_v55   ;;  %3717 = vperm.xlu0 %5530, %v3555_v56   ;;  %v8603_v55 = vmov 2475754826  }
  0x72   :  { %3802 = vperm.xlu1 %5531, %v3572_v57   ;;  %3797 = vperm.xlu0 %5530, %v3571_v58   ;;  %v8605_v57 = vmov 2131351028  }
  0x76   :  { %3652 = vperm.xlu1 %5531, %v3542_v60   ;;  %3647 = vperm.xlu0 %5530, %v3541_v61   ;;  %v8615_v61 = vmov 920167782  }
  0x7a   :  { %3732 = vperm.xlu1 %5531, %v3558_v63   ;;  %3727 = vperm.xlu0 %5530, %v3557_v0  }
  0x7e   :  { %3812 = vperm.xlu1 %5531, %v3574_v5   ;;  %3807 = vperm.xlu0 %5530, %v3573_v6   ;;  %v8610_v6 = vmov 1326507024  }
  0x81   :  { %v62_v10 = vpop.permute.xlu1 %61  ;;  %v52_v11 = vpop.permute.xlu0 %51 }
  0x82   :  { %v6131_v12 = vmul.f32 %v6122_v7, %v62_v10  ;;  %v6134_v13 = vmul.f32 %v6122_v7, %v52_v11  ;;  %4423 = vperm.xlu1 %5531, %v4401_v8   ;;  %4418 = vperm.xlu0 %5530, %v4400_v9  }
  0x84   :  { %v357_v16 = vand.u32 2147483647, %v6131_v12  ;;  %v360_v17 = vand.u32 2139095040, %v6131_v12  ;;  %v8596_v18 = vand.u32 2147483647, %v6134_v13  ;;  %v154_v19 = vand.u32 2139095040, %v6134_v13 }
  0x85   :  { %v67_v20 = vpop.permute.xlu1 %66  ;;  %v57_v35 = vpop.permute.xlu0 %56 }
  0x86   :  { %v361_v21 = vshrl.u32 %v360_v17, 23  ;;  %v364_v22 = vand.u32 8388607, %v357_v16  ;;  %v6149_v23 = vmul.f32 %v6122_v7, %v67_v20  ;;  %4433 = vperm.xlu1 %5531, %v4403_v14   ;;  %4428 = vperm.xlu0 %5530, %v4402_v15   ;;  %v155_v24 = vshrl.u32 %v154_v19, 23 }
  0x87   :  { %v158_v25 = vand.u32 8388607, %v8596_v18  ;;  %v6172_v43 = vmul.f32 %v6122_v7, %v57_v35 }
  0x88   :  { %v5083_v28 = vadd.s32 4294967169, %v361_v21  ;;  %v460_v29 = vand.u32 2147483647, %v6149_v23  ;;  %v5075_v30 = vadd.s32 4294967169, %v155_v24  ;;  %v463_v31 = vand.u32 2139095040, %v6149_v23 }
  0x89   :  { %v365_v32 = vor.u32 8388608, %v364_v22  ;;  %v159_v34 = vor.u32 8388608, %v158_v25 }
  0x8a   :  { %v367_v33 = vadd.s32 1, %v5083_v28  ;;  %4443 = vperm.xlu1 %5531, %v4405_v26   ;;  %4438 = vperm.xlu0 %5530, %v4404_v27   ;;  %v161_v36 = vadd.s32 1, %v5075_v30  ;;  %v464_v37 = vshrl.u32 %v463_v31, 23  ;;  %v6163_v38 = vand.u32 8388607, %v460_v29 }
  0x8b   :  { %v6174_v46 = vshll.u32 %v365_v32, 8  ;;  %v6178_v50 = vshll.u32 %v159_v34, 8 }
  0x8c   :  { %vm368_vm0 = vcmp.gt.s32.totalorder %v367_v33, 0  ;;  %vm162_vm1 = vcmp.gt.s32.totalorder %v161_v36, 0  ;;  %v5087_v42 = vadd.s32 4294967169, %v464_v37  ;;  %v468_v51 = vor.u32 8388608, %v6163_v38 }
  0x8d   :  { %v369_v41 = vsel %vm368_vm0, %v367_v33, 0  ;;  %v163_v47 = vsel %vm162_vm1, %v161_v36, 0 }
  0x8e   :  { %v370_v44 = vshrl.u32 %v369_v41, 5  ;;  %v371_v45 = vand.u32 31, %v369_v41  ;;  %4453 = vperm.xlu1 %5531, %v4407_v39   ;;  %4448 = vperm.xlu0 %5530, %v4406_v40   ;;  %v6176_v48 = vshrl.u32 %v163_v47, 5  ;;  %v165_v49 = vand.u32 31, %v163_v47 }
  0x8f   :  { %v6186_v63 = vadd.s32 1, %v5087_v42 }
  0x90   :  { %v372_v52 = vsub.s32 32, %v371_v45  ;;  %v374_v54 = vshll.u32 %v8601_v53, %v371_v45  ;;  %v377_v56 = vshll.u32 %v8603_v55, %v371_v45  ;;  %v380_v58 = vshll.u32 %v8605_v57, %v371_v45 }
  0x91   :  { %v383_v60 = vshll.u32 %v8607_v59, %v371_v45  ;;  %v386_v62 = vshll.u32 %v8615_v61, %v371_v45  ;;  %vm389_vm2 = vcmp.lt.s32.totalorder %v370_v44, 1  ;;  %vm390_vm3 = vcmp.lt.s32.totalorder %v370_v44, 2 }
  0x92   :  { %v373_v0 = vshrl.u32 %v8601_v53, %v372_v52  ;;  %v375_v1 = vshrl.u32 %v8603_v55, %v372_v52  ;;  %v378_v3 = vshrl.u32 %v8605_v57, %v372_v52  ;;  %v381_v4 = vshrl.u32 %v8607_v59, %v372_v52 }
  0x93   :  { %v384_v5 = vshrl.u32 %v8615_v61, %v372_v52  ;;  %v387_v8 = vshrl.u32 %v8610_v6, %v372_v52  ;;  %vm391_vm4 = vcmp.lt.s32.totalorder %v370_v44, 3  ;;  %v166_v14 = vsub.s32 32, %v165_v49 }
  0x94   :  { %v376_v9 = vor.u32 %v375_v1, %v374_v54  ;;  %v379_v10 = vor.u32 %v378_v3, %v377_v56  ;;  %v382_v11 = vor.u32 %v381_v4, %v380_v58  ;;  %vm392_vm5 = vcmp.lt.s32.totalorder %v370_v44, 4 }
  0x95   :  { %v385_v15 = vor.u32 %v384_v5, %v383_v60  ;;  %v388_v17 = vor.u32 %v387_v8, %v386_v62  ;;  %v168_v19 = vshll.u32 %v8601_v53, %v165_v49  ;;  %v171_v28 = vshll.u32 %v8603_v55, %v165_v49 }
  0x96   :  { %v393_v20 = vsel %vm389_vm2, %v373_v0, %v376_v9  ;;  %v394_v21 = vsel %vm392_vm5, %v382_v11, 2102212464  ;;  %v397_v22 = vsel %vm389_vm2, %v376_v9, %v379_v10  ;;  %v401_v24 = vsel %vm389_vm2, %v379_v10, %v382_v11 }
  0x97   :  { %v395_v25 = vsel %vm391_vm4, %v379_v10, %v394_v21  ;;  %v398_v26 = vsel %vm392_vm5, %v385_v15, 920167782  ;;  %v402_v27 = vsel %vm392_vm5, %v388_v17, 1326507024  ;;  %v167_v32 = vshrl.u32 %v8601_v53, %v166_v14 }
  0x98   :  { %v399_v30 = vsel %vm391_vm4, %v382_v11, %v398_v26  ;;  %v403_v31 = vsel %vm391_vm4, %v385_v15, %v402_v27  ;;  %v169_v33 = vshrl.u32 %v8603_v55, %v166_v14  ;;  %v396_v34 = vsel %vm390_vm3, %v393_v20, %v395_v25 }
  0x99   :  { %v400_v35 = vsel %vm390_vm3, %v397_v22, %v399_v30  ;;  %v404_v36 = vsel %vm390_vm3, %v401_v24, %v403_v31  ;;  %v172_v37 = vshrl.u32 %v8605_v57, %v166_v14  ;;  %v174_v52 = vshll.u32 %v8605_v57, %v165_v49 }
  0x9a   :  { %v6209_v39 = vmul.u32.u64.low %v6174_v46, %v404_v36  ;;  %v6210_v40 = vmul.u32.u64.high %v6174_v46, %v404_v36, %v6209_v39  ;;  %v6213_v41 = vmul.u32.u64.low %v6174_v46, %v400_v35  ;;  %v6214_v42 = vmul.u32.u64.high %v6174_v46, %v400_v35, %v6213_v41 }
  0x9b   :  { %v170_v45 = vor.u32 %v169_v33, %v168_v19  ;;  %v173_v47 = vor.u32 %v172_v37, %v171_v28  ;;  %v175_v54 = vshrl.u32 %v8607_v59, %v166_v14  ;;  %v412_v44 = vmul.u32 %v6174_v46, %v396_v34 }
  0x9c   :  { %v177_v56 = vshll.u32 %v8607_v59, %v165_v49  ;;  %v178_v58 = vshrl.u32 %v8615_v61, %v166_v14  ;;  %v181_v60 = vshrl.u32 %v8610_v6, %v166_v14  ;;  %v180_v0 = vshll.u32 %v8615_v61, %v165_v49 }
  0x9d   :  { %v176_v62 = vor.u32 %v175_v54, %v174_v52  ;;  %vm183_vm6 = vcmp.lt.s32.totalorder %v6176_v48, 1  ;;  %vm184_vm7 = vcmp.lt.s32.totalorder %v6176_v48, 2  ;;  %vm414_vm8 = vc.u32 %v6210_v40, %v6213_v41 }
  0x9e   :  { %v415_v1 = vadd.s32 1, %v6214_v42  ;;  %v179_v3 = vor.u32 %v178_v58, %v177_v56  ;;  %vm185_vm9 = vcmp.lt.s32.totalorder %v6176_v48, 3  ;;  %v182_v46 = vor.u32 %v181_v60, %v180_v0 }
  0x9f   :  { %vm186_vm10 = vcmp.lt.s32.totalorder %v6176_v48, 4  ;;  %v187_v4 = vsel %vm183_vm6, %v167_v32, %v170_v45  ;;  %v191_v5 = vsel %vm183_vm6, %v170_v45, %v173_v47  ;;  %v195_v10 = vsel %vm183_vm6, %v173_v47, %v176_v62 }
  0xa0   :  { %v416_v8 = vsel %vm414_vm8, %v415_v1, %v6214_v42  ;;  %v188_v49 = vsel %vm186_vm10, %v176_v62, 2102212464  ;;  %v192_v9 = vsel %vm186_vm10, %v179_v3, 920167782  ;;  %v196_v17 = vsel %vm186_vm10, %v182_v46, 1326507024 }
  0xa1   :  { %v417_v11 = vadd.s32 %v416_v8, %v412_v44  ;;  %v189_v14 = vsel %vm185_vm9, %v173_v47, %v188_v49  ;;  %v193_v15 = vsel %vm185_vm9, %v176_v62, %v192_v9  ;;  %v197_v20 = vsel %vm185_vm9, %v179_v3, %v196_v17 }
  0xa2   :  { %v194_v19 = vsel %vm184_vm7, %v191_v5, %v193_v15  ;;  %vm471_vm11 = vcmp.gt.s32.totalorder %v6186_v63, 0  ;;  %v257_v21 = vand.u32 2139095040, %v6172_v43  ;;  %v198_v24 = vsel %vm184_vm7, %v195_v10, %v197_v20 }
  0xa3   :  { %v418_v22 = vadd.s32 536870912, %v417_v11  ;;  %v6239_v25 = vmul.u32.u64.low %v6178_v50, %v194_v19  ;;  %v6240_v26 = vmul.u32.u64.high %v6178_v50, %v194_v19, %v6239_v25  ;;  %v190_v27 = vsel %vm184_vm7, %v187_v4, %v189_v14 }
  0xa4   :  { %v6246_v28 = vmul.u32.u64.low %v6178_v50, %v198_v24  ;;  %v6247_v30 = vmul.u32.u64.high %v6178_v50, %v198_v24, %v6246_v28  ;;  %v472_v31 = vsel %vm471_vm11, %v6186_v63, 0  ;;  %v6254_v34 = vshll.u32 %v468_v51, 8 }
  0xa5   :  { %v6250_v32 = vshrl.u32 %v418_v22, 30  ;;  %v474_v33 = vand.u32 31, %v472_v31  ;;  %v258_v35 = vshrl.u32 %v257_v21, 23  ;;  %v206_v37 = vmul.u32 %v6178_v50, %v190_v27 }
  0xa6   :  { %v209_v48 = vadd.s32 1, %v6240_v26  ;;  %vm208_vm12 = vc.u32 %v6247_v30, %v6239_v25  ;;  %v473_v42 = vshrl.u32 %v472_v31, 5 }
  0xa7   :  { %v420_v36 = vshll.u32 %v6250_v32, 30  ;;  %v475_v39 = vsub.s32 32, %v474_v33  ;;  %v477_v63 = vshll.u32 %v8601_v53, %v474_v33  ;;  %v480_v45 = vshll.u32 %v8603_v55, %v474_v33 }
  0xa8   :  { %v210_v38 = vsel %vm208_vm12, %v209_v48, %v6240_v26  ;;  %v483_v52 = vshll.u32 %v8605_v57, %v474_v33  ;;  %v486_v56 = vshll.u32 %v8607_v59, %v474_v33  ;;  %v489_v0 = vshll.u32 %v8615_v61, %v474_v33 }
  0xa9   :  { %v6263_v47 = vsub.s32 %v417_v11, %v420_v36  ;;  %v478_v51 = vshrl.u32 %v8603_v55, %v475_v39  ;;  %v211_v50 = vadd.s32 %v210_v38, %v206_v37  ;;  %v481_v54 = vshrl.u32 %v8605_v57, %v475_v39 }
  0xaa   :  { %v484_v44 = vshrl.u32 %v8607_v59, %v475_v39  ;;  %v487_v62 = vshrl.u32 %v8615_v61, %v475_v39  ;;  %v490_v4 = vshrl.u32 %v8610_v6, %v475_v39  ;;  %v476_v8 = vshrl.u32 %v8601_v53, %v475_v39 }
  0xab   :  { %v423_v58 = vsub.s32 0, %v6263_v47  ;;  %v479_v60 = vor.u32 %v478_v51, %v477_v63  ;;  %v212_v1 = vadd.s32 536870912, %v211_v50  ;;  %v482_v3 = vor.u32 %v481_v54, %v480_v45  ;;  %v77_v51 = vpop.permute.xlu1 %76 }
  0xac   :  { %v485_v46 = vor.u32 %v484_v44, %v483_v52  ;;  %v488_v49 = vor.u32 %v487_v62, %v486_v56  ;;  %v5079_v9 = vadd.s32 4294967169, %v258_v35  ;;  %v491_v11 = vor.u32 %v490_v4, %v489_v0  ;;  %v4409_v44 = vld [vmem:[%s8589_s5 + $0x48] sm:$0xff]  ;;  %v4408_v56 = vld [vmem:[%s8589_s5 + $0x40] sm:$0xff] }
  0xad   :  { %v5084_v5 = vmin.u32 %v423_v58, %v6263_v47  ;;  %v6277_v10 = vshrl.u32 %v212_v1, 30  ;;  %vm492_vm13 = vcmp.lt.s32.totalorder %v473_v42, 1  ;;  %vm495_vm14 = vcmp.lt.s32.totalorder %v473_v42, 4  ;;  %4463 = vperm.xlu1 %5531, %v4409_v44   ;;  %4458 = vperm.xlu0 %5530, %v4408_v56  }
  0xae   :  { %vm493_vm15 = vcmp.lt.s32.totalorder %v473_v42, 2  ;;  %v497_v15 = vsel %vm495_vm14, %v485_v46, 2102212464  ;;  %v500_v17 = vsel %vm492_vm13, %v479_v60, %v482_v3  ;;  %vm494_vm0 = vcmp.lt.s32.totalorder %v473_v42, 3 }
  0xaf   :  { %v425_v14 = vclz %v5084_v5  ;;  %v214_v19 = vshll.u32 %v6277_v10, 30  ;;  %v501_v20 = vsel %vm495_vm14, %v488_v49, 920167782  ;;  %v504_v21 = vsel %vm492_vm13, %v482_v3, %v485_v46 }
  0xb0   :  { %v496_v24 = vsel %vm492_vm13, %v476_v8, %v479_v60  ;;  %v502_v26 = vsel %vm494_vm0, %v485_v46, %v501_v20  ;;  %v505_v27 = vsel %vm495_vm14, %v491_v11, 1326507024  ;;  %v498_v31 = vsel %vm494_vm0, %v482_v3, %v497_v15 }
  0xb1   :  { %v5085_v22 = vadd.s32 4294967294, %v425_v14  ;;  %v6280_v28 = vsub.s32 %v211_v50, %v214_v19  ;;  %v503_v33 = vsel %vm493_vm15, %v500_v17, %v502_v26  ;;  %v506_v35 = vsel %vm494_vm0, %v488_v49, %v505_v27 }
  0xb2   :  { %v507_v36 = vsel %vm493_vm15, %v504_v21, %v506_v35  ;;  %v6285_v37 = vmul.u32.u64.low %v6254_v34, %v503_v33  ;;  %v6286_v48 = vmul.u32.u64.high %v6254_v34, %v503_v33, %v6285_v37  ;;  %v499_v50 = vsel %vm493_vm15, %v496_v24, %v498_v31 }
  0xb3   :  { %vm5086_vm1 = vcmp.lt.s32.totalorder %v5085_v22, 0  ;;  %v217_v63 = vsub.s32 0, %v6280_v28  ;;  %v6291_v45 = vmul.u32.u64.low %v6254_v34, %v507_v36  ;;  %v6292_v38 = vmul.u32.u64.high %v6254_v34, %v507_v36, %v6291_v45 }
  0xb4   :  { %v428_v39 = vsel %vm5086_vm1, 0, %v5085_v22  ;;  %v264_v54 = vadd.s32 1, %v5079_v9  ;;  %v8595_v60 = vand.u32 2147483647, %v6172_v43  ;;  %v518_v0 = vadd.s32 1, %v6286_v48 }
  0xb5   :  { %v433_v52 = vsub.s32 4294967266, %v428_v39  ;;  %v5076_v58 = vmin.u32 %v217_v63, %v6280_v28  ;;  %v429_v62 = vsub.s32 32, %v428_v39  ;;  %v6305_v42 = vmul.f32 %v6122_v7, %v77_v51 }
  0xb6   :  { %vm265_vm2 = vcmp.gt.s32.totalorder %v264_v54, 0  ;;  %v515_v3 = vmul.u32 %v6254_v34, %v499_v50  ;;  %vm517_vm3 = vc.u32 %v6292_v38, %v6285_v37  ;;  %v413_v4 = vadd.s32 %v6213_v41, %v6210_v40 }
  0xb7   :  { %8721 = vst [vmem:[#allocation5_spill] sm:$0xff] %v6305_v42  ;;  %v219_v1 = vclz %v5076_v58  ;;  %v266_v46 = vsel %vm265_vm2, %v264_v54, 0  ;;  %v434_v5 = vadd.s32 127, %v433_v52  ;;  %v519_v8 = vsel %vm517_vm3, %v518_v0, %v6286_v48 }
  0xb8   :  { %v520_v9 = vadd.s32 %v519_v8, %v515_v3  ;;  %v261_v11 = vand.u32 8388607, %v8595_v60  ;;  %v268_v14 = vand.u32 31, %v266_v46  ;;  %v431_v15 = vshrl.u32 %v413_v4, %v429_v62 }
  0xb9   :  { %v5077_v49 = vadd.s32 4294967294, %v219_v1  ;;  %v669_v17 = vand.u32 2139095040, %v6305_v42  ;;  %v430_v20 = vshll.u32 %v6263_v47, %v428_v39  ;;  %v435_v21 = vshll.u32 %v434_v5, 23 }
  0xba   :  { %v521_v34 = vadd.s32 536870912, %v520_v9  ;;  %v269_v19 = vsub.s32 32, %v268_v14  ;;  %v262_v41 = vor.u32 8388608, %v261_v11  ;;  %v8599_v24 = vand.u32 2147483647, %v6305_v42 }
  0xbb   :  { %vm5078_vm4 = vcmp.lt.s32.totalorder %v5077_v49, 0  ;;  %v432_v26 = vor.u32 %v431_v15, %v430_v20  ;;  %v670_v33 = vshrl.u32 %v669_v17, 23  ;;  %v271_v36 = vshll.u32 %v8601_v53, %v268_v14 }
  0xbc   :  { %v6317_v22 = vsel %vm5078_vm4, 0, %v5077_v49  ;;  %v6319_v40 = vshrl.u32 %v521_v34, 30  ;;  %v272_v27 = vshrl.u32 %v8603_v55, %v269_v19  ;;  %v275_v31 = vshrl.u32 %v8605_v57, %v269_v19 }
  0xbd   :  { %v274_v47 = vshll.u32 %v8603_v55, %v268_v14  ;;  %v278_v48 = vshrl.u32 %v8607_v59, %v269_v19  ;;  %v436_v39 = vor.u32 4788187, %v435_v21  ;;  %v227_v63 = vsub.s32 4294967266, %v6317_v22 }
  0xbe   :  { %v523_v35 = vshll.u32 %v6319_v40, 30  ;;  %v267_v45 = vshrl.u32 %v266_v46, 5  ;;  %v277_v51 = vshll.u32 %v8605_v57, %v268_v14  ;;  %v273_v50 = vor.u32 %v272_v27, %v271_v36 }
  0xbf   :  { %v276_v54 = vor.u32 %v275_v31, %v274_v47  ;;  %v280_v44 = vshll.u32 %v8607_v59, %v268_v14  ;;  %v281_v58 = vshrl.u32 %v8615_v61, %v269_v19  ;;  %v283_v62 = vshll.u32 %v8615_v61, %v268_v14 }
  0xc0   :  { %v6330_v52 = vsub.s32 %v520_v9, %v523_v35  ;;  %v279_v56 = vor.u32 %v278_v48, %v277_v51  ;;  %v284_v0 = vshrl.u32 %v8610_v6, %v269_v19  ;;  %v439_v1 = vcvt.s32.f32 %v432_v26 }
  0xc1   :  { %v302_v4 = vshll.u32 %v262_v41, 8  ;;  %v5095_v46 = vadd.s32 4294967169, %v670_v33  ;;  %v437_v5 = vand.u32 2147483647, %v436_v39  ;;  %v282_v8 = vor.u32 %v281_v58, %v280_v44 }
  0xc2   :  { %v526_v3 = vsub.s32 0, %v6330_v52  ;;  %v285_v49 = vor.u32 %v284_v0, %v283_v62  ;;  %vm286_vm5 = vcmp.lt.s32.totalorder %v267_v45, 1  ;;  %v228_v9 = vadd.s32 127, %v227_v63 }
  0xc3   :  { %vm287_vm6 = vcmp.lt.s32.totalorder %v267_v45, 2  ;;  %vm289_vm7 = vcmp.lt.s32.totalorder %v267_v45, 4  ;;  %vm288_vm8 = vcmp.lt.s32.totalorder %v267_v45, 3  ;;  %v294_v14 = vsel %vm286_vm5, %v273_v50, %v276_v54  ;;  %v72_v45 = vpop.permute.xlu0 %71 }
  0xc4   :  { %v5088_v11 = vmin.u32 %v526_v3, %v6330_v52  ;;  %v291_v15 = vsel %vm289_vm7, %v279_v56, 2102212464  ;;  %v295_v17 = vsel %vm289_vm7, %v282_v8, 920167782  ;;  %v223_v34 = vsub.s32 32, %v6317_v22 }
  0xc5   :  { %v270_v21 = vshrl.u32 %v8601_v53, %v269_v19  ;;  %v296_v41 = vsel %vm288_vm8, %v279_v56, %v295_v17  ;;  %v440_v26 = vmul.f32 %v439_v1, %v437_v5  ;;  %v298_v31 = vsel %vm286_vm5, %v276_v54, %v279_v56  ;;  %v87_v17 = vpop.permute.xlu1 %86 }
  0xc6   :  { %v528_v20 = vclz %v5088_v11  ;;  %v297_v27 = vsel %vm287_vm6, %v294_v14, %v296_v41  ;;  %v299_v33 = vsel %vm289_vm7, %v285_v49, 1326507024  ;;  %v292_v47 = vsel %vm288_vm8, %v276_v54, %v291_v15 }
  0xc7   :  { %v290_v36 = vsel %vm286_vm5, %v270_v21, %v273_v50  ;;  %v300_v48 = vsel %vm288_vm8, %v282_v8, %v299_v33  ;;  %v229_v39 = vshll.u32 %v228_v9, 23  ;;  %v207_v19 = vadd.s32 %v6239_v25, %v6247_v30 }
  0xc8   :  { %v5089_v35 = vadd.s32 4294967294, %v528_v20  ;;  %v301_v63 = vsel %vm287_vm6, %v298_v31, %v300_v48  ;;  %v6345_v51 = vmul.u32.u64.low %v302_v4, %v297_v27  ;;  %v6346_v44 = vmul.u32.u64.high %v302_v4, %v297_v27, %v6345_v51 }
  0xc9   :  { %v6351_v58 = vmul.u32.u64.low %v302_v4, %v301_v63  ;;  %v6352_v62 = vmul.u32.u64.high %v302_v4, %v301_v63, %v6351_v58  ;;  %v516_v56 = vadd.s32 %v6285_v37, %v6292_v38  ;;  %v293_v54 = vsel %vm287_vm6, %v290_v36, %v292_v47 }
  0xca   :  { %vm5090_vm9 = vcmp.lt.s32.totalorder %v5089_v35, 0  ;;  %v676_v0 = vadd.s32 1, %v5095_v46  ;;  %v224_v1 = vshll.u32 %v6280_v28, %v6317_v22  ;;  %v225_v3 = vshrl.u32 %v207_v19, %v223_v34 }
  0xcb   :  { %v531_v50 = vsel %vm5090_vm9, 0, %v5089_v35  ;;  %v441_v49 = vxor.u32 2147483648, %v440_v26  ;;  %v6359_v9 = vor.u32 4788187, %v229_v39  ;;  %v312_v25 = vadd.s32 1, %v6346_v44 }
  0xcc   :  { %v532_v5 = vsub.s32 32, %v531_v50  ;;  %v536_v8 = vsub.s32 4294967266, %v531_v50  ;;  %vm677_vm10 = vcmp.gt.s32.totalorder %v676_v0, 0  ;;  %v309_v11 = vmul.u32 %v302_v4, %v293_v54 }
  0xcd   :  { %vm311_vm11 = vc.u32 %v6352_v62, %v6345_v51  ;;  %v673_v37 = vand.u32 8388607, %v8599_v24  ;;  %v678_v22 = vsel %vm677_vm10, %v676_v0, 0  ;;  %vm8655_vm12 = vcmp.lt.s32.totalorder %v6131_v12, 0 }
  0xce   :  { %v537_v30 = vadd.s32 127, %v536_v8  ;;  %v534_v38 = vshrl.u32 %v516_v56, %v532_v5  ;;  %v313_v28 = vsel %vm311_vm11, %v312_v25, %v6346_v44  ;;  %v6368_v46 = vor.u32 %v225_v3, %v224_v1 }
  0xcf   :  { %v314_v14 = vadd.s32 %v313_v28, %v309_v11  ;;  %v6372_v4 = vsel %vm8655_vm12, %v441_v49, %v440_v26  ;;  %v231_v34 = vand.u32 2147483647, %v6359_v9  ;;  %v533_v20 = vshll.u32 %v6330_v52, %v531_v50 }
  0xd0   :  { %v538_v15 = vshll.u32 %v537_v30, 23  ;;  %v680_v21 = vand.u32 31, %v678_v22  ;;  %v674_v31 = vor.u32 8388608, %v673_v37  ;;  %v6377_v33 = vmul.f32 %v6122_v7, %v72_v45 }
  0xd1   :  { %v315_v27 = vadd.s32 536870912, %v314_v14  ;;  %v535_v35 = vor.u32 %v534_v38, %v533_v20  ;;  %v6379_v36 = vshrl.u32 %v678_v22, 5  ;;  %v6382_v48 = vmul.f32 %v6122_v7, %v87_v17 }
  0xd2   :  { %v539_v41 = vor.u32 4788187, %v538_v15  ;;  %v681_v47 = vsub.s32 32, %v680_v21  ;;  %v683_v39 = vshll.u32 %v8601_v53, %v680_v21  ;;  %v686_v52 = vshll.u32 %v8603_v55, %v680_v21 }
  0xd3   :  { %8722 = vst [vmem:[#allocation6_spill] sm:$0xff] %v6382_v48  ;;  %v6384_v26 = vshrl.u32 %v315_v27, 30  ;;  %v689_v63 = vshll.u32 %v8605_v57, %v680_v21  ;;  %v692_v54 = vshll.u32 %v8607_v59, %v680_v21  ;;  %v695_v49 = vshll.u32 %v8615_v61, %v680_v21 }
  0xd4   :  { %v540_v44 = vand.u32 2147483647, %v539_v41  ;;  %v684_v19 = vshrl.u32 %v8603_v55, %v681_v47  ;;  %v687_v58 = vshrl.u32 %v8605_v57, %v681_v47  ;;  %v690_v56 = vshrl.u32 %v8607_v59, %v681_v47 }
  0xd5   :  { %v317_v50 = vshll.u32 %v6384_v26, 30  ;;  %v693_v0 = vshrl.u32 %v8615_v61, %v681_v47  ;;  %v696_v1 = vshrl.u32 %v8610_v6, %v681_v47  ;;  %vm6399_vm13 = vcmp.le.f32.partialorder %v357_v16, 0.7853982 }
  0xd6   :  { %v685_v3 = vor.u32 %v684_v19, %v683_v39  ;;  %v688_v5 = vor.u32 %v687_v58, %v686_v52  ;;  %v691_v8 = vor.u32 %v690_v56, %v689_v63  ;;  %vm698_vm14 = vcmp.lt.s32.totalorder %v6379_v36, 1  ;;  %v4410_v19 = vld [vmem:[%s8589_s5 + $0x50] sm:$0xff] }
  0xd7   :  { %v6403_v30 = vsub.s32 %v314_v14, %v317_v50  ;;  %v694_v11 = vor.u32 %v693_v0, %v692_v54  ;;  %v8598_v37 = vand.u32 2147483647, %v6377_v33  ;;  %v542_v38 = vcvt.s32.f32 %v535_v35  ;;  %4468 = vperm.xlu0 %5530, %v4410_v19  }
  0xd8   :  { %v697_v28 = vor.u32 %v696_v1, %v695_v49  ;;  %vm701_vm15 = vcmp.lt.s32.totalorder %v6379_v36, 4  ;;  %v706_v22 = vsel %vm698_vm14, %v685_v3, %v688_v5  ;;  %vm700_vm0 = vcmp.lt.s32.totalorder %v6379_v36, 3 }
  0xd9   :  { %v320_v45 = vsub.s32 0, %v6403_v30  ;;  %v707_v16 = vsel %vm701_vm15, %v694_v11, 920167782  ;;  %v566_v15 = vand.u32 2139095040, %v6377_v33  ;;  %v543_v14 = vmul.f32 %v542_v38, %v540_v44 }
  0xda   :  { %vm699_vm1 = vcmp.lt.s32.totalorder %v6379_v36, 2  ;;  %v708_v17 = vsel %vm700_vm0, %v691_v8, %v707_v16  ;;  %v714_v20 = vshll.u32 %v674_v31, 8  ;;  %v703_v41 = vsel %vm701_vm15, %v691_v8, 2102212464  ;;  %v4411_v31 = vld [vmem:[%s8589_s5 + $0x58] sm:$0xff] }
  0xdb   :  { %v5080_v21 = vmin.u32 %v320_v45, %v6403_v30  ;;  %v709_v27 = vsel %vm699_vm1, %v706_v22, %v708_v17  ;;  %v710_v35 = vsel %vm698_vm14, %v688_v5, %v691_v8  ;;  %v682_v39 = vshrl.u32 %v8601_v53, %v681_v47  ;;  %4473 = vperm.xlu1 %5531, %v4411_v31  }
  0xdc   :  { %v711_v52 = vsel %vm701_vm15, %v697_v28, 1326507024  ;;  %v6422_v63 = vmul.u32.u64.low %v714_v20, %v709_v27  ;;  %v6423_v44 = vmul.u32.u64.high %v714_v20, %v709_v27, %v6422_v63  ;;  %v567_v50 = vshrl.u32 %v566_v15, 23 }
  0xdd   :  { %v322_v58 = vclz %v5080_v21  ;;  %v712_v56 = vsel %vm700_vm0, %v694_v11, %v711_v52  ;;  %v570_v47 = vand.u32 8388607, %v8598_v37  ;;  %v544_v54 = vxor.u32 2147483648, %v543_v14 }
  0xde   :  { %v702_v0 = vsel %vm698_vm14, %v682_v39, %v685_v3  ;;  %v704_v1 = vsel %vm700_vm0, %v688_v5, %v703_v41  ;;  %v713_v8 = vsel %vm699_vm1, %v710_v35, %v712_v56  ;;  %v5091_v11 = vadd.s32 4294967169, %v567_v50 }
  0xdf   :  { %v5081_v49 = vadd.s32 4294967294, %v322_v58  ;;  %v6442_v38 = vmul.u32.u64.low %v714_v20, %v713_v8  ;;  %v6443_v28 = vmul.u32.u64.high %v714_v20, %v713_v8, %v6442_v38  ;;  %v445_v22 = vsel %vm6399_vm13, %v6131_v12, %v6372_v4 }
  0xe0   :  { %v233_v45 = vcvt.s32.f32 %v6368_v46  ;;  %v8597_v3 = vand.u32 2147483647, %v6382_v48  ;;  %v705_v5 = vsel %vm699_vm1, %v702_v0, %v704_v1  ;;  %v724_v16 = vadd.s32 1, %v6423_v44 }
  0xe1   :  { %v573_v15 = vadd.s32 1, %v5091_v11  ;;  %v875_v17 = vand.u32 2139095040, %v6382_v48  ;;  %vm8654_vm2 = vcmp.lt.s32.totalorder %v6149_v23, 0  ;;  %vm5082_vm3 = vcmp.lt.s32.totalorder %v5081_v49, 0 }
  0xe2   :  { %v6457_v21 = vmul.f32 %v233_v45, %v231_v34  ;;  %5620 = vcosq.f32 %v445_v22  ;;  %vm6462_vm4 = vcmp.le.f32.partialorder %v460_v29, 0.7853982  ;;  %v545_v4 = vsel %vm8654_vm2, %v544_v54, %v543_v14  ;;  %v82_v34 = vpop.permute.xlu0 %81 }
  0xe3   :  { %v571_v36 = vor.u32 8388608, %v570_v47  ;;  %v721_v41 = vmul.u32 %v714_v20, %v705_v5  ;;  %vm723_vm5 = vc.u32 %v6443_v28, %v6422_v63  ;;  %vm574_vm6 = vcmp.gt.s32.totalorder %v573_v15, 0 }
  0xe4   :  { %v6472_v9 = vand.u32 8388607, %v8597_v3  ;;  %v6474_v27 = vsel %vm5082_vm3, 0, %v5081_v49  ;;  %v725_v29 = vsel %vm723_vm5, %v724_v16, %v6423_v44  ;;  %v575_v35 = vsel %vm574_vm6, %v573_v15, 0 }
  0xe5   :  { %v876_v39 = vshrl.u32 %v875_v17, 23  ;;  %5622 = vsinq.f32 %v445_v22  ;;  %v726_v52 = vadd.s32 %v725_v29, %v721_v41  ;;  %v577_v20 = vand.u32 31, %v575_v35 }
  0xe6   :  { %v6481_v31 = vsel %vm6462_vm4, %v6149_v23, %v545_v4  ;;  %v310_v19 = vadd.s32 %v6345_v51, %v6352_v62  ;;  %v6485_v58 = vshll.u32 %v571_v36, 8  ;;  %v6488_v56 = vmul.f32 %v6122_v7, %v82_v34 }
  0xe7   :  { %v326_v44 = vsub.s32 32, %v6474_v27  ;;  %v727_v50 = vadd.s32 536870912, %v726_v52  ;;  %v578_v47 = vsub.s32 32, %v577_v20  ;;  %v880_v54 = vor.u32 8388608, %v6472_v9 }
  0xe8   :  { %8727 = vst [vmem:[#allocation7_spill] sm:$0xff] %v6488_v56  ;;  %v576_v0 = vshrl.u32 %v575_v35, 5  ;;  %v580_v1 = vshll.u32 %v8601_v53, %v577_v20  ;;  %v583_v8 = vshll.u32 %v8603_v55, %v577_v20  ;;  %v5103_v49 = vadd.s32 4294967169, %v876_v39 }
  0xe9   :  { %v6494_v38 = vshrl.u32 %v727_v50, 30  ;;  %v581_v51 = vshrl.u32 %v8603_v55, %v578_v47  ;;  %v584_v62 = vshrl.u32 %v8605_v57, %v578_v47  ;;  %v586_v11 = vshll.u32 %v8605_v57, %v577_v20 }
  0xea   :  { %v587_v22 = vshrl.u32 %v8607_v59, %v578_v47  ;;  %v589_v45 = vshll.u32 %v8607_v59, %v577_v20  ;;  %v590_v5 = vshrl.u32 %v8615_v61, %v578_v47  ;;  %v592_v16 = vshll.u32 %v8615_v61, %v577_v20 }
  0xeb   :  { %8728 = vst [vmem:[#allocation8_spill] sm:$0xff] %v6494_v38  ;;  %v729_v15 = vshll.u32 %v6494_v38, 30  ;;  %v582_v17 = vor.u32 %v581_v51, %v580_v1  ;;  %v585_v4 = vor.u32 %v584_v62, %v583_v8  ;;  %v593_v36 = vshrl.u32 %v8610_v6, %v578_v47 }
  0xec   :  { %v6505_v41 = vpop.eup %5620  ;;  %v330_v9 = vsub.s32 4294967266, %v6474_v27  ;;  %v579_v34 = vshrl.u32 %v8601_v53, %v578_v47  ;;  %v588_v29 = vor.u32 %v587_v22, %v586_v11  ;;  %v591_v35 = vor.u32 %v590_v5, %v589_v45 }
  0xed   :  { %v6509_v39 = vsub.s32 %v726_v52, %v729_v15  ;;  %v594_v50 = vor.u32 %v593_v36, %v592_v16  ;;  %vm595_vm7 = vcmp.lt.s32.totalorder %v576_v0, 1  ;;  %v882_v2 = vadd.s32 1, %v5103_v49  ;;  %v97_v16 = vpop.permute.xlu1 %96 }
  0xee   :  { %vm597_vm8 = vcmp.lt.s32.totalorder %v576_v0, 3  ;;  %vm598_vm9 = vcmp.lt.s32.totalorder %v576_v0, 4  ;;  %v599_v20 = vsel %vm595_vm7, %v579_v34, %v582_v17  ;;  %v603_v1 = vsel %vm595_vm7, %v582_v17, %v585_v4 }
  0xef   :  { %v6511_v8 = vpop.eup %5622  ;;  %v732_v51 = vsub.s32 0, %v6509_v39  ;;  %v600_v62 = vsel %vm598_vm9, %v588_v29, 2102212464  ;;  %v604_v60 = vsel %vm598_vm9, %v591_v35, 920167782  ;;  %v607_v18 = vsel %vm595_vm7, %v585_v4, %v588_v29 }
  0xf0   :  { %vm596_vm10 = vcmp.lt.s32.totalorder %v576_v0, 2  ;;  %v601_v47 = vsel %vm597_vm8, %v585_v4, %v600_v62  ;;  %v605_v52 = vsel %vm597_vm8, %v588_v29, %v604_v60  ;;  %v608_v11 = vsel %vm598_vm9, %v594_v50, 1326507024 }
  0xf1   :  { %v6516_v22 = vadd.s32 127, %v330_v9  ;;  %v5096_v49 = vmin.u32 %v732_v51, %v6509_v39  ;;  %v606_v45 = vsel %vm596_vm10, %v603_v1, %v605_v52  ;;  %v609_v5 = vsel %vm597_vm8, %v591_v35, %v608_v11 }
  0xf2   :  { %v602_v15 = vsel %vm596_vm10, %v599_v20, %v601_v47  ;;  %v610_v17 = vsel %vm596_vm10, %v607_v18, %v609_v5  ;;  %v6521_v36 = vmul.u32.u64.low %v6485_v58, %v606_v45  ;;  %v6522_v34 = vmul.u32.u64.high %v6485_v58, %v606_v45, %v6521_v36 }
  0xf3   :  { %v734_v14 = vclz %v5096_v49  ;;  %v6526_v4 = vmul.u32.u64.low %v6485_v58, %v610_v17  ;;  %v6527_v60 = vmul.u32.u64.high %v6485_v58, %v610_v17, %v6526_v4  ;;  %vm883_vm11 = vcmp.gt.s32.totalorder %v882_v2, 0 }
  0xf4   :  { %5624 = vcosq.f32 %v6481_v31  ;;  %v722_v0 = vadd.s32 %v6422_v63, %v6443_v28  ;;  %v884_v9 = vsel %vm883_vm11, %v882_v2, 0  ;;  %v6533_v29 = vmul.f32 %v6122_v7, %v97_v16 }
  0xf5   :  { %v6535_v18 = vshrl.u32 %v310_v19, %v326_v44  ;;  %v5097_v35 = vadd.s32 4294967294, %v734_v14  ;;  %v886_v50 = vand.u32 31, %v884_v9  ;;  %v6537_v20 = vshll.u32 %v880_v54, 8 }
  0xf6   :  { %8729 = vst [vmem:[#allocation9_spill] sm:$0xff] %v6533_v29  ;;  %v332_v1 = vshll.u32 %v6516_v22, 23  ;;  %v618_v51 = vmul.u32 %v6485_v58, %v602_v15  ;;  %v621_v62 = vadd.s32 1, %v6522_v34  ;;  %v8600_v47 = vand.u32 2147483647, %v6488_v56 }
  0xf7   :  { %vm5098_vm14 = vcmp.lt.s32.totalorder %v5097_v35, 0  ;;  %vm620_vm15 = vc.u32 %v6527_v60, %v6521_v36  ;;  %v887_v2 = vsub.s32 32, %v886_v50  ;;  %v772_v63 = vand.u32 2139095040, %v6488_v56 }
  0xf8   :  { %v737_v28 = vsel %vm5098_vm14, 0, %v5097_v35  ;;  %v622_v14 = vsel %vm620_vm15, %v621_v62, %v6522_v34  ;;  %v6547_v19 = vshrl.u32 %v884_v9, 5  ;;  %v889_v44 = vshll.u32 %v8601_v53, %v886_v50 }
  0xf9   :  { %v738_v54 = vsub.s32 32, %v737_v28  ;;  %v742_v58 = vsub.s32 4294967266, %v737_v28  ;;  %v623_v52 = vadd.s32 %v622_v14, %v618_v51  ;;  %v892_v11 = vshll.u32 %v8603_v55, %v886_v50 }
  0xfa   :  { %v739_v49 = vshll.u32 %v6509_v39, %v737_v28  ;;  %v890_v45 = vshrl.u32 %v8603_v55, %v887_v2  ;;  %v893_v5 = vshrl.u32 %v8605_v57, %v887_v2  ;;  %v895_v16 = vshll.u32 %v8605_v57, %v886_v50 }
  0xfb   :  { %v740_v15 = vshrl.u32 %v722_v0, %v738_v54  ;;  %v743_v17 = vadd.s32 127, %v742_v58  ;;  %v624_v34 = vadd.s32 536870912, %v623_v52  ;;  %v896_v4 = vshrl.u32 %v8607_v59, %v887_v2 }
  0xfc   :  { %v891_v9 = vor.u32 %v890_v45, %v889_v44  ;;  %v894_v35 = vor.u32 %v893_v5, %v892_v11  ;;  %v898_v62 = vshll.u32 %v8607_v59, %v886_v50  ;;  %v899_v51 = vshrl.u32 %v8615_v61, %v887_v2 }
  0xfd   :  { %v741_v14 = vor.u32 %v740_v15, %v739_v49  ;;  %v744_v3 = vshll.u32 %v743_v17, 23  ;;  %v6558_v39 = vshrl.u32 %v624_v34, 30  ;;  %v897_v28 = vor.u32 %v896_v4, %v895_v16 }
  0xfe   :  { %v6560_v37 = vpop.eup %5624  ;;  %v900_v24 = vor.u32 %v899_v51, %v898_v62  ;;  %v901_v0 = vshll.u32 %v8615_v61, %v886_v50  ;;  %v902_v54 = vshrl.u32 %v8610_v6, %v887_v2  ;;  %v776_v44 = vand.u32 8388607, %v8600_v47 }
  0xff   :  { %v745_v58 = vor.u32 4788187, %v744_v3  ;;  %v626_v11 = vshll.u32 %v6558_v39, 30  ;;  %v888_v45 = vshrl.u32 %v8601_v53, %v887_v2  ;;  %v773_v49 = vshrl.u32 %v772_v63, 23 }
 0x100   :  { %v748_v5 = vcvt.s32.f32 %v741_v14  ;;  %v903_v15 = vor.u32 %v902_v54, %v901_v0  ;;  %vm904_vm0 = vcmp.lt.s32.totalorder %v6547_v19, 1  ;;  %vm907_vm1 = vcmp.lt.s32.totalorder %v6547_v19, 4  ;;  %v4413_v14 = vld [vmem:[%s8589_s5 + $0x68] sm:$0xff] }
 0x101   :  { %v746_v16 = vand.u32 2147483647, %v745_v58  ;;  %v6570_v17 = vsub.s32 %v623_v52, %v626_v11  ;;  %v909_v50 = vsel %vm907_vm1, %v897_v28, 2102212464  ;;  %v912_v34 = vsel %vm904_vm0, %v891_v9, %v894_v35  ;;  %v4412_v52 = vld [vmem:[%s8589_s5 + $0x60] sm:$0xff]  ;;  %4483 = vperm.xlu1 %5531, %v4413_v14  }
 0x102   :  { %vm906_vm3 = vcmp.lt.s32.totalorder %v6547_v19, 3  ;;  %v913_v4 = vsel %vm907_vm1, %v900_v24, 920167782  ;;  %v916_v3 = vsel %vm904_vm0, %v894_v35, %v897_v28  ;;  %v917_v62 = vsel %vm907_vm1, %v903_v15, 1326507024  ;;  %4478 = vperm.xlu0 %5530, %v4412_v52  }
 0x103   :  { %v629_v51 = vsub.s32 0, %v6570_v17  ;;  %vm905_vm5 = vcmp.lt.s32.totalorder %v6547_v19, 2  ;;  %v908_v2 = vsel %vm904_vm0, %v888_v45, %v891_v9  ;;  %v914_v63 = vsel %vm906_vm3, %v897_v28, %v913_v4  ;;  %v92_v4 = vpop.permute.xlu0 %91 }
 0x104   :  { %v910_v0 = vsel %vm906_vm3, %v894_v35, %v909_v50  ;;  %v915_v54 = vsel %vm905_vm5, %v912_v34, %v914_v63  ;;  %v918_v58 = vsel %vm906_vm3, %v900_v24, %v917_v62  ;;  %v5099_v11 = vadd.s32 4294967169, %v773_v49 }
 0x105   :  { %v327_v9 = vshll.u32 %v6403_v30, %v6474_v27  ;;  %v6585_v28 = vmul.f32 %v748_v5, %v746_v16  ;;  %v5092_v45 = vmin.u32 %v629_v51, %v6570_v17  ;;  %v919_v15 = vsel %vm905_vm5, %v916_v3, %v918_v58 }
 0x106   :  { %v6591_v35 = vmul.u32.u64.low %v6537_v20, %v919_v15  ;;  %v6592_v50 = vmul.u32.u64.high %v6537_v20, %v919_v15, %v6591_v35  ;;  %v6595_v24 = vmul.u32.u64.low %v6537_v20, %v915_v54  ;;  %v6596_v49 = vmul.u32.u64.high %v6537_v20, %v915_v54, %v6595_v24 }
 0x107   :  { %v631_v34 = vclz %v5092_v45  ;;  %v911_v30 = vsel %vm905_vm5, %v908_v2, %v910_v0  ;;  %v777_v27 = vor.u32 8388608, %v776_v44  ;;  %v779_v5 = vadd.s32 1, %v5099_v11 }
 0x108   :  { %v6602_v16 = vor.u32 %v6535_v18, %v327_v9  ;;  %v6606_v3 = vor.u32 4788187, %v332_v1  ;;  %v1081_v62 = vand.u32 2139095040, %v6533_v29  ;;  %v6610_v51 = vmul.f32 %v6122_v7, %v92_v4 }
 0x109   :  { %v619_v63 = vadd.s32 %v6521_v36, %v6527_v60  ;;  %v5093_v14 = vadd.s32 4294967294, %v631_v34  ;;  %vm780_vm6 = vcmp.gt.s32.totalorder %v779_v5, 0  ;;  %v8609_v19 = vand.u32 2147483647, %v6533_v29 }
 0x10a   :  { %8730 = vst [vmem:[#allocation10_spill] sm:$0xff] %v6610_v51  ;;  %v927_v18 = vmul.u32 %v6537_v20, %v911_v30  ;;  %vm929_vm7 = vc.u32 %v6592_v50, %v6595_v24  ;;  %v930_v22 = vadd.s32 1, %v6596_v49  ;;  %v781_v1 = vsel %vm780_vm6, %v779_v5, 0 }
 0x10b   :  { %vm5094_vm8 = vcmp.lt.s32.totalorder %v5093_v14, 0  ;;  %v6620_v2 = vshll.u32 %v777_v27, 8  ;;  %v1082_v52 = vshrl.u32 %v1081_v62, 23  ;;  %v782_v60 = vshrl.u32 %v781_v1, 5 }
 0x10c   :  { %v634_v0 = vsel %vm5094_vm8, 0, %v5093_v14  ;;  %v931_v36 = vsel %vm929_vm7, %v930_v22, %v6596_v49  ;;  %v783_v54 = vand.u32 31, %v781_v1  ;;  %vm8647_vm9 = vcmp.lt.s32.totalorder %v6305_v42, 0 }
 0x10d   :  { %v635_v58 = vsub.s32 32, %v634_v0  ;;  %v636_v11 = vshll.u32 %v6570_v17, %v634_v0  ;;  %v639_v9 = vsub.s32 4294967266, %v634_v0  ;;  %v932_v20 = vadd.s32 %v931_v36, %v927_v18 }
 0x10e   :  { %v784_v45 = vsub.s32 32, %v783_v54  ;;  %v786_v15 = vshll.u32 %v8601_v53, %v783_v54  ;;  %v789_v4 = vshll.u32 %v8603_v55, %v783_v54  ;;  %v792_v35 = vshll.u32 %v8605_v57, %v783_v54 }
 0x10f   :  { %v637_v34 = vshrl.u32 %v619_v63, %v635_v58  ;;  %v640_v30 = vadd.s32 127, %v639_v9  ;;  %v933_v27 = vadd.s32 536870912, %v932_v20  ;;  %v795_v5 = vshll.u32 %v8607_v59, %v783_v54 }
 0x110   :  { %v785_v49 = vshrl.u32 %v8601_v53, %v784_v45  ;;  %v787_v17 = vshrl.u32 %v8603_v55, %v784_v45  ;;  %v790_v62 = vshrl.u32 %v8605_v57, %v784_v45  ;;  %v793_v14 = vshrl.u32 %v8607_v59, %v784_v45 }
 0x111   :  { %v638_v18 = vor.u32 %v637_v34, %v636_v11  ;;  %v641_v22 = vshll.u32 %v640_v30, 23  ;;  %v6633_v1 = vshrl.u32 %v933_v27, 30  ;;  %v796_v63 = vshrl.u32 %v8615_v61, %v784_v45 }
 0x112   :  { %v788_v0 = vor.u32 %v787_v17, %v786_v15  ;;  %v791_v36 = vor.u32 %v790_v62, %v789_v4  ;;  %v794_v58 = vor.u32 %v793_v14, %v792_v35  ;;  %v798_v9 = vshll.u32 %v8615_v61, %v783_v54 }
 0x113   :  { %8731 = vst [vmem:[#allocation11_spill] sm:$0xff] %v6633_v1  ;;  %v642_v47 = vor.u32 4788187, %v641_v22  ;;  %v645_v44 = vcvt.s32.f32 %v638_v18  ;;  %v935_v53 = vshll.u32 %v6633_v1, 30  ;;  %v797_v55 = vor.u32 %v796_v63, %v795_v5 }
 0x114   :  { %v8732_v57 = vand.u32 2147483647, %v6305_v42  ;;  %v8733_v59 = vmov 0  ;;  %v799_v11 = vshrl.u32 %v8610_v6, %v784_v45  ;;  %vm801_vm11 = vcmp.lt.s32.totalorder %v782_v60, 1 }
 0x115   :  { %vm802_vm14 = vcmp.lt.s32.totalorder %v782_v60, 2  ;;  %vm803_vm15 = vcmp.lt.s32.totalorder %v782_v60, 3  ;;  %v643_v15 = vand.u32 2147483647, %v642_v47  ;;  %v6645_v4 = vsub.s32 %v932_v20, %v935_v53 }
 0x116   :  { %vm6640_vm10 = vcmp.le.f32.partialorder %v8732_v57, 0.7853982  ;;  %vm804_vm0 = vcmp.lt.s32.totalorder %v782_v60, 4  ;;  %v805_v54 = vsel %vm801_vm11, %v785_v49, %v788_v0  ;;  %vm8651_vm1 = vcmp.lt.s32.totalorder %v6377_v33, 0 }
 0x117   :  { %v8734_v59 = vsel %vm6640_vm10, 4294967295, %v8733_v59  ;;  %v800_v35 = vor.u32 %v799_v11, %v798_v9  ;;  %v806_v34 = vsel %vm804_vm0, %v794_v58, 2102212464  ;;  %v809_v57 = vsel %vm801_vm11, %v788_v0, %v791_v36 }
 0x118   :  { %8735 = vst [vmem:[#allocation12_spill] sm:$0xff] %v8734_v59  ;;  %v810_v30 = vsel %vm804_vm0, %v797_v55, 920167782  ;;  %v646_v27 = vmul.f32 %v645_v44, %v643_v15  ;;  %v938_v5 = vsub.s32 0, %v6645_v4  ;;  %v807_v45 = vsel %vm803_vm15, %v791_v36, %v806_v34 }
 0x119   :  { %v811_v17 = vsel %vm803_vm15, %v794_v58, %v810_v30  ;;  %v813_v47 = vsel %vm801_vm11, %v791_v36, %v794_v58  ;;  %v814_v20 = vsel %vm804_vm0, %v800_v35, 1326507024  ;;  %v1085_v49 = vand.u32 8388607, %v8609_v19 }
 0x11a   :  { %v812_v53 = vsel %vm802_vm14, %v809_v57, %v811_v17  ;;  %v8736_v62 = vxor.u32 2147483648, %v6585_v28  ;;  %v5104_v14 = vmin.u32 %v938_v5, %v6645_v4  ;;  %v808_v18 = vsel %vm802_vm14, %v805_v54, %v807_v45 }
 0x11b   :  { %v815_v22 = vsel %vm803_vm15, %v797_v55, %v814_v20  ;;  %v6667_v0 = vmul.u32.u64.low %v6620_v2, %v812_v53  ;;  %v6668_v36 = vmul.u32.u64.high %v6620_v2, %v812_v53, %v6667_v0  ;;  %v5111_v58 = vadd.s32 4294967169, %v1082_v52 }
 0x11c   :  { %v751_v44 = vsel %vm8647_vm9, %v8736_v62, %v6585_v28  ;;  %v816_v63 = vsel %vm802_vm14, %v813_v47, %v815_v22  ;;  %v647_v9 = vxor.u32 2147483648, %v646_v27  ;;  %v940_v11 = vclz %v5104_v14 }
 0x11d   :  { %v6672_v15 = vmul.u32.u64.low %v6620_v2, %v816_v63  ;;  %v6673_v35 = vmul.u32.u64.high %v6620_v2, %v816_v63, %v6672_v15  ;;  %5626 = vsinq.f32 %v6481_v31  ;;  %v1086_v54 = vor.u32 8388608, %v1085_v49 }
 0x11e   :  { %v1088_v55 = vadd.s32 1, %v5111_v58  ;;  %v6681_v34 = vsel %vm6640_vm10, %v6305_v42, %v751_v44  ;;  %v5105_v52 = vadd.s32 4294967294, %v940_v11  ;;  %v928_v30 = vadd.s32 %v6595_v24, %v6592_v50  ;;  %v107_v15 = vpop.permute.xlu1 %106 }
 0x11f   :  { %v824_v5 = vmul.u32 %v6620_v2, %v808_v18  ;;  %v827_v31 = vadd.s32 1, %v6668_v36  ;;  %v6690_v45 = vsel %vm8651_vm1, %v647_v9, %v646_v27  ;;  %vm826_vm6 = vc.u32 %v6673_v35, %v6667_v0 }
 0x120   :  { %vm1089_vm3 = vcmp.gt.s32.totalorder %v1088_v55, 0  ;;  %vm5106_vm5 = vcmp.lt.s32.totalorder %v5105_v52, 0  ;;  %v6695_v49 = vshll.u32 %v1086_v54, 8  ;;  %v978_v62 = vand.u32 2139095040, %v6610_v51 }
 0x121   :  { %v1090_v17 = vsel %vm1089_vm3, %v1088_v55, 0  ;;  %v943_v53 = vsel %vm5106_vm5, 0, %v5105_v52  ;;  %v828_v47 = vsel %vm826_vm6, %v827_v31, %v6668_v36  ;;  %v8737_v18 = vmov 683565275  }
 0x122   :  { %v1092_v20 = vand.u32 31, %v1090_v17  ;;  %v944_v50 = vsub.s32 32, %v943_v53  ;;  %v948_v24 = vsub.s32 4294967266, %v943_v53  ;;  %v829_v2 = vadd.s32 %v828_v47, %v824_v5 }
 0x123   :  { %v945_v44 = vshll.u32 %v6645_v4, %v943_v53  ;;  %v6699_v27 = vshrl.u32 %v1090_v17, 5  ;;  %v8738_v11 = vmov 2475754826   ;;  %v8739_v55 = vmov 2131351028  }
 0x124   :  { %v1093_v14 = vsub.s32 32, %v1092_v20  ;;  %v1095_v22 = vshll.u32 %v8737_v18, %v1092_v20  ;;  %v946_v63 = vshrl.u32 %v928_v30, %v944_v50  ;;  %v949_v58 = vadd.s32 127, %v948_v24 }
 0x125   :  { %v830_v9 = vadd.s32 536870912, %v829_v2  ;;  %v1098_v36 = vshll.u32 %v8738_v11, %v1092_v20  ;;  %v1101_v5 = vshll.u32 %v8739_v55, %v1092_v20  ;;  %v8740_v31 = vmov 2102212464  }
 0x126   :  { %v1096_v54 = vshrl.u32 %v8738_v11, %v1093_v14  ;;  %v1099_v52 = vshrl.u32 %v8739_v55, %v1093_v14  ;;  %v1102_v47 = vshrl.u32 %v8740_v31, %v1093_v14  ;;  %v950_v4 = vshll.u32 %v949_v58, 23 }
 0x127   :  { %v6707_v17 = vshrl.u32 %v830_v9, 30  ;;  %v1104_v53 = vshll.u32 %v8740_v31, %v1092_v20  ;;  %v1105_v30 = vshrl.u32 %v8615_v61, %v1093_v14  ;;  %v6711_v50 = vpop.eup %5626  ;;  %v6714_v60 = vmul.f32 %v6122_v7, %v107_v15 }
 0x128   :  { %v1097_v24 = vor.u32 %v1096_v54, %v1095_v22  ;;  %v1100_v19 = vor.u32 %v1099_v52, %v1098_v36  ;;  %v1103_v28 = vor.u32 %v1102_v47, %v1101_v5  ;;  %v947_v57 = vor.u32 %v946_v63, %v945_v44 }
 0x129   :  { %8741 = vst [vmem:[#allocation13_spill] sm:$0xff] %v6707_v17  ;;  %8742 = vst [vmem:[#allocation14_spill] sm:$0xff] %v6714_v60  ;;  %v951_v6 = vor.u32 4788187, %v950_v4  ;;  %v832_v1 = vshll.u32 %v6707_v17, 30  ;;  %v1106_v59 = vor.u32 %v1105_v30, %v1104_v53  ;;  %v8744_v9 = vmov 0 }
 0x12a   :  { %v8743_v58 = vand.u32 2147483647, %v6377_v33  ;;  %v1094_v61 = vshrl.u32 %v8737_v18, %v1093_v14  ;;  %v8747_v42 = vmov 920167782   ;;  %v8748_v36 = vmov 1326507024  }
 0x12b   :  { %v1107_v22 = vshll.u32 %v8747_v42, %v1092_v20  ;;  %v1108_v54 = vshrl.u32 %v8748_v36, %v1093_v14  ;;  %vm1110_vm8 = vcmp.lt.s32.totalorder %v6699_v27, 1  ;;  %v952_v15 = vand.u32 2147483647, %v951_v6 }
 0x12c   :  { %vm6719_vm7 = vcmp.le.f32.partialorder %v8743_v58, 0.7853982  ;;  %v6727_v44 = vsub.s32 %v829_v2, %v832_v1  ;;  %vm1112_vm11 = vcmp.lt.s32.totalorder %v6699_v27, 3  ;;  %vm1113_vm14 = vcmp.lt.s32.totalorder %v6699_v27, 4 }
 0x12d   :  { %v8745_v9 = vsel %vm6719_vm7, 4294967295, %v8744_v9  ;;  %v1109_v63 = vor.u32 %v1108_v54, %v1107_v22  ;;  %v1115_v52 = vsel %vm1113_vm14, %v1103_v28, 2102212464  ;;  %v1118_v5 = vsel %vm1110_vm8, %v1097_v24, %v1100_v19  ;;  %v4415_v54 = vld [vmem:[%s8589_s5 + $0x78] sm:$0xff] }
 0x12e   :  { %8746 = vst [vmem:[#allocation15_spill] sm:$0xff] %v8745_v9  ;;  %v1119_v47 = vsel %vm1113_vm14, %v1106_v59, 920167782  ;;  %v954_v4 = vcvt.s32.f32 %v947_v57  ;;  %v835_v53 = vsub.s32 0, %v6727_v44  ;;  %vm1111_vm15 = vcmp.lt.s32.totalorder %v6699_v27, 2  ;;  %4493 = vperm.xlu1 %5531, %v4415_v54   ;;  %v5275_v27 = vld [vmem:[%s8589_s5 + $0x80] sm:$0xff] }
 0x12f   :  { %v1120_v20 = vsel %vm1112_vm11, %v1103_v28, %v1119_v47  ;;  %v1114_v14 = vsel %vm1110_vm8, %v1094_v61, %v1097_v24  ;;  %v1122_v1 = vsel %vm1110_vm8, %v1100_v19, %v1103_v28  ;;  %v1123_v2 = vsel %vm1113_vm14, %v1109_v63, 1326507024  ;;  %v4414_v61 = vld [vmem:[%s8589_s5 + $0x70] sm:$0xff] }
 0x130   :  { %v1121_v6 = vsel %vm1111_vm15, %v1118_v5, %v1120_v20  ;;  %v955_v30 = vmul.f32 %v954_v4, %v952_v15  ;;  %v5100_v58 = vmin.u32 %v835_v53, %v6727_v44  ;;  %v1116_v22 = vsel %vm1112_vm11, %v1100_v19, %v1115_v52  ;;  %4488 = vperm.xlu0 %5530, %v4414_v61  }
 0x131   :  { %v1124_v57 = vsel %vm1112_vm11, %v1106_v59, %v1123_v2  ;;  %v6751_v24 = vmul.u32.u64.low %v6695_v49, %v1121_v6  ;;  %v6752_v15 = vmul.u32.u64.high %v6695_v49, %v1121_v6, %v6751_v24  ;;  %v979_v19 = vshrl.u32 %v978_v62, 23 }
 0x132   :  { %v1125_v28 = vsel %vm1111_vm15, %v1122_v1, %v1124_v57  ;;  %v837_v59 = vclz %v5100_v58  ;;  %v8749_v5 = vand.u32 2147483647, %v6610_v51  ;;  %v8750_v4 = vand.u32 2147483647, %v6606_v3 }
 0x133   :  { %v6756_v63 = vmul.u32.u64.low %v6695_v49, %v1125_v28  ;;  %v6757_v52 = vmul.u32.u64.high %v6695_v49, %v1125_v28, %v6756_v63  ;;  %v8751_v53 = vcvt.s32.f32 %v6602_v16  ;;  %vm8631_vm0 = vcmp.lt.s32.totalorder %v6382_v48, 0  ;;  %v5276_v16 = vld [vmem:[%s8589_s5 + $0x88] sm:$0xff] }
 0x134   :  { %v982_v47 = vand.u32 8388607, %v8749_v5  ;;  %v1117_v62 = vsel %vm1111_vm15, %v1114_v14, %v1116_v22  ;;  %v5107_v6 = vadd.s32 4294967169, %v979_v19  ;;  %5628 = vcosq.f32 %v6681_v34  ;;  %4738 = vperm.xlu1 %5531, %v5276_v16   ;;  %4733 = vperm.xlu0 %5530, %v5275_v27   ;;  %v5278_v5 = vld [vmem:[%s8589_s5 + $0x98] sm:$0xff] }
 0x135   :  { %v6765_v20 = vmul.f32 %v8751_v53, %v8750_v4  ;;  %v651_v1 = vsel %vm6719_vm7, %v6377_v33, %v6690_v45  ;;  %v5101_v2 = vadd.s32 4294967294, %v837_v59  ;;  %v1287_v3 = vand.u32 2139095040, %v6714_v60 }
 0x136   :  { %v956_v14 = vxor.u32 2147483648, %v955_v30  ;;  %v825_v58 = vadd.s32 %v6667_v0, %v6673_v35  ;;  %v1136_v22 = vadd.s32 1, %v6752_v15  ;;  %v985_v57 = vadd.s32 1, %v5107_v6 }
 0x137   :  { %vm5102_vm3 = vcmp.lt.s32.totalorder %v5101_v2, 0  ;;  %v1133_v45 = vmul.u32 %v6695_v49, %v1117_v62  ;;  %vm1135_vm5 = vc.u32 %v6757_v52, %v6751_v24  ;;  %v983_v54 = vor.u32 8388608, %v982_v47  ;;  %v5277_v49 = vld [vmem:[%s8589_s5 + $0x90] sm:$0xff] }
 0x138   :  { %v840_v61 = vsel %vm5102_vm3, 0, %v5101_v2  ;;  %v1137_v28 = vsel %vm1135_vm5, %v1136_v22, %v6752_v15  ;;  %vm986_vm6 = vcmp.gt.s32.totalorder %v985_v57, 0  ;;  %v1288_v19 = vshrl.u32 %v1287_v3, 23  ;;  %4748 = vperm.xlu1 %5531, %v5278_v5   ;;  %4743 = vperm.xlu0 %5530, %v5277_v49  }
 0x139   :  { %v841_v59 = vsub.s32 32, %v840_v61  ;;  %v845_v63 = vsub.s32 4294967266, %v840_v61  ;;  %v1138_v0 = vadd.s32 %v1137_v28, %v1133_v45  ;;  %v8619_v35 = vand.u32 2147483647, %v6714_v60 }
 0x13a   :  { %5630 = vsinq.f32 %v6681_v34  ;;  %v987_v15 = vsel %vm986_vm6, %v985_v57, 0  ;;  %v5119_v4 = vadd.s32 4294967169, %v1288_v19  ;;  %v842_v2 = vshll.u32 %v6727_v44, %v840_v61  ;;  %v5279_v44 = vld [vmem:[%s8589_s5 + $0xa0] sm:$0xff] }
 0x13b   :  { %5632 = vcosq.f32 %v651_v1  ;;  %v843_v53 = vshrl.u32 %v825_v58, %v841_v59  ;;  %v846_v62 = vadd.s32 127, %v845_v63  ;;  %v1139_v6 = vadd.s32 536870912, %v1138_v0 }
 0x13c   :  { %5634 = vsinq.f32 %v651_v1  ;;  %v989_v3 = vand.u32 31, %v987_v15  ;;  %v6799_v16 = vshll.u32 %v983_v54, 8  ;;  %v6803_v27 = vsel %vm8631_vm0, %v956_v14, %v955_v30  ;;  %v5280_v1 = vld [vmem:[%s8589_s5 + $0xa8] sm:$0xff]  ;;  %4753 = vperm.xlu0 %5530, %v5279_v44  }
 0x13d   :  { %v847_v22 = vshll.u32 %v846_v62, 23  ;;  %v6805_v34 = vshrl.u32 %v1139_v6, 30  ;;  %v6809_v57 = vand.u32 8388607, %v8619_v35  ;;  %v844_v58 = vor.u32 %v843_v53, %v842_v2  ;;  %4758 = vperm.xlu1 %5531, %v5280_v1   ;;  %v5282_v2 = vld [vmem:[%s8589_s5 + $0xb8] sm:$0xff] }
 0x13e   :  { %v6817_v45 = vshrl.u32 %v987_v15, 5  ;;  %v990_v30 = vsub.s32 32, %v989_v3  ;;  %v6819_v14 = vadd.s32 1, %v5119_v4  ;;  %v6821_v54 = vpop.eup %5628  ;;  %v992_v28 = vshll.u32 %v8737_v18, %v989_v3 }
 0x13f   :  { %8752 = vst [vmem:[#allocation16_spill] sm:$0xff] %v6805_v34  ;;  %8753 = vst [vmem:[#allocation17_spill] sm:$0xff] %v6821_v54  ;;  %v1141_v61 = vshll.u32 %v6805_v34, 30  ;;  %v995_v19 = vshll.u32 %v8738_v11, %v989_v3  ;;  %v998_v59 = vshll.u32 %v8739_v55, %v989_v3  ;;  %v848_v63 = vor.u32 4788187, %v847_v22  ;;  %v5281_v22 = vld [vmem:[%s8589_s5 + $0xb0] sm:$0xff] }
 0x140   :  { %v993_v5 = vshrl.u32 %v8738_v11, %v990_v30  ;;  %v996_v49 = vshrl.u32 %v8739_v55, %v990_v30  ;;  %v999_v15 = vshrl.u32 %v8740_v31, %v990_v30  ;;  %v1001_v53 = vshll.u32 %v8740_v31, %v989_v3  ;;  %4763 = vperm.xlu0 %5530, %v5281_v22  }
 0x141   :  { %v6830_v4 = vsub.s32 %v1138_v0, %v1141_v61  ;;  %v1002_v62 = vshrl.u32 %v8747_v42, %v990_v30  ;;  %v1004_v6 = vshll.u32 %v8747_v42, %v989_v3  ;;  %v1005_v0 = vshrl.u32 %v8748_v36, %v990_v30  ;;  %4768 = vperm.xlu1 %5531, %v5282_v2  }
 0x142   :  { %v994_v1 = vor.u32 %v993_v5, %v992_v28  ;;  %v997_v44 = vor.u32 %v996_v49, %v995_v19  ;;  %v1000_v47 = vor.u32 %v999_v15, %v998_v59  ;;  %v851_v61 = vcvt.s32.f32 %v844_v58  ;;  %v102_v5 = vpop.permute.xlu0 %101 }
 0x143   :  { %v1144_v35 = vsub.s32 0, %v6830_v4  ;;  %v1003_v34 = vor.u32 %v1002_v62, %v1001_v53  ;;  %vm1007_vm8 = vcmp.lt.s32.totalorder %v6817_v45, 1  ;;  %v849_v17 = vand.u32 2147483647, %v848_v63  ;;  %v5284_v63 = vld [vmem:[%s8589_s5 + $0xc8] sm:$0xff] }
 0x144   :  { %v6844_v3 = vpop.eup %5630  ;;  %v991_v54 = vshrl.u32 %v8737_v18, %v990_v30  ;;  %v1006_v38 = vor.u32 %v1005_v0, %v1004_v6  ;;  %vm1010_vm11 = vcmp.lt.s32.totalorder %v6817_v45, 4  ;;  %vm1008_vm14 = vcmp.lt.s32.totalorder %v6817_v45, 2  ;;  %v5283_v30 = vld [vmem:[%s8589_s5 + $0xc0] sm:$0xff] }
 0x145   :  { %8754 = vst [vmem:[#allocation18_spill] sm:$0xff] %v6844_v3  ;;  %v6848_v28 = vpop.eup %5632  ;;  %v5112_v19 = vmin.u32 %v1144_v35, %v6830_v4  ;;  %v1012_v58 = vsel %vm1010_vm11, %v1000_v47, 2102212464  ;;  %v1015_v59 = vsel %vm1007_vm8, %v994_v1, %v997_v44  ;;  %vm1009_vm15 = vcmp.lt.s32.totalorder %v6817_v45, 3  ;;  %4778 = vperm.xlu1 %5531, %v5284_v63   ;;  %4773 = vperm.xlu0 %5530, %v5283_v30  }
 0x146   :  { %8755 = vst [vmem:[#allocation19_spill] sm:$0xff] %v6848_v28  ;;  %v6860_v49 = vpop.eup %5634  ;;  %v1016_v35 = vsel %vm1010_vm11, %v1003_v34, 920167782  ;;  %v1019_v15 = vsel %vm1007_vm8, %v997_v44, %v1000_v47  ;;  %v1020_v53 = vsel %vm1010_vm11, %v1006_v38, 1326507024  ;;  %v1011_v6 = vsel %vm1007_vm8, %v991_v54, %v994_v1 }
 0x147   :  { %8756 = vst [vmem:[#allocation20_spill] sm:$0xff] %v6860_v49  ;;  %v1146_v62 = vclz %v5112_v19  ;;  %v1013_v2 = vsel %vm1009_vm15, %v997_v44, %v1012_v58  ;;  %v1017_v22 = vsel %vm1009_vm15, %v1000_v47, %v1016_v35  ;;  %v6867_v0 = vmul.f32 %v851_v61, %v849_v17  ;;  %v5286_v17 = vld [vmem:[%s8589_s5 + $0xd8] sm:$0xff]  ;;  %v5285_v47 = vld [vmem:[%s8589_s5 + $0xd0] sm:$0xff] }
 0x148   :  { %v1018_v3 = vsel %vm1008_vm14, %v1015_v59, %v1017_v22  ;;  %v1021_v28 = vsel %vm1009_vm15, %v1003_v34, %v1020_v53  ;;  %v6872_v9 = vmul.f32 %v6122_v7, %v102_v5  ;;  %v1292_v19 = vor.u32 8388608, %v6809_v57 }
 0x149   :  { %v5113_v49 = vadd.s32 4294967294, %v1146_v62  ;;  %v1022_v38 = vsel %vm1008_vm14, %v1019_v15, %v1021_v28  ;;  %vm1295_vm3 = vcmp.gt.s32.totalorder %v6819_v14, 0  ;;  %v1014_v34 = vsel %vm1008_vm14, %v1011_v6, %v1013_v2  ;;  %4788 = vperm.xlu1 %5531, %v5286_v17   ;;  %4783 = vperm.xlu0 %5530, %v5285_v47  }
 0x14a   :  { %8757 = vst [vmem:[#allocation21_spill] sm:$0xff] %v6872_v9  ;;  %v6887_v54 = vmul.u32.u64.low %v6799_v16, %v1022_v38  ;;  %v6888_v1 = vmul.u32.u64.high %v6799_v16, %v1022_v38, %v6887_v54  ;;  %v1296_v44 = vsel %vm1295_vm3, %v6819_v14, 0  ;;  %v1134_v57 = vadd.s32 %v6751_v24, %v6757_v52  ;;  %v5288_v24 = vld [vmem:[%s8589_s5 + $0xe8] sm:$0xff]  ;;  %v5287_v52 = vld [vmem:[%s8589_s5 + $0xe0] sm:$0xff] }
 0x14b   :  { %vm5114_vm5 = vcmp.lt.s32.totalorder %v5113_v49, 0  ;;  %v6894_v61 = vmul.u32.u64.low %v6799_v16, %v1018_v3  ;;  %v6895_v28 = vmul.u32.u64.high %v6799_v16, %v1018_v3, %v6894_v61  ;;  %v853_v45 = vxor.u32 2147483648, %v6867_v0  ;;  %v5290_v54 = vld [vmem:[%s8589_s5 + $0xf8] sm:$0xff] }
 0x14c   :  { %v1149_v58 = vsel %vm5114_vm5, 0, %v5113_v49  ;;  %v1298_v59 = vand.u32 31, %v1296_v44  ;;  %v1030_v14 = vmul.u32 %v6799_v16, %v1014_v34  ;;  %v6901_v35 = vshrl.u32 %v1296_v44, 5  ;;  %v5289_v44 = vld [vmem:[%s8589_s5 + $0xf0] sm:$0xff] }
 0x14d   :  { %v1150_v63 = vsub.s32 32, %v1149_v58  ;;  %v1154_v30 = vsub.s32 4294967266, %v1149_v58  ;;  %v1151_v3 = vshll.u32 %v6830_v4, %v1149_v58  ;;  %vm1032_vm6 = vc.u32 %v6888_v1, %v6894_v61  ;;  %4798 = vperm.xlu1 %5531, %v5288_v24   ;;  %4793 = vperm.xlu0 %5530, %v5287_v52  }
 0x14e   :  { %v1299_v49 = vsub.s32 32, %v1298_v59  ;;  %v6912_v15 = vshll.u32 %v1292_v19, 8  ;;  %v1033_v62 = vadd.s32 1, %v6895_v28  ;;  %v1301_v6 = vshll.u32 %v8737_v18, %v1298_v59 }
 0x14f   :  { %v1152_v16 = vshrl.u32 %v1134_v57, %v1150_v63  ;;  %v1155_v53 = vadd.s32 127, %v1154_v30  ;;  %v1304_v22 = vshll.u32 %v8738_v11, %v1298_v59  ;;  %v1307_v38 = vshll.u32 %v8739_v55, %v1298_v59 }
 0x150   :  { %v1302_v2 = vshrl.u32 %v8738_v11, %v1299_v49  ;;  %v1305_v4 = vshrl.u32 %v8739_v55, %v1299_v49  ;;  %v1034_v19 = vsel %vm1032_vm6, %v1033_v62, %v6895_v28  ;;  %v1308_v34 = vshrl.u32 %v8740_v31, %v1299_v49 }
 0x151   :  { %v1153_v17 = vor.u32 %v1152_v16, %v1151_v3  ;;  %v1156_v47 = vshll.u32 %v1155_v53, 23  ;;  %v8758_v57 = vand.u32 2147483647, %v6382_v48  ;;  %v8759_v58 = vmov 0  ;;  %4808 = vperm.xlu1 %5531, %v5290_v54   ;;  %4803 = vperm.xlu0 %5530, %v5289_v44  }
 0x152   :  { %vm8646_vm11 = vcmp.lt.s32.totalorder %v6488_v56, 0  ;;  %v1035_v63 = vadd.s32 %v1034_v19, %v1030_v14  ;;  %v1303_v28 = vor.u32 %v1302_v2, %v1301_v6  ;;  %v1306_v30 = vor.u32 %v1305_v4, %v1304_v22 }
 0x153   :  { %vm6930_vm8 = vcmp.le.f32.partialorder %v8758_v57, 0.7853982  ;;  %vm1316_vm14 = vcmp.lt.s32.totalorder %v6901_v35, 1  ;;  %v1157_v24 = vor.u32 4788187, %v1156_v47  ;;  %v1309_v52 = vor.u32 %v1308_v34, %v1307_v38  ;;  %v5013_v47 = vld [vmem:[%s8591_s7] sm:$0xff] }
 0x154   :  { %v8760_v58 = vsel %vm6930_vm8, 4294967295, %v8759_v58  ;;  %v1310_v3 = vshll.u32 %v8740_v31, %v1298_v59  ;;  %v1311_v16 = vshrl.u32 %v8747_v42, %v1299_v49  ;;  %vm8645_vm15 = vcmp.lt.s32.totalorder %v6533_v29, 0 }
 0x155   :  { %8761 = vst [vmem:[#allocation22_spill] sm:$0xff] %v8760_v58  ;;  %v1036_v53 = vadd.s32 536870912, %v1035_v63  ;;  %v1300_v62 = vshrl.u32 %v8737_v18, %v1299_v49  ;;  %v1313_v57 = vshll.u32 %v8747_v42, %v1298_v59  ;;  %v1314_v14 = vshrl.u32 %v8748_v36, %v1299_v49  ;;  %5016 = vperm.xlu0 %5530, %v5013_v47  }
 0x156   :  { %v8762_v6 = vand.u32 2147483647, %v6488_v56  ;;  %v8763_v2 = vmov 0  ;;  %v1158_v22 = vand.u32 2147483647, %v1157_v24  ;;  %v1160_v4 = vcvt.s32.f32 %v1153_v17 }
 0x157   :  { %v1312_v38 = vor.u32 %v1311_v16, %v1310_v3  ;;  %vm1319_vm5 = vcmp.lt.s32.totalorder %v6901_v35, 4  ;;  %v6952_v19 = vshrl.u32 %v1036_v53, 30  ;;  %v1315_v59 = vor.u32 %v1314_v14, %v1313_v57 }
 0x158   :  { %vm6944_vm3 = vcmp.le.f32.partialorder %v8762_v6, 0.7853982  ;;  %vm1317_vm6 = vcmp.lt.s32.totalorder %v6901_v35, 2  ;;  %v1321_v49 = vsel %vm1319_vm5, %v1309_v52, 2102212464  ;;  %v1161_v34 = vmul.f32 %v1160_v4, %v1158_v22 }
 0x159   :  { %v8764_v2 = vsel %vm6944_vm3, 4294967295, %v8763_v2  ;;  %8766 = vst [vmem:[#allocation24_spill] sm:$0xff] %v6952_v19  ;;  %vm1318_vm0 = vcmp.lt.s32.totalorder %v6901_v35, 3  ;;  %v1324_v17 = vsel %vm1316_vm14, %v1303_v28, %v1306_v30  ;;  %v1325_v54 = vsel %vm1319_vm5, %v1312_v38, 920167782 }
 0x15a   :  { %8765 = vst [vmem:[#allocation23_spill] sm:$0xff] %v8764_v2  ;;  %v1038_v44 = vshll.u32 %v6952_v19, 30  ;;  %v1320_v24 = vsel %vm1316_vm14, %v1300_v62, %v1303_v28  ;;  %v1326_v3 = vsel %vm1318_vm0, %v1309_v52, %v1325_v54  ;;  %v1328_v16 = vsel %vm1316_vm14, %v1306_v30, %v1309_v52  ;;  %v117_v28 = vpop.permute.xlu1 %116 }
 0x15b   :  { %v1162_v53 = vxor.u32 2147483648, %v1161_v34  ;;  %v1322_v57 = vsel %vm1318_vm0, %v1306_v30, %v1321_v49  ;;  %v1327_v14 = vsel %vm1317_vm6, %v1324_v17, %v1326_v3  ;;  %v1329_v6 = vsel %vm1319_vm5, %v1315_v59, 1326507024 }
 0x15c   :  { %v6971_v22 = vsub.s32 %v1035_v63, %v1038_v44  ;;  %v1330_v4 = vsel %vm1318_vm0, %v1312_v38, %v1329_v6  ;;  %v6974_v47 = vmul.u32.u64.low %v6912_v15, %v1327_v14  ;;  %v6975_v5 = vmul.u32.u64.high %v6912_v15, %v1327_v14, %v6974_v47 }
 0x15d   :  { %v960_v30 = vsel %vm6930_vm8, %v6382_v48, %v6803_v27  ;;  %v854_v52 = vsel %vm8646_vm11, %v853_v45, %v6867_v0  ;;  %v1331_v63 = vsel %vm1317_vm6, %v1328_v16, %v1330_v4  ;;  %v1184_v62 = vand.u32 2139095040, %v6872_v9 }
 0x15e   :  { %v1041_v38 = vsub.s32 0, %v6971_v22  ;;  %v1323_v59 = vsel %vm1317_vm6, %v1320_v24, %v1322_v57  ;;  %v6994_v49 = vmul.u32.u64.low %v6912_v15, %v1331_v63  ;;  %v6995_v17 = vmul.u32.u64.high %v6912_v15, %v1331_v63, %v6994_v49 }
 0x15f   :  { %v1163_v27 = vsel %vm8645_vm15, %v1162_v53, %v1161_v34  ;;  %v1185_v54 = vshrl.u32 %v1184_v62, 23  ;;  %v8767_v0 = vand.u32 2147483647, %v6872_v9  ;;  %v7002_v44 = vmul.f32 %v6122_v7, %v117_v28  ;;  %v112_v28 = vpop.permute.xlu0 %111 }
 0x160   :  { %5636 = vcosq.f32 %v960_v30  ;;  %v857_v35 = vsel %vm6944_vm3, %v6488_v56, %v854_v52  ;;  %v5108_v24 = vmin.u32 %v1041_v38, %v6971_v22  ;;  %v1342_v3 = vadd.s32 1, %v6975_v5 }
 0x161   :  { %v1188_v45 = vand.u32 8388607, %v8767_v0  ;;  %5638 = vsinq.f32 %v960_v30  ;;  %v8768_v16 = vand.u32 2147483647, %v6533_v29  ;;  %v8769_v34 = vmov 0 }
 0x162   :  { %v1339_v53 = vmul.u32 %v6912_v15, %v1323_v59  ;;  %v5115_v57 = vadd.s32 4294967169, %v1185_v54  ;;  %v1043_v6 = vclz %v5108_v24  ;;  %vm1341_vm14 = vc.u32 %v6995_v17, %v6974_v47 }
 0x163   :  { %vm7011_vm0 = vcmp.le.f32.partialorder %v8768_v16, 0.7853982  ;;  %v1493_v4 = vand.u32 2139095040, %v7002_v44  ;;  %5640 = vcosq.f32 %v857_v35  ;;  %v1343_v30 = vsel %vm1341_vm14, %v1342_v3, %v6975_v5 }
 0x164   :  { %v8770_v34 = vsel %vm7011_vm0, 4294967295, %v8769_v34  ;;  %v7019_v14 = vsel %vm7011_vm0, %v6533_v29, %v1163_v27  ;;  %v1189_v52 = vor.u32 8388608, %v1188_v45  ;;  %v1191_v63 = vadd.s32 1, %v5115_v57 }
 0x165   :  { %8771 = vst [vmem:[#allocation25_spill] sm:$0xff] %v8770_v34  ;;  %5642 = vsinq.f32 %v857_v35  ;;  %v5109_v15 = vadd.s32 4294967294, %v1043_v6  ;;  %v1344_v62 = vadd.s32 %v1343_v30, %v1339_v53  ;;  %v1494_v38 = vshrl.u32 %v1493_v4, 23 }
 0x166   :  { %5644 = vcosq.f32 %v7019_v14  ;;  %v1031_v59 = vadd.s32 %v6894_v61, %v6888_v1  ;;  %vm1192_vm5 = vcmp.gt.s32.totalorder %v1191_v63, 0  ;;  %v7029_v49 = vmul.f32 %v6122_v7, %v112_v28 }
 0x167   :  { %vm5110_vm6 = vcmp.lt.s32.totalorder %v5109_v15, 0  ;;  %v1345_v27 = vadd.s32 536870912, %v1344_v62  ;;  %v1193_v54 = vsel %vm1192_vm5, %v1191_v63, 0  ;;  %v7032_v35 = vshll.u32 %v1189_v52, 8 }
 0x168   :  { %v1046_v0 = vsel %vm5110_vm6, 0, %v5109_v15  ;;  %v1195_v45 = vand.u32 31, %v1193_v54  ;;  %v5127_v24 = vadd.s32 4294967169, %v1494_v38  ;;  %v1194_v57 = vshrl.u32 %v1193_v54, 5 }
 0x169   :  { %v1047_v3 = vsub.s32 32, %v1046_v0  ;;  %v1051_v16 = vsub.s32 4294967266, %v1046_v0  ;;  %v7034_v53 = vshrl.u32 %v1345_v27, 30  ;;  %v1048_v1 = vshll.u32 %v6971_v22, %v1046_v0 }
 0x16a   :  { %v1196_v61 = vsub.s32 32, %v1195_v45  ;;  %v1198_v6 = vshll.u32 %v8737_v18, %v1195_v45  ;;  %v1201_v4 = vshll.u32 %v8738_v11, %v1195_v45  ;;  %v7039_v28 = vpop.eup %5636  ;;  %v1204_v15 = vshll.u32 %v8739_v55, %v1195_v45 }
 0x16b   :  { %8772 = vst [vmem:[#allocation26_spill] sm:$0xff] %v7034_v53  ;;  %8773 = vst [vmem:[#allocation27_spill] sm:$0xff] %v7039_v28  ;;  %v1049_v30 = vshrl.u32 %v1031_v59, %v1047_v3  ;;  %v1052_v63 = vadd.s32 127, %v1051_v16  ;;  %v1347_v52 = vshll.u32 %v7034_v53, 30  ;;  %v7043_v38 = vpop.eup %5638  ;;  %v1207_v0 = vshll.u32 %v8740_v31, %v1195_v45 }
 0x16c   :  { %8774 = vst [vmem:[#allocation28_spill] sm:$0xff] %v7043_v38  ;;  %v1199_v27 = vshrl.u32 %v8738_v11, %v1196_v61  ;;  %v1202_v54 = vshrl.u32 %v8739_v55, %v1196_v61  ;;  %v1205_v22 = vshrl.u32 %v8740_v31, %v1196_v61  ;;  %v1208_v59 = vshrl.u32 %v8747_v42, %v1196_v61 }
 0x16d   :  { %v1050_v5 = vor.u32 %v1049_v30, %v1048_v1  ;;  %v1053_v34 = vshll.u32 %v1052_v63, 23  ;;  %v7049_v29 = vsub.s32 %v1344_v62, %v1347_v52  ;;  %v7052_v3 = vpop.eup %5640  ;;  %v1197_v16 = vshrl.u32 %v8737_v18, %v1196_v61 }
 0x16e   :  { %8775 = vst [vmem:[#allocation29_spill] sm:$0xff] %v7052_v3  ;;  %v1200_v53 = vor.u32 %v1199_v27, %v1198_v6  ;;  %v1203_v19 = vor.u32 %v1202_v54, %v1201_v4  ;;  %v1206_v58 = vor.u32 %v1205_v22, %v1204_v15  ;;  %v1209_v2 = vor.u32 %v1208_v59, %v1207_v0 }
 0x16f   :  { %v7055_v28 = vpop.eup %5642  ;;  %v1054_v38 = vor.u32 4788187, %v1053_v34  ;;  %v1350_v48 = vsub.s32 0, %v7049_v29  ;;  %v1210_v1 = vshll.u32 %v8747_v42, %v1195_v45  ;;  %vm8653_vm14 = vcmp.lt.s32.totalorder %v6610_v51, 0 }
 0x170   :  { %8776 = vst [vmem:[#allocation30_spill] sm:$0xff] %v7055_v28  ;;  %v7059_v30 = vpop.eup %5644  ;;  %v1057_v62 = vcvt.s32.f32 %v1050_v5  ;;  %v1211_v63 = vshrl.u32 %v8748_v36, %v1196_v61  ;;  %vm1213_vm5 = vcmp.lt.s32.totalorder %v1194_v57, 1  ;;  %vm1214_vm6 = vcmp.lt.s32.totalorder %v1194_v57, 2 }
 0x171   :  { %8777 = vst [vmem:[#allocation31_spill] sm:$0xff] %v7059_v30  ;;  %v1055_v6 = vand.u32 2147483647, %v1054_v38  ;;  %v5120_v4 = vmin.u32 %v1350_v48, %v7049_v29  ;;  %vm1215_vm15 = vcmp.lt.s32.totalorder %v1194_v57, 3  ;;  %vm1216_vm11 = vcmp.lt.s32.totalorder %v1194_v57, 4 }
 0x172   :  { %v1212_v34 = vor.u32 %v1211_v63, %v1210_v1  ;;  %v1218_v52 = vsel %vm1216_vm11, %v1206_v58, 2102212464  ;;  %v1221_v15 = vsel %vm1213_vm5, %v1200_v53, %v1203_v19  ;;  %v1222_v27 = vsel %vm1216_vm11, %v1209_v2, 920167782 }
 0x173   :  { %v8778_v45 = vand.u32 2147483647, %v6610_v51  ;;  %v8779_v54 = vmov 0  ;;  %v1058_v5 = vmul.f32 %v1057_v62, %v1055_v6  ;;  %v1352_v61 = vclz %v5120_v4 }
 0x174   :  { %v1217_v22 = vsel %vm1213_vm5, %v1197_v16, %v1200_v53  ;;  %v1223_v38 = vsel %vm1215_vm15, %v1206_v58, %v1222_v27  ;;  %v1219_v48 = vsel %vm1215_vm15, %v1203_v19, %v1218_v52  ;;  %v1225_v59 = vsel %vm1213_vm5, %v1203_v19, %v1206_v58 }
 0x175   :  { %vm7067_vm9 = vcmp.le.f32.partialorder %v8778_v45, 0.7853982  ;;  %v1224_v0 = vsel %vm1214_vm6, %v1221_v15, %v1223_v38  ;;  %v1226_v1 = vsel %vm1216_vm11, %v1212_v34, 1326507024  ;;  %v1059_v63 = vxor.u32 2147483648, %v1058_v5 }
 0x176   :  { %v8780_v54 = vsel %vm7067_vm9, 4294967295, %v8779_v54  ;;  %v5121_v30 = vadd.s32 4294967294, %v1352_v61  ;;  %v1227_v45 = vsel %vm1215_vm15, %v1209_v2, %v1226_v1  ;;  %v8782_v3 = vand.u32 2147483647, %v7002_v44 }
 0x177   :  { %8781 = vst [vmem:[#allocation32_spill] sm:$0xff] %v8780_v54  ;;  %v1228_v62 = vsel %vm1214_vm6, %v1225_v59, %v1227_v45  ;;  %v7081_v53 = vmul.u32.u64.low %v7032_v35, %v1224_v0  ;;  %v7082_v16 = vmul.u32.u64.high %v7032_v35, %v1224_v0, %v7081_v53  ;;  %v1500_v6 = vadd.s32 1, %v5127_v24 }
 0x178   :  { %v1497_v28 = vand.u32 8388607, %v8782_v3  ;;  %vm5122_vm1 = vcmp.lt.s32.totalorder %v5121_v30, 0  ;;  %v1220_v4 = vsel %vm1214_vm6, %v1217_v22, %v1219_v48  ;;  %5646 = vsinq.f32 %v7019_v14 }
 0x179   :  { %v7087_v58 = vmul.u32.u64.low %v7032_v35, %v1228_v62  ;;  %v7088_v19 = vmul.u32.u64.high %v7032_v35, %v1228_v62, %v7087_v58  ;;  %v1340_v2 = vadd.s32 %v6974_v47, %v6995_v17  ;;  %v1355_v3 = vsel %vm5122_vm1, 0, %v5121_v30 }
 0x17a   :  { %vm1501_vm11 = vcmp.gt.s32.totalorder %v1500_v6, 0  ;;  %v1060_v34 = vsel %vm8653_vm14, %v1059_v63, %v1058_v5  ;;  %v1356_v52 = vsub.s32 32, %v1355_v3  ;;  %v1360_v15 = vsub.s32 4294967266, %v1355_v3 }
 0x17b   :  { %v1498_v24 = vor.u32 8388608, %v1497_v28  ;;  %v1236_v57 = vmul.u32 %v7032_v35, %v1220_v4  ;;  %v1239_v27 = vadd.s32 1, %v7082_v16  ;;  %v1502_v61 = vsel %vm1501_vm11, %v1500_v6, 0 }
 0x17c   :  { %v1357_v14 = vshll.u32 %v7049_v29, %v1355_v3  ;;  %v1358_v38 = vshrl.u32 %v1340_v2, %v1356_v52  ;;  %v1361_v48 = vadd.s32 127, %v1360_v15  ;;  %vm1238_vm1 = vc.u32 %v7088_v19, %v7081_v53 }
 0x17d   :  { %v7104_v47 = vsel %vm7067_vm9, %v6610_v51, %v1060_v34  ;;  %v1240_v17 = vsel %vm1238_vm1, %v1239_v27, %v7082_v16  ;;  %v1504_v35 = vand.u32 31, %v1502_v61  ;;  %v1390_v28 = vand.u32 2139095040, %v7029_v49 }
 0x17e   :  { %v1359_v30 = vor.u32 %v1358_v38, %v1357_v14  ;;  %v1362_v5 = vshll.u32 %v1361_v48, 23  ;;  %v1241_v0 = vadd.s32 %v1240_v17, %v1236_v57  ;;  %v7108_v59 = vshll.u32 %v1498_v24, 8 }
 0x17f   :  { %vm8661_vm15 = vcmp.lt.s32.totalorder %v6714_v60, 0  ;;  %v1503_v29 = vshrl.u32 %v1502_v61, 5  ;;  %v1505_v1 = vsub.s32 32, %v1504_v35  ;;  %v1507_v63 = vshll.u32 %v8737_v18, %v1504_v35 }
 0x180   :  { %v1510_v45 = vshll.u32 %v8738_v11, %v1504_v35  ;;  %v1363_v62 = vor.u32 4788187, %v1362_v5  ;;  %v1366_v6 = vcvt.s32.f32 %v1359_v30  ;;  %v1242_v4 = vadd.s32 536870912, %v1241_v0 }
 0x181   :  { %v1513_v16 = vshll.u32 %v8739_v55, %v1504_v35  ;;  %v1508_v58 = vshrl.u32 %v8738_v11, %v1505_v1  ;;  %v1511_v2 = vshrl.u32 %v8739_v55, %v1505_v1  ;;  %v1514_v3 = vshrl.u32 %v8740_v31, %v1505_v1 }
 0x182   :  { %v1516_v34 = vshll.u32 %v8740_v31, %v1504_v35  ;;  %v8783_v52 = vand.u32 2147483647, %v6714_v60  ;;  %v8784_v15 = vmov 0  ;;  %v1364_v24 = vand.u32 2147483647, %v1363_v62  ;;  %v7128_v14 = vpop.eup %5646 }
 0x183   :  { %v7124_v57 = vshrl.u32 %v1242_v4, 30  ;;  %v1517_v27 = vshrl.u32 %v8747_v42, %v1505_v1  ;;  %v1519_v61 = vshll.u32 %v8747_v42, %v1504_v35  ;;  %8788 = vst [vmem:[#allocation35_spill] sm:$0xff] %v7128_v14  ;;  %v1509_v38 = vor.u32 %v1508_v58, %v1507_v63 }
 0x184   :  { %vm7120_vm5 = vcmp.le.f32.partialorder %v8783_v52, 0.7853982  ;;  %v1512_v48 = vor.u32 %v1511_v2, %v1510_v45  ;;  %v1515_v17 = vor.u32 %v1514_v3, %v1513_v16  ;;  %v1520_v30 = vshrl.u32 %v8748_v36, %v1505_v1 }
 0x185   :  { %v8785_v15 = vsel %vm7120_vm5, 4294967295, %v8784_v15  ;;  %8787 = vst [vmem:[#allocation34_spill] sm:$0xff] %v7124_v57  ;;  %vm153_vm6 = vcmp.lt.s32.totalorder %v6134_v13, 0  ;;  %v1367_v5 = vmul.f32 %v1366_v6, %v1364_v24  ;;  %v1244_v52 = vshll.u32 %v7124_v57, 30 }
 0x186   :  { %8786 = vst [vmem:[#allocation33_spill] sm:$0xff] %v8785_v15  ;;  %v1518_v22 = vor.u32 %v1517_v27, %v1516_v34  ;;  %v1391_v62 = vshrl.u32 %v1390_v28, 23  ;;  %vm8662_vm11 = vcmp.lt.s32.totalorder %v6172_v43, 0  ;;  %v1506_v4 = vshrl.u32 %v8737_v18, %v1505_v1 }
 0x187   :  { %v1521_v54 = vor.u32 %v1520_v30, %v1519_v61  ;;  %vm1525_vm1 = vcmp.lt.s32.totalorder %v1503_v29, 4  ;;  %v8789_v35 = vand.u32 2147483647, %v7029_v49  ;;  %v1368_v45 = vxor.u32 2147483648, %v1367_v5 }
 0x188   :  { %v7137_v16 = vsub.s32 %v1241_v0, %v1244_v52  ;;  %vm1522_vm14 = vcmp.lt.s32.totalorder %v1503_v29, 1  ;;  %v1527_v58 = vsel %vm1525_vm1, %v1515_v17, 2102212464  ;;  %vm1523_vm2 = vcmp.lt.s32.totalorder %v1503_v29, 2 }
 0x189   :  { %v1394_v63 = vand.u32 8388607, %v8789_v35  ;;  %vm1524_vm12 = vcmp.lt.s32.totalorder %v1503_v29, 3  ;;  %v1530_v6 = vsel %vm1522_vm14, %v1509_v38, %v1512_v48  ;;  %v1531_v28 = vsel %vm1525_vm1, %v1518_v22, 920167782 }
 0x18a   :  { %v1369_v2 = vsel %vm8661_vm15, %v1368_v45, %v1367_v5  ;;  %v1247_v1 = vsub.s32 0, %v7137_v16  ;;  %v1532_v3 = vsel %vm1524_vm12, %v1515_v17, %v1531_v28  ;;  %v1534_v34 = vsel %vm1522_vm14, %v1512_v48, %v1515_v17 }
 0x18b   :  { %v1526_v24 = vsel %vm1522_vm14, %v1506_v4, %v1509_v38  ;;  %v1528_v27 = vsel %vm1524_vm12, %v1512_v48, %v1527_v58  ;;  %v1533_v0 = vsel %vm1523_vm2, %v1530_v6, %v1532_v3  ;;  %v1535_v61 = vsel %vm1525_vm1, %v1521_v54, 1326507024 }
 0x18c   :  { %5648 = vcosq.f32 %v7104_v47  ;;  %v5116_v30 = vmin.u32 %v1247_v1, %v7137_v16  ;;  %v1536_v52 = vsel %vm1524_vm12, %v1518_v22, %v1535_v61  ;;  %v5123_v35 = vadd.s32 4294967169, %v1391_v62 }
 0x18d   :  { %v1372_v5 = vsel %vm7120_vm5, %v6714_v60, %v1369_v2  ;;  %v1537_v45 = vsel %vm1523_vm2, %v1534_v34, %v1536_v52  ;;  %v7153_v17 = vmul.u32.u64.low %v7108_v59, %v1533_v0  ;;  %v7154_v38 = vmul.u32.u64.high %v7108_v59, %v1533_v0, %v7153_v17  ;;  %v127_v2 = vpop.permute.xlu1 %126 }
 0x18e   :  { %v1249_v48 = vclz %v5116_v30  ;;  %v1529_v54 = vsel %vm1523_vm2, %v1526_v24, %v1528_v27  ;;  %v7159_v4 = vmul.u32.u64.low %v7108_v59, %v1537_v45  ;;  %v7160_v58 = vmul.u32.u64.high %v7108_v59, %v1537_v45, %v7159_v4 }
 0x18f   :  { %v8790_v22 = vxor.u32 2147483648, %v6457_v21  ;;  %5650 = vsinq.f32 %v7104_v47  ;;  %v1395_v6 = vor.u32 8388608, %v1394_v63  ;;  %v1397_v28 = vadd.s32 1, %v5123_v35 }
 0x190   :  { %v8791_v29 = vxor.u32 2147483648, %v6765_v20  ;;  %5652 = vcosq.f32 %v1372_v5  ;;  %v1237_v3 = vadd.s32 %v7081_v53, %v7088_v19  ;;  %v5117_v34 = vadd.s32 4294967294, %v1249_v48 }
 0x191   :  { %v7167_v62 = vsel %vm153_vm6, %v8790_v22, %v6457_v21  ;;  %5654 = vsinq.f32 %v1372_v5  ;;  %v1545_v21 = vmul.u32 %v7108_v59, %v1529_v54  ;;  %v1548_v47 = vadd.s32 1, %v7154_v38 }
 0x192   :  { %v7175_v1 = vsel %vm8662_vm11, %v8791_v29, %v6765_v20  ;;  %vm1398_vm12 = vcmp.gt.s32.totalorder %v1397_v28, 0  ;;  %vm5118_vm2 = vcmp.lt.s32.totalorder %v5117_v34, 0  ;;  %vm1547_vm14 = vc.u32 %v7160_v58, %v7153_v17 }
 0x193   :  { %v1399_v63 = vsel %vm1398_vm12, %v1397_v28, 0  ;;  %v7184_v24 = vmul.f32 %v6122_v7, %v127_v2  ;;  %v1252_v20 = vsel %vm5118_vm2, 0, %v5117_v34  ;;  %v1549_v27 = vsel %vm1547_vm14, %v1548_v47, %v7154_v38 }
 0x194   :  { %v1401_v0 = vand.u32 31, %v1399_v63  ;;  %v7187_v53 = vshll.u32 %v1395_v6, 8  ;;  %v1253_v19 = vsub.s32 32, %v1252_v20  ;;  %v1257_v61 = vsub.s32 4294967266, %v1252_v20 }
 0x195   :  { %v1550_v59 = vadd.s32 %v1549_v27, %v1545_v21  ;;  %v7189_v30 = vshrl.u32 %v1399_v63, 5  ;;  %v1254_v52 = vshll.u32 %v7137_v16, %v1252_v20  ;;  %vm8674_vm1 = vcmp.lt.s32.totalorder %v6872_v9, 0 }
 0x196   :  { %v1402_v35 = vsub.s32 32, %v1401_v0  ;;  %v1404_v5 = vshll.u32 %v8737_v18, %v1401_v0  ;;  %v1407_v45 = vshll.u32 %v8738_v11, %v1401_v0  ;;  %v7194_v48 = vpop.eup %5648  ;;  %v1255_v54 = vshrl.u32 %v1237_v3, %v1253_v19 }
 0x197   :  { %8792 = vst [vmem:[#allocation36_spill] sm:$0xff] %v7194_v48  ;;  %v1258_v4 = vadd.s32 127, %v1257_v61  ;;  %v1551_v38 = vadd.s32 536870912, %v1550_v59  ;;  %v1410_v22 = vshll.u32 %v8739_v55, %v1401_v0  ;;  %v1413_v16 = vshll.u32 %v8740_v31, %v1401_v0 }
 0x198   :  { %v1405_v6 = vshrl.u32 %v8738_v11, %v1402_v35  ;;  %v1408_v28 = vshrl.u32 %v8739_v55, %v1402_v35  ;;  %v1411_v2 = vshrl.u32 %v8740_v31, %v1402_v35  ;;  %v1256_v29 = vor.u32 %v1255_v54, %v1254_v52 }
 0x199   :  { %v1259_v34 = vshll.u32 %v1258_v4, 23  ;;  %v7201_v21 = vshrl.u32 %v1551_v38, 30  ;;  %v1414_v47 = vshrl.u32 %v8747_v42, %v1402_v35  ;;  %v7204_v63 = vpop.eup %5650  ;;  %v1403_v52 = vshrl.u32 %v8737_v18, %v1402_v35 }
 0x19a   :  { %8794 = vst [vmem:[#allocation38_spill] sm:$0xff] %v7204_v63  ;;  %v1406_v3 = vor.u32 %v1405_v6, %v1404_v5  ;;  %v1409_v20 = vor.u32 %v1408_v28, %v1407_v45  ;;  %v1412_v27 = vor.u32 %v1411_v2, %v1410_v22  ;;  %v7208_v61 = vpop.eup %5652  ;;  %v8797_v38 = vand.u32 2147483647, %v6872_v9 }
 0x19b   :  { %8793 = vst [vmem:[#allocation37_spill] sm:$0xff] %v7201_v21  ;;  %8795 = vst [vmem:[#allocation39_spill] sm:$0xff] %v7208_v61  ;;  %v1260_v15 = vor.u32 4788187, %v1259_v34  ;;  %v1553_v60 = vshll.u32 %v7201_v21, 30  ;;  %v1415_v54 = vor.u32 %v1414_v47, %v1413_v16  ;;  %v7212_v4 = vpop.eup %5654  ;;  %v8798_v57 = vmov 0 }
 0x19c   :  { %8796 = vst [vmem:[#allocation40_spill] sm:$0xff] %v7212_v4  ;;  %vm7216_vm12 = vcmp.le.f32.partialorder %v8797_v38, 0.7853982  ;;  %v1263_v5 = vcvt.s32.f32 %v1256_v29  ;;  %v1416_v45 = vshll.u32 %v8747_v42, %v1401_v0  ;;  %v1417_v22 = vshrl.u32 %v8748_v36, %v1402_v35 }
 0x19d   :  { %v8799_v57 = vsel %vm7216_vm12, 4294967295, %v8798_v57  ;;  %vm1419_vm2 = vcmp.lt.s32.totalorder %v7189_v30, 1  ;;  %v1261_v6 = vand.u32 2147483647, %v1260_v15  ;;  %v7223_v28 = vsub.s32 %v1550_v59, %v1553_v60  ;;  %v122_v60 = vpop.permute.xlu0 %121 }
 0x19e   :  { %8800 = vst [vmem:[#allocation41_spill] sm:$0xff] %v8799_v57  ;;  %vm1421_vm14 = vcmp.lt.s32.totalorder %v7189_v30, 3  ;;  %vm1422_vm15 = vcmp.lt.s32.totalorder %v7189_v30, 4  ;;  %v1418_v2 = vor.u32 %v1417_v22, %v1416_v45  ;;  %v1427_v34 = vsel %vm1419_vm2, %v1406_v3, %v1409_v20 }
 0x19f   :  { %v1424_v16 = vsel %vm1422_vm15, %v1412_v27, 2102212464  ;;  %v1428_v47 = vsel %vm1422_vm15, %v1415_v54, 920167782  ;;  %v1264_v29 = vmul.f32 %v1263_v5, %v1261_v6  ;;  %v1556_v0 = vsub.s32 0, %v7223_v28 }
 0x1a0   :  { %vm1420_vm11 = vcmp.lt.s32.totalorder %v7189_v30, 2  ;;  %v1429_v15 = vsel %vm1421_vm14, %v1412_v27, %v1428_v47  ;;  %v1423_v59 = vsel %vm1419_vm2, %v1403_v52, %v1406_v3  ;;  %v1431_v38 = vsel %vm1419_vm2, %v1409_v20, %v1412_v27 }
 0x1a1   :  { %v1430_v35 = vsel %vm1420_vm11, %v1427_v34, %v1429_v15  ;;  %v1432_v45 = vsel %vm1422_vm15, %v1418_v2, 1326507024  ;;  %v1265_v22 = vxor.u32 2147483648, %v1264_v29  ;;  %v5128_v5 = vmin.u32 %v1556_v0, %v7223_v28 }
 0x1a2   :  { %v1425_v6 = vsel %vm1421_vm14, %v1409_v20, %v1424_v16  ;;  %v1433_v47 = vsel %vm1421_vm14, %v1415_v54, %v1432_v45  ;;  %v7247_v3 = vmul.u32.u64.low %v7187_v53, %v1430_v35  ;;  %v7248_v52 = vmul.u32.u64.high %v7187_v53, %v1430_v35, %v7247_v3 }
 0x1a3   :  { %v1434_v19 = vsel %vm1420_vm11, %v1431_v38, %v1433_v47  ;;  %v7251_v34 = vmul.f32 %v6122_v7, %v122_v60  ;;  %v1266_v27 = vsel %vm8674_vm1, %v1265_v22, %v1264_v29  ;;  %v1558_v2 = vclz %v5128_v5 }
 0x1a4   :  { %v7256_v0 = vmul.u32.u64.low %v7187_v53, %v1434_v19  ;;  %v7257_v20 = vmul.u32.u64.high %v7187_v53, %v1434_v19, %v7256_v0  ;;  %v1426_v54 = vsel %vm1420_vm11, %v1423_v59, %v1425_v6  ;;  %v1699_v16 = vand.u32 2139095040, %v7184_v24 }
 0x1a5   :  { %v8801_v15 = vand.u32 2147483647, %v7184_v24  ;;  %v8802_v38 = vand.u32 2147483647, %v6134_v13  ;;  %v1269_v29 = vsel %vm7216_vm12, %v6872_v9, %v1266_v27  ;;  %v5129_v19 = vadd.s32 4294967294, %v1558_v2 }
 0x1a6   :  { %v237_v60 = vsub.s32 4, %v6277_v10  ;;  %v1445_v59 = vadd.s32 1, %v7248_v52  ;;  %v1700_v45 = vshrl.u32 %v1699_v16, 23  ;;  %v1596_v5 = vand.u32 2139095040, %v7251_v34 }
 0x1a7   :  { %v1703_v35 = vand.u32 8388607, %v8801_v15  ;;  %vm7266_vm15 = vcmp.le.f32.partialorder %v8802_v38, 0.7853982  ;;  %v1546_v6 = vadd.s32 %v7153_v17, %v7160_v58  ;;  %vm5130_vm11 = vcmp.lt.s32.totalorder %v5129_v19, 0 }
 0x1a8   :  { %v7278_v30 = vsel %vm7266_vm15, %v6134_v13, %v7167_v62  ;;  %v1442_v47 = vmul.u32 %v7187_v53, %v1426_v54  ;;  %vm1444_vm2 = vc.u32 %v7257_v20, %v7247_v3  ;;  %v1561_v27 = vsel %vm5130_vm11, 0, %v5129_v19 }
 0x1a9   :  { %v1446_v2 = vsel %vm1444_vm2, %v1445_v59, %v7248_v52  ;;  %v5135_v62 = vadd.s32 4294967169, %v1700_v45  ;;  %v1704_v0 = vor.u32 8388608, %v1703_v35  ;;  %5656 = vcosq.f32 %v1269_v29 }
 0x1aa   :  { %v1562_v15 = vsub.s32 32, %v1561_v27  ;;  %v1566_v16 = vsub.s32 4294967266, %v1561_v27  ;;  %v1447_v38 = vadd.s32 %v1446_v2, %v1442_v47  ;;  %v1563_v22 = vshll.u32 %v7223_v28, %v1561_v27 }
 0x1ab   :  { %v1706_v21 = vadd.s32 1, %v5135_v62  ;;  %v1597_v61 = vshrl.u32 %v1596_v5, 23  ;;  %v8805_v17 = vand.u32 2147483647, %v7251_v34  ;;  %v238_v52 = vsel %vm153_vm6, %v237_v60, %v6277_v10 }
 0x1ac   :  { %v1564_v57 = vshrl.u32 %v1546_v6, %v1562_v15  ;;  %v1567_v53 = vadd.s32 127, %v1566_v16  ;;  %v1448_v54 = vadd.s32 536870912, %v1447_v38  ;;  %5658 = vsinq.f32 %v1269_v29 }
 0x1ad   :  { %v1600_v58 = vand.u32 8388607, %v8805_v17  ;;  %v7295_v35 = vadd.s32 %v7247_v3, %v7257_v20  ;;  %vm1707_vm14 = vcmp.gt.s32.totalorder %v1706_v21, 0  ;;  %v7297_v19 = vshll.u32 %v1704_v0, 8 }
 0x1ae   :  { %v1565_v28 = vor.u32 %v1564_v57, %v1563_v22  ;;  %v1568_v59 = vshll.u32 %v1567_v53, 23  ;;  %v7299_v45 = vshrl.u32 %v1448_v54, 30  ;;  %v1708_v5 = vsel %vm1707_vm14, %v1706_v21, 0 }
 0x1af   :  { %vm8675_vm11 = vcmp.lt.s32.totalorder %v7002_v44, 0  ;;  %v1710_v6 = vand.u32 31, %v1708_v5  ;;  %v5131_v47 = vadd.s32 4294967169, %v1597_v61  ;;  %v1601_v27 = vor.u32 8388608, %v1600_v58 }
 0x1b0   :  { %8806 = vst [vmem:[#allocation42_spill] sm:$0xff] %v7299_v45  ;;  %v7304_v10 = vsel %vm7266_vm15, 0, %v238_v52  ;;  %v1569_v29 = vor.u32 4788187, %v1568_v59  ;;  %v1450_v3 = vshll.u32 %v7299_v45, 30  ;;  %v1709_v20 = vshrl.u32 %v1708_v5, 5 }
 0x1b1   :  { %5660 = vcosq.f32 %v7278_v30  ;;  %v1572_v57 = vcvt.s32.f32 %v1565_v28  ;;  %v1711_v60 = vsub.s32 32, %v1710_v6  ;;  %v1713_v22 = vshll.u32 %v8737_v18, %v1710_v6 }
 0x1b2   :  { %v1716_v21 = vshll.u32 %v8738_v11, %v1710_v6  ;;  %v8807_v2 = vand.u32 2147483647, %v7002_v44  ;;  %v8808_v61 = vmov 0  ;;  %v1570_v7 = vand.u32 2147483647, %v1569_v29 }
 0x1b3   :  { %v7316_v62 = vsub.s32 %v1447_v38, %v1450_v3  ;;  %v1719_v0 = vshll.u32 %v8739_v55, %v1710_v6  ;;  %v1722_v15 = vshll.u32 %v8740_v31, %v1710_v6  ;;  %v1714_v16 = vshrl.u32 %v8738_v11, %v1711_v60  ;;  %v7324_v54 = vpop.eup %5656 }
 0x1b4   :  { %vm7312_vm6 = vcmp.le.f32.partialorder %v8807_v2, 0.7853982  ;;  %v1717_v17 = vshrl.u32 %v8739_v55, %v1711_v60  ;;  %v1720_v58 = vshrl.u32 %v8740_v31, %v1711_v60  ;;  %v1725_v53 = vshll.u32 %v8747_v42, %v1710_v6  ;;  %8810 = vst [vmem:[#allocation43_spill] sm:$0xff] %v7324_v54 }
 0x1b5   :  { %v8809_v61 = vsel %vm7312_vm6, 4294967295, %v8808_v61  ;;  %v1573_v52 = vmul.f32 %v1572_v57, %v1570_v7  ;;  %v1453_v28 = vsub.s32 0, %v7316_v62  ;;  %v1723_v38 = vshrl.u32 %v8747_v42, %v1711_v60 }
 0x1b6   :  { %v1726_v59 = vshrl.u32 %v8748_v36, %v1711_v60  ;;  %v1712_v5 = vshrl.u32 %v8737_v18, %v1711_v60  ;;  %v1715_v29 = vor.u32 %v1714_v16, %v1713_v22  ;;  %v1718_v3 = vor.u32 %v1717_v17, %v1716_v21  ;;  %v7331_v6 = vpop.eup %5658 }
 0x1b7   :  { %v1721_v2 = vor.u32 %v1720_v58, %v1719_v0  ;;  %v1574_v45 = vxor.u32 2147483648, %v1573_v52  ;;  %v5124_v4 = vmin.u32 %v1453_v28, %v7316_v62  ;;  %v1724_v9 = vor.u32 %v1723_v38, %v1722_v15 }
 0x1b8   :  { %vm1728_vm15 = vcmp.lt.s32.totalorder %v1709_v20, 1  ;;  %v1727_v54 = vor.u32 %v1726_v59, %v1725_v53  ;;  %vm1730_vm2 = vcmp.lt.s32.totalorder %v1709_v20, 3  ;;  %vm1731_vm14 = vcmp.lt.s32.totalorder %v1709_v20, 4 }
 0x1b9   :  { %v1732_v57 = vsel %vm1728_vm15, %v1712_v5, %v1715_v29  ;;  %v1575_v7 = vsel %vm8675_vm11, %v1574_v45, %v1573_v52  ;;  %v1455_v14 = vclz %v5124_v4  ;;  %v1733_v60 = vsel %vm1731_vm14, %v1721_v2, 2102212464 }
 0x1ba   :  { %v1736_v22 = vsel %vm1728_vm15, %v1715_v29, %v1718_v3  ;;  %v1734_v21 = vsel %vm1730_vm2, %v1718_v3, %v1733_v60  ;;  %v1737_v0 = vsel %vm1731_vm14, %v1724_v9, 920167782  ;;  %v1603_v15 = vadd.s32 1, %v5131_v47 }
 0x1bb   :  { %v7340_v16 = vshll.u32 %v1601_v27, 8  ;;  %v7342_v17 = vpop.eup %5660  ;;  %v5125_v58 = vadd.s32 4294967294, %v1455_v14  ;;  %vm1729_vm1 = vcmp.lt.s32.totalorder %v1709_v20, 2  ;;  %v1738_v53 = vsel %vm1730_vm2, %v1721_v2, %v1737_v0 }
 0x1bc   :  { %v1740_v45 = vsel %vm1728_vm15, %v1718_v3, %v1721_v2  ;;  %v7349_v4 = vsel %vm7312_vm6, %v7002_v44, %v1575_v7  ;;  %v1735_v52 = vsel %vm1729_vm1, %v1732_v57, %v1734_v21  ;;  %v1739_v28 = vsel %vm1729_vm1, %v1736_v22, %v1738_v53  ;;  %v5534_v53 = vld [vmem:[%s8586_s2 + $0x4] ss:$8 sps:$4 sm:$0xff]  }
 0x1bd   :  { %v1741_v38 = vsel %vm1731_vm14, %v1727_v54, 1326507024  ;;  %vm5126_vm11 = vcmp.lt.s32.totalorder %v5125_v58, 0  ;;  %v7354_v27 = vmul.u32.u64.low %v7297_v19, %v1739_v28  ;;  %v7355_v14 = vmul.u32.u64.high %v7297_v19, %v1739_v28, %v7354_v27  ;;  %4087 = vmatprep.mubr.bf16.mxu0 %v5534_v53 }
 0x1be   :  { %v1742_v47 = vsel %vm1730_vm2, %v1724_v9, %v1741_v38  ;;  %v1458_v59 = vsel %vm5126_vm11, 0, %v5125_v58  ;;  %vm1604_vm15 = vcmp.gt.s32.totalorder %v1603_v15, 0  ;;  %5662 = vsinq.f32 %v7278_v30 }
 0x1bf   :  { %v1743_v5 = vsel %vm1729_vm1, %v1740_v45, %v1742_v47  ;;  %5664 = vcosq.f32 %v7349_v4  ;;  %v1459_v29 = vsub.s32 32, %v1458_v59  ;;  %v1463_v3 = vsub.s32 4294967266, %v1458_v59 }
 0x1c0   :  { %v1605_v2 = vsel %vm1604_vm15, %v1603_v15, 0  ;;  %v7361_v54 = vmul.u32.u64.low %v7297_v19, %v1743_v5  ;;  %v7362_v57 = vmul.u32.u64.high %v7297_v19, %v1743_v5, %v7361_v54  ;;  %v1751_v9 = vmul.u32 %v7297_v19, %v1735_v52 }
 0x1c1   :  { %v1607_v20 = vand.u32 31, %v1605_v2  ;;  %v1460_v7 = vshll.u32 %v7316_v62, %v1458_v59  ;;  %v1461_v60 = vshrl.u32 %v7295_v35, %v1459_v29  ;;  %v1464_v22 = vadd.s32 127, %v1463_v3  ;;  %v5537_v35 = vld [vmem:[%s8586_s2 + $0x114] ss:$8 sps:$4 sm:$0xff]  }
 0x1c2   :  { %v1754_v21 = vadd.s32 1, %v7355_v14  ;;  %v1606_v30 = vshrl.u32 %v1605_v2, 5  ;;  %vm8676_vm1 = vcmp.lt.s32.totalorder %v7029_v49, 0  ;;  %vm1753_vm11 = vc.u32 %v7362_v57, %v7354_v27  ;;  %4223 = vmatprep.mubr.bf16.mxu1 %v5537_v35 }
 0x1c3   :  { %v1608_v0 = vsub.s32 32, %v1607_v20  ;;  %v1610_v58 = vshll.u32 %v8737_v18, %v1607_v20  ;;  %v1613_v15 = vshll.u32 %v8738_v11, %v1607_v20  ;;  %v1462_v45 = vor.u32 %v1461_v60, %v1460_v7 }
 0x1c4   :  { %v1465_v19 = vshll.u32 %v1464_v22, 23  ;;  %v1616_v52 = vshll.u32 %v8739_v55, %v1607_v20  ;;  %v1619_v62 = vshll.u32 %v8740_v31, %v1607_v20  ;;  %v1622_v47 = vshll.u32 %v8747_v42, %v1607_v20 }
 0x1c5   :  { %v1609_v28 = vshrl.u32 %v8737_v18, %v1608_v0  ;;  %v1611_v38 = vshrl.u32 %v8738_v11, %v1608_v0  ;;  %v1469_v5 = vcvt.s32.f32 %v1462_v45  ;;  %v1755_v29 = vsel %vm1753_vm11, %v1754_v21, %v7355_v14 }
 0x1c6   :  { %v1466_v59 = vor.u32 4788187, %v1465_v19  ;;  %v1614_v3 = vshrl.u32 %v8739_v55, %v1608_v0  ;;  %v1756_v2 = vadd.s32 %v1755_v29, %v1751_v9  ;;  %v1617_v7 = vshrl.u32 %v8740_v31, %v1608_v0 }
 0x1c7   :  { %v1612_v54 = vor.u32 %v1611_v38, %v1610_v58  ;;  %v1620_v60 = vshrl.u32 %v8747_v42, %v1608_v0  ;;  %v1623_v11 = vshrl.u32 %v8748_v36, %v1608_v0  ;;  %vm1625_vm2 = vcmp.lt.s32.totalorder %v1606_v30, 1 }
 0x1c8   :  { %v1467_v22 = vand.u32 2147483647, %v1466_v59  ;;  %v1615_v18 = vor.u32 %v1614_v3, %v1613_v15  ;;  %v7389_v20 = vpop.eup %5662  ;;  %v1757_v53 = vadd.s32 536870912, %v1756_v2  ;;  %v1618_v45 = vor.u32 %v1617_v7, %v1616_v52 }
 0x1c9   :  { %v1621_v19 = vor.u32 %v1620_v60, %v1619_v62  ;;  %vm1626_vm14 = vcmp.lt.s32.totalorder %v1606_v30, 2  ;;  %v7391_v14 = vpop.eup %5664  ;;  %v1624_v9 = vor.u32 %v1623_v11, %v1622_v47  ;;  %vm1627_vm15 = vcmp.lt.s32.totalorder %v1606_v30, 3 }
 0x1ca   :  { %v1470_v55 = vmul.f32 %v1469_v5, %v1467_v22  ;;  %vm1628_vm11 = vcmp.lt.s32.totalorder %v1606_v30, 4  ;;  %v7393_v31 = vshrl.u32 %v1757_v53, 30  ;;  %v1629_v42 = vsel %vm1625_vm2, %v1609_v28, %v1612_v54 }
 0x1cb   :  { %v1630_v21 = vsel %vm1628_vm11, %v1618_v45, 2102212464  ;;  %v1633_v36 = vsel %vm1625_vm2, %v1612_v54, %v1615_v18  ;;  %v1634_v15 = vsel %vm1628_vm11, %v1621_v19, 920167782  ;;  %v1637_v52 = vsel %vm1625_vm2, %v1615_v18, %v1618_v45 }
 0x1cc   :  { %v1471_v0 = vxor.u32 2147483648, %v1470_v55  ;;  %v1631_v58 = vsel %vm1627_vm15, %v1615_v18, %v1630_v21  ;;  %v1759_v62 = vshll.u32 %v7393_v31, 30  ;;  %v1635_v38 = vsel %vm1627_vm15, %v1618_v45, %v1634_v15 }
 0x1cd   :  { %v1632_v35 = vsel %vm1626_vm14, %v1629_v42, %v1631_v58  ;;  %v1638_v47 = vsel %vm1628_vm11, %v1624_v9, 1326507024  ;;  %v1636_v28 = vsel %vm1626_vm14, %v1633_v36, %v1635_v38  ;;  %v244_v29 = vand.u32 3, %v7304_v10 }
 0x1ce   :  { %v1472_v59 = vsel %vm8676_vm1, %v1471_v0, %v1470_v55  ;;  %v1639_v5 = vsel %vm1627_vm15, %v1621_v19, %v1638_v47  ;;  %5666 = vsinq.f32 %v7349_v4  ;;  %v8811_v3 = vand.u32 2147483647, %v7029_v49 }
 0x1cf   :  { %v8812_v54 = vmov 0  ;;  %v7414_v7 = vsub.s32 %v1756_v2, %v1759_v62  ;;  %v1640_v60 = vsel %vm1626_vm14, %v1637_v52, %v1639_v5  ;;  %v1752_v22 = vadd.s32 %v7354_v27, %v7362_v57 }
 0x1d0   :  { %vm7410_vm2 = vcmp.le.f32.partialorder %v8811_v3, 0.7853982  ;;  %v7420_v18 = vmul.u32.u64.low %v7340_v16, %v1640_v60  ;;  %v7421_v11 = vmul.u32.u64.high %v7340_v16, %v1640_v60, %v7420_v18  ;;  %v1648_v53 = vmul.u32 %v7340_v16, %v1632_v35 }
 0x1d1   :  { %v8813_v54 = vsel %vm7410_vm2, 4294967295, %v8812_v54  ;;  %v1475_v4 = vsel %vm7410_vm2, %v7029_v49, %v1472_v59  ;;  %v1762_v2 = vsub.s32 0, %v7414_v7  ;;  %vm246_vm14 = vcmp.eq.s32.totalorder %v244_v29, 0 }
 0x1d2   :  { %v7430_v30 = vmul.u32.u64.low %v7340_v16, %v1636_v28  ;;  %v7431_v45 = vmul.u32.u64.high %v7340_v16, %v1636_v28, %v7430_v30  ;;  %v247_v27 = vxor.u32 2147483648, %v7389_v20  ;;  %v250_v57 = vxor.u32 2147483648, %v7342_v17 }
 0x1d3   :  { %v8814_v19 = vand.u32 2147483647, %v6172_v43  ;;  %v5136_v55 = vmin.u32 %v1762_v2, %v7414_v7  ;;  %vm249_vm1 = vcmp.eq.s32.totalorder %v244_v29, 2  ;;  %v340_v9 = vsub.s32 4, %v6384_v26 }
 0x1d4   :  { %vm1650_vm15 = vc.u32 %v7421_v11, %v7430_v30  ;;  %vm245_vm6 = vcmp.lt.s32.totalorder %v244_v29, 2  ;;  %v248_v16 = vsel %vm246_vm14, %v7342_v17, %v247_v27  ;;  %v251_v21 = vsel %vm249_vm1, %v250_v57, %v7389_v20 }
 0x1d5   :  { %vm255_vm11 = vcmp.le.f32.partialorder %v8814_v19, 0.7853982  ;;  %5668 = vcosq.f32 %v1475_v4  ;;  %v1764_v36 = vclz %v5136_v55  ;;  %v1651_v0 = vadd.s32 1, %v7431_v45 }
 0x1d6   :  { %v342_v42 = vsel %vm255_vm11, %v6172_v43, %v7175_v1  ;;  %vm8815_vm2 = vcmp.lt.s32.totalorder %v6172_v43, 0  ;;  %v252_v15 = vsel %vm245_vm6, %v248_v16, %v251_v21  ;;  %v1900_v1 = vadd.s32 3, %v7304_v10 }
 0x1d7   :  { %v341_v58 = vsel %vm8815_vm2, %v340_v9, %v6384_v26  ;;  %5670 = vcosq.f32 %v342_v42  ;;  %v5137_v62 = vadd.s32 4294967294, %v1764_v36  ;;  %v1652_v35 = vsel %vm1650_vm15, %v1651_v0, %v7431_v45 }
 0x1d8   :  { %v343_v52 = vsel %vm255_vm11, 0, %v341_v58  ;;  %5672 = vsinq.f32 %v342_v42  ;;  %v1653_v47 = vadd.s32 %v1652_v35, %v1648_v53  ;;  %v1901_v59 = vand.u32 3, %v1900_v1  ;;  %v7453_v29 = vpop.eup %5666 }
 0x1d9   :  { %v7450_v38 = vand.u32 3, %v343_v52  ;;  %v2004_v28 = vadd.s32 3, %v343_v52  ;;  %v443_v5 = vsub.s32 4, %v6250_v32  ;;  %5674 = vsinq.f32 %v1475_v4 }
 0x1da   :  { %vm5138_vm1 = vcmp.lt.s32.totalorder %v5137_v62, 0  ;;  %v7456_v26 = vadd.s32 %v7430_v30, %v7421_v11  ;;  %vm8816_vm6 = vweird.f32 %v6134_v13  ;;  %v1654_v60 = vadd.s32 536870912, %v1653_v47 }
 0x1db   :  { %v253_v10 = vsel %vm8816_vm6, nan, %v252_v15  ;;  %v1767_v3 = vsel %vm5138_vm1, 0, %v5137_v62  ;;  %vm1902_vm2 = vcmp.lt.s32.totalorder %v1901_v59, 2  ;;  %vm1903_vm15 = vcmp.eq.s32.totalorder %v1901_v59, 0 }
 0x1dc   :  { %v1768_v18 = vsub.s32 32, %v1767_v3  ;;  %v1769_v53 = vshll.u32 %v7414_v7, %v1767_v3  ;;  %v1772_v2 = vsub.s32 4294967266, %v1767_v3  ;;  %v1905_v45 = vsel %vm1903_vm15, %v7342_v17, %v247_v27 }
 0x1dd   :  { %v7462_v19 = vshrl.u32 %v1654_v60, 30  ;;  %vm348_vm14 = vcmp.lt.s32.totalorder %v7450_v38, 2  ;;  %vm1906_vm11 = vcmp.eq.s32.totalorder %v1901_v59, 2  ;;  %v2005_v11 = vand.u32 3, %v2004_v28 }
 0x1de   :  { %vm8817_vm5 = vcmp.lt.s32.totalorder %v6131_v12, 0  ;;  %v1770_v30 = vshrl.u32 %v1752_v22, %v1768_v18  ;;  %v1773_v55 = vadd.s32 127, %v1772_v2  ;;  %v1908_v9 = vsel %vm1906_vm11, %v250_v57, %v7389_v20 }
 0x1df   :  { %v444_v4 = vsel %vm8817_vm5, %v443_v5, %v6250_v32  ;;  %v1656_v17 = vshll.u32 %v7462_v19, 30  ;;  %vm349_vm6 = vcmp.eq.s32.totalorder %v7450_v38, 0  ;;  %vm352_vm15 = vcmp.eq.s32.totalorder %v7450_v38, 2  ;;  %v7478_v42 = vpop.eup %5668 }
 0x1e0   :  { %v7472_v7 = vsel %vm6399_vm13, 0, %v444_v4  ;;  %v1909_v27 = vsel %vm1902_vm2, %v1905_v45, %v1908_v9  ;;  %v1771_v32 = vor.u32 %v1770_v30, %v1769_v53  ;;  %v1774_v22 = vshll.u32 %v1773_v55, 23 }
 0x1e1   :  { %vm2007_vm1 = vcmp.eq.s32.totalorder %v2005_v11, 0  ;;  %v5671_v16 = vpop.eup %5670  ;;  %v7481_v25 = vsub.s32 %v1653_v47, %v1656_v17  ;;  %vm2010_vm13 = vcmp.eq.s32.totalorder %v2005_v11, 2  ;;  %v450_v20 = vand.u32 3, %v7472_v7 }
 0x1e2   :  { %v8693_v57 = vxor.u32 2147483648, %v6511_v8  ;;  %v5673_v21 = vpop.eup %5672  ;;  %v8818_v36 = vand.u32 2147483647, %v7184_v24  ;;  %v1775_v58 = vor.u32 4788187, %v1774_v22  ;;  %v1778_v15 = vcvt.s32.f32 %v1771_v32 }
 0x1e3   :  { %v353_v52 = vxor.u32 2147483648, %v5671_v16  ;;  %v8686_v1 = vxor.u32 2147483648, %v6505_v41  ;;  %v1659_v62 = vsub.s32 0, %v7481_v25  ;;  %v350_v35 = vxor.u32 2147483648, %v5673_v21  ;;  %v7493_v47 = vpop.eup %5674 }
 0x1e4   :  { %vm7487_vm2 = vcmp.le.f32.partialorder %v8818_v36, 0.7853982  ;;  %vm452_vm5 = vcmp.eq.s32.totalorder %v450_v20, 0  ;;  %v1776_v59 = vand.u32 2147483647, %v1775_v58  ;;  %vm455_vm11 = vcmp.eq.s32.totalorder %v450_v20, 2 }
 0x1e5   :  { %v354_v28 = vsel %vm352_vm15, %v353_v52, %v5673_v21  ;;  %v2012_v5 = vsel %vm2010_vm13, %v353_v52, %v5673_v21  ;;  %v454_v3 = vsel %vm452_vm5, %v6505_v41, %v8693_v57  ;;  %v5132_v60 = vmin.u32 %v1659_v62, %v7481_v25 }
 0x1e6   :  { %v351_v18 = vsel %vm349_vm6, %v5671_v16, %v350_v35  ;;  %v2009_v53 = vsel %vm2007_vm1, %v5671_v16, %v350_v35  ;;  %v1779_v2 = vmul.f32 %v1778_v15, %v1776_v59  ;;  %vm8821_vm12 = vcmp.lt.s32.totalorder %v2005_v11, 2  ;;  %v8830_v59 = vld [vmem:[#allocation20_spill] sm:$0xff] }
 0x1e7   :  { %v355_v45 = vsel %vm348_vm14, %v351_v18, %v354_v28  ;;  %v2013_v4 = vsel %vm8821_vm12, %v2009_v53, %v2012_v5  ;;  %v457_v30 = vsel %vm455_vm11, %v8686_v1, %v6511_v8  ;;  %v1661_v55 = vclz %v5132_v60 }
 0x1e8   :  { %vm8822_vm15 = vweird.f32 %v6172_v43  ;;  %vm8823_vm5 = vweird.f32 %v6134_v13  ;;  %vm8824_vm1 = vcmp.lt.s32.totalorder %v450_v20, 2  ;;  %v1780_v22 = vxor.u32 2147483648, %v1779_v2 }
 0x1e9   :  { %v356_v9 = vsel %vm8822_vm15, nan, %v355_v45  ;;  %v7515_v17 = vsel %vm8823_vm5, nan, %v1909_v27  ;;  %v458_v32 = vsel %vm8824_vm1, %v454_v3, %v457_v30  ;;  %vm449_vm14 = vweird.f32 %v6131_v12  ;;  %vm8825_vm12 = vmmov %vm8822_vm15  ;;  %v8832_v30 = vld [vmem:[#allocation19_spill] sm:$0xff] }
 0x1ea   :  { %v1799_v16 = vpack.c.bf16 %v356_v9, %v253_v10  ;;  %v546_v38 = vsub.s32 4, %v6319_v40  ;;  %v5133_v11 = vadd.s32 4294967294, %v1661_v55  ;;  %v7522_v21 = vsel %vm8825_vm12, nan, %v2013_v4  ;;  %v8833_v9 = vld [vmem:[#allocation8_spill] sm:$0xff] }
 0x1eb   :  { %v459_v36 = vsel %vm449_vm14, nan, %v458_v32  ;;  %vm552_vm6 = vweird.f32 %v6149_v23  ;;  %vm8826_vm11 = vcmp.lt.s32.totalorder %v7184_v24, 0  ;;  %vm8827_vm13 = vcmp.lt.s32.totalorder %v6149_v23, 0 }
 0x1ec   :  { %v1781_v13 = vsel %vm8826_vm11, %v1780_v22, %v1779_v2  ;;  %4056 = vmatpush1.bf16.msra.mxu0 %v1799_v16  ;;  %5440 = vmatpush1.bf16.msra.mxu1 %v1799_v16  ;;  %v547_v10 = vsel %vm8827_vm13, %v546_v38, %v6319_v40  ;;  %v8684_v27 = vxor.u32 2147483648, %v6711_v50  ;;  %v649_v43 = vsub.s32 4, %v6558_v39 }
 0x1ed   :  { %v1784_v20 = vsel %vm7487_vm2, %v7184_v24, %v1781_v13  ;;  %vm5134_vm15 = vcmp.lt.s32.totalorder %v5133_v11, 0  ;;  %v8828_v58 = vmov 0   ;;  %v7541_v15 = vsel %vm6462_vm4, 0, %v547_v10 }
 0x1ee   :  { %4057 = vmatprep.subr.bf16.mxu0 %v8828_v58  ;;  %5425 = vmatprep.subr.bf16.mxu1 %v8828_v58  ;;  %v8683_v52 = vxor.u32 2147483648, %v6560_v37  ;;  %v1664_v40 = vsel %vm5134_vm15, 0, %v5133_v11  ;;  %v553_v62 = vand.u32 3, %v7541_v15  ;;  %vm8829_vm5 = vcmp.lt.s32.totalorder %v6377_v33, 0  ;;  %v8834_v11 = vld [vmem:[#allocation5_spill] sm:$0xff] }
 0x1ef   :  { %v650_v35 = vsel %vm8829_vm5, %v649_v43, %v6558_v39  ;;  %v8682_v28 = vxor.u32 2147483648, %v8830_v59  ;;  %5676 = vcosq.f32 %v1784_v20  ;;  %v1665_v5 = vsub.s32 32, %v1664_v40 }
 0x1f0   :  { %v1666_v3 = vshll.u32 %v7481_v25, %v1664_v40  ;;  %v1669_v60 = vsub.s32 4294967266, %v1664_v40  ;;  %vm655_vm1 = vweird.f32 %v6377_v33  ;;  %vm554_vm4 = vcmp.lt.s32.totalorder %v553_v62, 2 }
 0x1f1   :  { %vm555_vm12 = vcmp.eq.s32.totalorder %v553_v62, 0  ;;  %vm558_vm11 = vcmp.eq.s32.totalorder %v553_v62, 2  ;;  %v7553_v18 = vsel %vm6719_vm7, 0, %v650_v35  ;;  %v1667_v53 = vshrl.u32 %v7456_v26, %v1665_v5  ;;  %v8839_v5 = vld [vmem:[#allocation18_spill] sm:$0xff] }
 0x1f2   :  { %v1670_v2 = vadd.s32 127, %v1669_v60  ;;  %v557_v39 = vsel %vm555_vm12, %v6560_v37, %v8684_v27  ;;  %v560_v25 = vsel %vm558_vm11, %v8683_v52, %v6711_v50  ;;  %v656_v4 = vand.u32 3, %v7553_v18 }
 0x1f3   :  { %v561_v45 = vsel %vm554_vm4, %v557_v39, %v560_v25  ;;  %v8681_v55 = vxor.u32 2147483648, %v8832_v30  ;;  %v752_v32 = vsub.s32 4, %v8833_v9  ;;  %5678 = vsinq.f32 %v1784_v20  ;;  %v8842_v25 = vld [vmem:[#allocation13_spill] sm:$0xff] }
 0x1f4   :  { %v1668_v22 = vor.u32 %v1667_v53, %v1666_v3  ;;  %v1671_v16 = vshll.u32 %v1670_v2, 23  ;;  %v562_v26 = vsel %vm552_vm6, nan, %v561_v45  ;;  %vm1595_vm7 = vcmp.lt.s32.totalorder %v7251_v34, 0  ;;  %v8841_v2 = vld [vmem:[#allocation17_spill] sm:$0xff] }
 0x1f5   :  { %v1800_v38 = vpack.c.bf16 %v562_v26, %v459_v36  ;;  %vm658_vm13 = vcmp.eq.s32.totalorder %v656_v4, 0  ;;  %vm661_vm15 = vcmp.eq.s32.totalorder %v656_v4, 2  ;;  %vm758_vm5 = vweird.f32 %v8834_v11 }
 0x1f6   :  { %v8835_v13 = vand.u32 2147483647, %v7251_v34  ;;  %v1672_v43 = vor.u32 4788187, %v1671_v16  ;;  %vm657_vm12 = vcmp.lt.s32.totalorder %v656_v4, 2  ;;  %v660_v20 = vsel %vm658_vm13, %v8832_v30, %v8682_v28  ;;  %v8850_v28 = vld [vmem:[#allocation28_spill] sm:$0xff] }
 0x1f7   :  { %v663_v36 = vsel %vm661_vm15, %v8681_v55, %v8830_v59  ;;  %v1675_v40 = vcvt.s32.f32 %v1668_v22  ;;  %4058 = vmatpush1.bf16.msra.mxu0 %v1800_v38  ;;  %5441 = vmatpush1.bf16.msra.mxu1 %v1800_v38  ;;  %vm8838_vm11 = vcmp.lt.s32.totalorder %v8834_v11, 0  ;;  %v8685_v3 = vxor.u32 2147483648, %v8839_v5  ;;  %v8848_v55 = vld [vmem:[#allocation6_spill] sm:$0xff] }
 0x1f8   :  { %vm7571_vm4 = vcmp.le.f32.partialorder %v8835_v13, 0.7853982  ;;  %v664_v62 = vsel %vm657_vm12, %v660_v20, %v663_v36  ;;  %v753_v35 = vsel %vm8838_vm11, %v752_v32, %v8833_v9  ;;  %v1673_v60 = vand.u32 2147483647, %v1672_v43  ;;  %4059 = vmatprep.subr.bf16.mxu0 %v8828_v58  ;;  %5426 = vmatprep.subr.bf16.mxu1 %v8828_v58  ;;  %v8843_v32 = vld [vmem:[#allocation30_spill] sm:$0xff]  ;;  %v8845_v13 = vld [vmem:[#allocation29_spill] sm:$0xff] }
 0x1f9   :  { %v7589_v53 = vsel %vm6640_vm10, 0, %v753_v35  ;;  %v8687_v39 = vxor.u32 2147483648, %v8841_v2  ;;  %v855_v45 = vsub.s32 4, %v8842_v25  ;;  %v665_v4 = vsel %vm655_vm1, nan, %v664_v62  ;;  %v7598_v16 = vpop.eup %5676  ;;  %v8846_v20 = vld [vmem:[#allocation11_spill] sm:$0xff] }
 0x1fa   :  { %v759_v9 = vand.u32 3, %v7589_v53  ;;  %vm8690_vm13 = vweird.f32 %v6488_v56  ;;  %v8689_v22 = vxor.u32 2147483648, %v8843_v32  ;;  %v1676_v26 = vmul.f32 %v1675_v40, %v1673_v60 }
 0x1fb   :  { %vm8844_vm10 = vcmp.lt.s32.totalorder %v6488_v56, 0  ;;  %v8688_v43 = vxor.u32 2147483648, %v8845_v13  ;;  %v958_v36 = vsub.s32 4, %v8846_v20  ;;  %v8691_v62 = vxor.u32 2147483648, %v8850_v28 }
 0x1fc   :  { %v856_v38 = vsel %vm8844_vm10, %v855_v45, %v8842_v25  ;;  %vm760_vm15 = vcmp.lt.s32.totalorder %v759_v9, 2  ;;  %vm761_vm12 = vcmp.eq.s32.totalorder %v759_v9, 0  ;;  %vm764_vm11 = vcmp.eq.s32.totalorder %v759_v9, 2 }
 0x1fd   :  { %v7607_v35 = vsel %vm6944_vm3, 0, %v856_v38  ;;  %v1677_v46 = vxor.u32 2147483648, %v1676_v26  ;;  %v763_v40 = vsel %vm761_vm12, %v8841_v2, %v8685_v3  ;;  %v766_v60 = vsel %vm764_vm11, %v8687_v39, %v8839_v5  ;;  %v8851_v38 = vld [vmem:[#allocation27_spill] sm:$0xff]  ;;  %v7621_v27 = vpop.eup %5678 }
 0x1fe   :  { %v862_v25 = vand.u32 3, %v7607_v35  ;;  %v767_v45 = vsel %vm760_vm15, %v763_v40, %v766_v60  ;;  %vm8849_vm10 = vcmp.lt.s32.totalorder %v8848_v55, 0  ;;  %v8692_v52 = vxor.u32 2147483648, %v8851_v38 }
 0x1ff   :  { %v959_v9 = vsel %vm8849_vm10, %v958_v36, %v8846_v20  ;;  %v1678_v3 = vsel %vm1595_vm7, %v1677_v46, %v1676_v26  ;;  %v768_v1 = vsel %vm758_vm5, nan, %v767_v45  ;;  %v8854_v45 = vld [vmem:[#allocation24_spill] sm:$0xff]  ;;  %vm964_vm11 = vweird.f32 %v8848_v55  ;;  %v8864_v55 = vld [vmem:[#allocation31_spill] sm:$0xff] }
 0x200   :  { %vm863_vm3 = vcmp.lt.s32.totalorder %v862_v25, 2  ;;  %vm864_vm12 = vcmp.eq.s32.totalorder %v862_v25, 0  ;;  %v1681_v40 = vsel %vm7571_vm4, %v7251_v34, %v1678_v3  ;;  %v1801_v60 = vpack.c.bf16 %v768_v1, %v665_v4 }
 0x201   :  { %v866_v20 = vsel %vm864_vm12, %v8845_v13, %v8689_v22  ;;  %vm867_vm15 = vcmp.eq.s32.totalorder %v862_v25, 2  ;;  %5680 = vcosq.f32 %v1681_v40  ;;  %v7638_v46 = vsel %vm6930_vm8, 0, %v959_v9 }
 0x202   :  { %v869_v26 = vsel %vm867_vm15, %v8688_v43, %v8843_v32  ;;  %8853 = vst [vmem:[#allocation20_spill] sm:$0xff] %v7638_v46  ;;  %v1061_v39 = vsub.s32 4, %v8854_v45  ;;  %5682 = vsinq.f32 %v1681_v40  ;;  %4060 = vmatpush1.bf16.msra.mxu0 %v1801_v60  ;;  %5442 = vmatpush1.bf16.msra.mxu1 %v1801_v60  ;;  %v965_v3 = vand.u32 3, %v7638_v46  ;;  %v8860_v60 = vld [vmem:[#allocation35_spill] sm:$0xff]  ;;  %v8880_v46 = vld [vmem:[#allocation42_spill] sm:$0xff] }
 0x203   :  { %v870_v1 = vsel %vm863_vm3, %v866_v20, %v869_v26  ;;  %4061 = vmatprep.subr.bf16.mxu0 %v8828_v58  ;;  %5427 = vmatprep.subr.bf16.mxu1 %v8828_v58  ;;  %vm8855_vm8 = vcmp.lt.s32.totalorder %v6610_v51, 0  ;;  %v8695_v9 = vxor.u32 2147483648, %v7204_v63  ;;  %v8696_v40 = vxor.u32 2147483648, %v7194_v48 }
 0x204   :  { %v871_v4 = vsel %vm8690_vm13, nan, %v870_v1  ;;  %v1062_v25 = vsel %vm8855_vm8, %v1061_v39, %v8854_v45  ;;  %vm966_vm10 = vcmp.lt.s32.totalorder %v965_v3, 2  ;;  %vm967_vm3 = vcmp.eq.s32.totalorder %v965_v3, 0  ;;  %v8858_v45 = vld [vmem:[#allocation16_spill] sm:$0xff] }
 0x205   :  { %vm970_vm12 = vcmp.eq.s32.totalorder %v965_v3, 2  ;;  %v7654_v20 = vsel %vm7067_vm9, 0, %v1062_v25  ;;  %v969_v26 = vsel %vm967_vm3, %v8851_v38, %v8691_v62  ;;  %v1164_v1 = vsub.s32 4, %v8858_v45  ;;  %v8859_v3 = vld [vmem:[#allocation9_spill] sm:$0xff] }
 0x206   :  { %8857 = vst [vmem:[#allocation15_spill] sm:$0xff] %v7654_v20  ;;  %v972_v36 = vsel %vm970_vm12, %v8692_v52, %v8850_v28  ;;  %v1068_v39 = vand.u32 3, %v7654_v20  ;;  %vm8706_vm15 = vweird.f32 %v6610_v51  ;;  %vm8711_vm8 = vweird.f32 %v8859_v3 }
 0x207   :  { %v973_v43 = vsel %vm966_vm10, %v969_v26, %v972_v36  ;;  %vm8861_vm10 = vcmp.lt.s32.totalorder %v8859_v3, 0  ;;  %v8873_v38 = vxor.u32 2147483648, %v8860_v60  ;;  %v1473_v13 = vsub.s32 4, %v8880_v46 }
 0x208   :  { %v974_v22 = vsel %vm964_vm11, nan, %v973_v43  ;;  %vm1069_vm9 = vcmp.lt.s32.totalorder %v1068_v39, 2  ;;  %vm1070_vm3 = vcmp.eq.s32.totalorder %v1068_v39, 0  ;;  %vm1073_vm13 = vcmp.eq.s32.totalorder %v1068_v39, 2  ;;  %v8875_v39 = vld [vmem:[#allocation14_spill] sm:$0xff] }
 0x209   :  { %v1802_v62 = vpack.c.bf16 %v974_v22, %v871_v4  ;;  %v1072_v52 = vsel %vm1070_vm3, %v7194_v48, %v8695_v9  ;;  %v1075_v26 = vsel %vm1073_vm13, %v8696_v40, %v7204_v63  ;;  %v1165_v36 = vsel %vm8861_vm10, %v1164_v1, %v8858_v45  ;;  %v8865_v22 = vld [vmem:[#allocation34_spill] sm:$0xff]  ;;  %v8866_v48 = vld [vmem:[#allocation21_spill] sm:$0xff] }
 0x20a   :  { %v1076_v57 = vsel %vm1069_vm9, %v1072_v52, %v1075_v26  ;;  %v7680_v43 = vsel %vm7011_vm0, 0, %v1165_v36  ;;  %v1267_v4 = vsub.s32 4, %v8865_v22  ;;  %vm8715_vm13 = vweird.f32 %v8866_v48  ;;  %v8869_v26 = vld [vmem:[#allocation26_spill] sm:$0xff]  ;;  %v8870_v36 = vld [vmem:[#allocation40_spill] sm:$0xff]  ;;  %v8871_v45 = vld [vmem:[#allocation41_spill] sm:$0xff] }
 0x20b   :  { %8863 = vst [vmem:[#allocation19_spill] sm:$0xff] %v7680_v43  ;;  %4062 = vmatpush1.bf16.msra.mxu0 %v1802_v62  ;;  %5443 = vmatpush1.bf16.msra.mxu1 %v1802_v62  ;;  %v1077_v9 = vsel %vm8706_vm15, nan, %v1076_v57  ;;  %v1171_v40 = vand.u32 3, %v7680_v43  ;;  %v7689_v52 = vpop.eup %5680  ;;  %vm8867_vm0 = vcmp.lt.s32.totalorder %v8866_v48, 0  ;;  %v8868_v62 = vld [vmem:[#allocation43_spill] sm:$0xff]  ;;  %v1370_v57 = vsub.s32 4, %v8869_v26 }
 0x20c   :  { %4063 = vmatprep.subr.bf16.mxu0 %v8828_v58  ;;  %5428 = vmatprep.subr.bf16.mxu1 %v8828_v58  ;;  %v1268_v1 = vsel %vm8867_vm0, %v1267_v4, %v8865_v22  ;;  %v7699_v51 = vpop.eup %5682  ;;  %vm8872_vm10 = vnez %v8871_v45  ;;  %v8874_v22 = vxor.u32 2147483648, %v8864_v55  ;;  %vm8876_vm0 = vcmp.lt.s32.totalorder %v8875_v39, 0 }
 0x20d   :  { %vm1172_vm12 = vcmp.lt.s32.totalorder %v1171_v40, 2  ;;  %vm1173_vm9 = vcmp.eq.s32.totalorder %v1171_v40, 0  ;;  %vm1176_vm3 = vcmp.eq.s32.totalorder %v1171_v40, 2  ;;  %v7703_v63 = vsel %vm8872_vm10, 0, %v1268_v1  ;;  %v8877_v40 = vld [vmem:[#allocation33_spill] sm:$0xff]  ;;  %v8879_v1 = vld [vmem:[#allocation39_spill] sm:$0xff] }
 0x20e   :  { %v1175_v28 = vsel %vm1173_vm9, %v8864_v55, %v8873_v38  ;;  %v1178_v4 = vsel %vm1176_vm3, %v8874_v22, %v8860_v60  ;;  %v1274_v25 = vand.u32 3, %v7703_v63  ;;  %v1371_v56 = vsel %vm8876_vm0, %v1370_v57, %v8869_v26 }
 0x20f   :  { %v1179_v43 = vsel %vm1172_vm12, %v1175_v28, %v1178_v4  ;;  %vm8878_vm15 = vnez %v8877_v40  ;;  %v1383_v20 = vxor.u32 2147483648, %v8879_v1  ;;  %v8881_v55 = vxor.u32 2147483648, %v7331_v6 }
 0x210   :  { %v7717_v45 = vsel %vm8878_vm15, 0, %v1371_v56  ;;  %v1180_v38 = vsel %vm8711_vm8, nan, %v1179_v43  ;;  %vm1275_vm9 = vcmp.lt.s32.totalorder %v1274_v25, 2  ;;  %vm1276_vm3 = vcmp.eq.s32.totalorder %v1274_v25, 0 }
 0x211   :  { %vm1279_vm10 = vcmp.eq.s32.totalorder %v1274_v25, 2  ;;  %v1803_v22 = vpack.c.bf16 %v1180_v38, %v1077_v9  ;;  %v1278_v26 = vsel %vm1276_vm3, %v8868_v62, %v8881_v55  ;;  %v8882_v28 = vxor.u32 2147483648, %v8868_v62 }
 0x212   :  { %v1377_v57 = vand.u32 3, %v7717_v45  ;;  %vm8712_vm15 = vweird.f32 %v8875_v39  ;;  %vm8883_vm12 = vcmp.lt.s32.totalorder %v7029_v49, 0  ;;  %v8717_v25 = vxor.u32 2147483648, %v7493_v47 }
 0x213   :  { %v1281_v56 = vsel %vm1279_vm10, %v8882_v28, %v7331_v6  ;;  %v1474_v43 = vsel %vm8883_vm12, %v1473_v13, %v8880_v46  ;;  %4064 = vmatpush1.bf16.msra.mxu0 %v1803_v22  ;;  %5444 = vmatpush1.bf16.msra.mxu1 %v1803_v22  ;;  %v8884_v9 = vxor.u32 2147483648, %v8870_v36  ;;  %v8713_v38 = vxor.u32 2147483648, %v7478_v42  ;;  %v8886_v28 = vld [vmem:[#allocation37_spill] sm:$0xff] }
 0x214   :  { %v1282_v4 = vsel %vm1275_vm9, %v1278_v26, %v1281_v56  ;;  %vm1378_vm0 = vcmp.lt.s32.totalorder %v1377_v57, 2  ;;  %vm1379_vm3 = vcmp.eq.s32.totalorder %v1377_v57, 0  ;;  %vm1382_vm8 = vcmp.eq.s32.totalorder %v1377_v57, 2  ;;  %4065 = vmatprep.subr.bf16.mxu0 %v8828_v58  ;;  %5429 = vmatprep.subr.bf16.mxu1 %v8828_v58 }
 0x215   :  { %v1283_v55 = vsel %vm8715_vm13, nan, %v1282_v4  ;;  %v1381_v40 = vsel %vm1379_vm3, %v8879_v1, %v8884_v9  ;;  %v1384_v13 = vsel %vm1382_vm8, %v1383_v20, %v8870_v36  ;;  %vm8885_vm9 = vnez %v8813_v54 }
 0x216   :  { %v7747_v46 = vsel %vm8885_vm9, 0, %v1474_v43  ;;  %v1385_v22 = vsel %vm1378_vm0, %v1381_v40, %v1384_v13  ;;  %vm8714_vm10 = vweird.f32 %v7029_v49  ;;  %v1576_v56 = vsub.s32 4, %v8886_v28 }
 0x217   :  { %v1480_v26 = vand.u32 3, %v7747_v46  ;;  %v1386_v57 = vsel %vm8712_vm15, nan, %v1385_v22  ;;  %vm1582_vm12 = vweird.f32 %v7002_v44  ;;  %v8716_v4 = vxor.u32 2147483648, %v7453_v29 }
 0x218   :  { %v1679_v54 = vsub.s32 4, %v7462_v19  ;;  %v1804_v43 = vpack.c.bf16 %v1386_v57, %v1283_v55  ;;  %vm8887_vm0 = vcmp.lt.s32.totalorder %v7002_v44, 0  ;;  %vm8888_vm15 = vnez %v8809_v61 }
 0x219   :  { %vm1481_vm8 = vcmp.lt.s32.totalorder %v1480_v26, 2  ;;  %vm1482_vm3 = vcmp.eq.s32.totalorder %v1480_v26, 0  ;;  %vm1485_vm9 = vcmp.eq.s32.totalorder %v1480_v26, 2  ;;  %v1577_v13 = vsel %vm8887_vm0, %v1576_v56, %v8886_v28 }
 0x21a   :  { %v1484_v9 = vsel %vm1482_vm3, %v7478_v42, %v8717_v25  ;;  %v1487_v40 = vsel %vm1485_vm9, %v8713_v38, %v7493_v47  ;;  %v1680_v22 = vsel %vm1595_vm7, %v1679_v54, %v7462_v19  ;;  %4066 = vmatpush1.bf16.msra.mxu0 %v1804_v43  ;;  %5445 = vmatpush1.bf16.msra.mxu1 %v1804_v43  ;;  %v7772_v26 = vsel %vm8888_vm15, 0, %v1577_v13 }
 0x21b   :  { %v1488_v55 = vsel %vm1481_vm8, %v1484_v9, %v1487_v40  ;;  %v8720_v57 = vxor.u32 2147483648, %v7391_v14  ;;  %v7777_v38 = vsel %vm7571_vm4, 0, %v1680_v22  ;;  %4067 = vmatprep.subr.bf16.mxu0 %v8828_v58  ;;  %5430 = vmatprep.subr.bf16.mxu1 %v8828_v58  ;;  %v1583_v28 = vand.u32 3, %v7772_v26 }
 0x21c   :  { %vm1685_vm7 = vweird.f32 %v7251_v34  ;;  %v1686_v19 = vand.u32 3, %v7777_v38  ;;  %v8718_v61 = vxor.u32 2147483648, %v7699_v51  ;;  %v1489_v56 = vsel %vm8714_vm10, nan, %v1488_v55  ;;  %v5532_v34 = vld [vmem:[%s8586_s2] ss:$8 sps:$4 sm:$0xff]  }
 0x21d   :  { %v8719_v54 = vxor.u32 2147483648, %v7689_v52  ;;  %v1782_v10 = vsub.s32 4, %v7393_v31  ;;  %v1792_v43 = vxor.u32 2147483648, %v7621_v27  ;;  %vm1584_vm4 = vcmp.lt.s32.totalorder %v1583_v28, 2 }
 0x21e   :  { %vm1585_vm15 = vcmp.eq.s32.totalorder %v1583_v28, 0  ;;  %vm1588_vm8 = vcmp.eq.s32.totalorder %v1583_v28, 2  ;;  %vm1687_vm3 = vcmp.lt.s32.totalorder %v1686_v19, 2  ;;  %vm1788_vm9 = vweird.f32 %v7184_v24 }
 0x21f   :  { %v1587_v9 = vsel %vm1585_vm15, %v7391_v14, %v8716_v4  ;;  %v1590_v40 = vsel %vm1588_vm8, %v8720_v57, %v7453_v29  ;;  %vm1688_vm0 = vcmp.eq.s32.totalorder %v1686_v19, 0  ;;  %vm1691_vm10 = vcmp.eq.s32.totalorder %v1686_v19, 2 }
 0x220   :  { %v1591_v13 = vsel %vm1584_vm4, %v1587_v9, %v1590_v40  ;;  %v1690_v22 = vsel %vm1688_vm0, %v7689_v52, %v8718_v61  ;;  %v1693_v55 = vsel %vm1691_vm10, %v8719_v54, %v7699_v51  ;;  %vm8889_vm13 = vcmp.lt.s32.totalorder %v7184_v24, 0  ;;  %v5540_v24 = vld [vmem:[%s8586_s2 + $0x124] ss:$8 sps:$4 sm:$0xff]  }
 0x221   :  { %v1783_v28 = vsel %vm8889_vm13, %v1782_v10, %v7393_v31  ;;  %v1592_v4 = vsel %vm1582_vm12, nan, %v1591_v13  ;;  %v1694_v25 = vsel %vm1687_vm3, %v1690_v22, %v1693_v55  ;;  %v1795_v9 = vxor.u32 2147483648, %v7598_v16 }
 0x222   :  { %v7810_v19 = vsel %vm7487_vm2, 0, %v1783_v28  ;;  %v1805_v40 = vpack.c.bf16 %v1592_v4, %v1489_v56  ;;  %v1695_v61 = vsel %vm1685_vm7, nan, %v1694_v25  ;;  %v3471_v57 = vpack.c.bf16 %v7522_v21, %v7515_v17 }
 0x223   :  { %v1789_v54 = vand.u32 3, %v7810_v19  ;;  %v2108_v31 = vadd.s32 3, %v7472_v7  ;;  %v2212_v10 = vadd.s32 3, %v7541_v15  ;;  %v2316_v13 = vadd.s32 3, %v7553_v18 }
 0x224   :  { %v2420_v0 = vadd.s32 3, %v7589_v53  ;;  %4068 = vmatpush1.bf16.msra.mxu0 %v1805_v40  ;;  %5446 = vmatpush1.bf16.msra.mxu1 %v1805_v40  ;;  %v2524_v25 = vadd.s32 3, %v7607_v35  ;;  %v8890_v22 = vxor.u32 2147483648, %v6511_v8  ;;  %v8891_v28 = vxor.u32 2147483648, %v6505_v41 }
 0x225   :  { %vm1790_vm2 = vcmp.lt.s32.totalorder %v1789_v54, 2  ;;  %vm1791_vm13 = vcmp.eq.s32.totalorder %v1789_v54, 0  ;;  %vm1794_vm10 = vcmp.eq.s32.totalorder %v1789_v54, 2  ;;  %4069 = vmatprep.subr.bf16.mxu0 %v8828_v58  ;;  %5431 = vmatprep.subr.bf16.mxu1 %v8828_v58  ;;  %v2109_v21 = vand.u32 3, %v2108_v31 }
 0x226   :  { %v1793_v7 = vsel %vm1791_vm13, %v7598_v16, %v1792_v43  ;;  %v1796_v17 = vsel %vm1794_vm10, %v1795_v9, %v7621_v27  ;;  %v2213_v15 = vand.u32 3, %v2212_v10  ;;  %v2317_v53 = vand.u32 3, %v2316_v13 }
 0x227   :  { %v1797_v18 = vsel %vm1790_vm2, %v1793_v7, %v1796_v17  ;;  %v2421_v4 = vand.u32 3, %v2420_v0  ;;  %v2525_v56 = vand.u32 3, %v2524_v25  ;;  %vm2110_vm4 = vcmp.lt.s32.totalorder %v2109_v21, 2 }
 0x228   :  { %v1798_v35 = vsel %vm1788_vm9, nan, %v1797_v18  ;;  %vm2111_vm15 = vcmp.eq.s32.totalorder %v2109_v21, 0  ;;  %vm2114_vm8 = vcmp.eq.s32.totalorder %v2109_v21, 2  ;;  %vm2214_vm3 = vcmp.lt.s32.totalorder %v2213_v15, 2 }
 0x229   :  { %v1806_v54 = vpack.c.bf16 %v1798_v35, %v1695_v61  ;;  %v2113_v55 = vsel %vm2111_vm15, %v6505_v41, %v8890_v22  ;;  %v2116_v40 = vsel %vm2114_vm8, %v8891_v28, %v6511_v8  ;;  %vm2215_vm0 = vcmp.eq.s32.totalorder %v2213_v15, 0  ;;  %v8902_v28 = vld [vmem:[#allocation15_spill] sm:$0xff] }
 0x22a   :  { %v2117_v31 = vsel %vm2110_vm4, %v2113_v55, %v2116_v40  ;;  %vm2218_vm2 = vcmp.eq.s32.totalorder %v2213_v15, 2  ;;  %vm2318_vm13 = vcmp.lt.s32.totalorder %v2317_v53, 2  ;;  %v8892_v61 = vxor.u32 2147483648, %v6711_v50 }
 0x22b   :  { %4070 = vmatpush1.bf16.msra.mxu0 %v1806_v54  ;;  %5447 = vmatpush1.bf16.msra.mxu1 %v1806_v54  ;;  %v2118_v10 = vsel %vm449_vm14, nan, %v2117_v31  ;;  %v8893_v0 = vxor.u32 2147483648, %v6560_v37  ;;  %vm2319_vm10 = vcmp.eq.s32.totalorder %v2317_v53, 0  ;;  %v8894_v8 = vxor.u32 2147483648, %v8830_v59  ;;  %v8903_v31 = vld [vmem:[#allocation19_spill] sm:$0xff] }
 0x22c   :  { %v2217_v13 = vsel %vm2215_vm0, %v6560_v37, %v8892_v61  ;;  %4071 = vmatprep.subr.bf16.mxu0 %v8828_v58  ;;  %5432 = vmatprep.subr.bf16.mxu1 %v8828_v58  ;;  %vm2322_vm4 = vcmp.eq.s32.totalorder %v2317_v53, 2  ;;  %vm2422_vm14 = vcmp.lt.s32.totalorder %v2421_v4, 2  ;;  %v8895_v17 = vxor.u32 2147483648, %v8832_v30 }
 0x22d   :  { %v2220_v25 = vsel %vm2218_vm2, %v8893_v0, %v6711_v50  ;;  %v2321_v7 = vsel %vm2319_vm10, %v8832_v30, %v8894_v8  ;;  %vm2423_vm15 = vcmp.eq.s32.totalorder %v2421_v4, 0  ;;  %vm2426_vm8 = vcmp.eq.s32.totalorder %v2421_v4, 2  ;;  %v8899_v4 = vld [vmem:[#allocation29_spill] sm:$0xff] }
 0x22e   :  { %v2221_v41 = vsel %vm2214_vm3, %v2217_v13, %v2220_v25  ;;  %v2324_v37 = vsel %vm2322_vm4, %v8895_v17, %v8830_v59  ;;  %v8896_v15 = vxor.u32 2147483648, %v8839_v5  ;;  %v8897_v35 = vxor.u32 2147483648, %v8841_v2 }
 0x22f   :  { %v2222_v12 = vsel %vm552_vm6, nan, %v2221_v41  ;;  %v2325_v21 = vsel %vm2318_vm13, %v2321_v7, %v2324_v37  ;;  %4072 = vmatpush1.bf16.msra.mxu0 %v3471_v57  ;;  %5448 = vmatpush1.bf16.msra.mxu1 %v3471_v57  ;;  %vm2526_vm6 = vcmp.lt.s32.totalorder %v2525_v56, 2  ;;  %vm2527_vm3 = vcmp.eq.s32.totalorder %v2525_v56, 0 }
 0x230   :  { %v3472_v50 = vpack.c.bf16 %v2222_v12, %v2118_v10  ;;  %v2425_v18 = vsel %vm2423_vm15, %v8841_v2, %v8896_v15  ;;  %v2428_v54 = vsel %vm2426_vm8, %v8897_v35, %v8839_v5  ;;  %v2326_v23 = vsel %vm655_vm1, nan, %v2325_v21  ;;  %4073 = vmatprep.subr.bf16.mxu0 %v8828_v58  ;;  %5433 = vmatprep.subr.bf16.mxu1 %v8828_v58  ;;  %v8900_v5 = vld [vmem:[#allocation20_spill] sm:$0xff] }
 0x231   :  { %v2429_v30 = vsel %vm2422_vm14, %v2425_v18, %v2428_v54  ;;  %v8898_v53 = vxor.u32 2147483648, %v8843_v32  ;;  %vm2530_vm0 = vcmp.eq.s32.totalorder %v2525_v56, 2  ;;  %v2628_v57 = vadd.s32 3, %v8900_v5  ;;  %v8904_v56 = vld [vmem:[#allocation7_spill] sm:$0xff]  ;;  %v8912_v18 = vld [vmem:[#allocation36_spill] sm:$0xff] }
 0x232   :  { %v2430_v59 = vsel %vm758_vm5, nan, %v2429_v30  ;;  %v8901_v33 = vxor.u32 2147483648, %v8899_v4  ;;  %v2732_v40 = vadd.s32 3, %v8902_v28  ;;  %v2836_v10 = vadd.s32 3, %v8903_v31  ;;  %v8916_v5 = vld [vmem:[#allocation31_spill] sm:$0xff] }
 0x233   :  { %v2529_v2 = vsel %vm2527_vm3, %v8899_v4, %v8898_v53  ;;  %v3473_v22 = vpack.c.bf16 %v2430_v59, %v2326_v23  ;;  %v2629_v13 = vand.u32 3, %v2628_v57  ;;  %v2940_v11 = vadd.s32 3, %v7703_v63  ;;  %4074 = vmatpush1.bf16.msra.mxu0 %v3472_v50  ;;  %5449 = vmatpush1.bf16.msra.mxu1 %v3472_v50  ;;  %v8906_v63 = vld [vmem:[#allocation28_spill] sm:$0xff] }
 0x234   :  { %v2532_v55 = vsel %vm2530_vm0, %v8901_v33, %v8843_v32  ;;  %v3044_v0 = vadd.s32 3, %v7717_v45  ;;  %vm8905_vm1 = vweird.f32 %v8904_v56  ;;  %v2733_v41 = vand.u32 3, %v2732_v40  ;;  %4075 = vmatprep.subr.bf16.mxu0 %v8828_v58  ;;  %5434 = vmatprep.subr.bf16.mxu1 %v8828_v58  ;;  %v8908_v45 = vld [vmem:[#allocation27_spill] sm:$0xff] }
 0x235   :  { %v2533_v61 = vsel %vm2526_vm6, %v2529_v2, %v2532_v55  ;;  %v2837_v8 = vand.u32 3, %v2836_v10  ;;  %v3148_v7 = vadd.s32 3, %v7747_v46  ;;  %vm2630_vm5 = vcmp.lt.s32.totalorder %v2629_v13, 2  ;;  %v8910_v46 = vld [vmem:[#allocation38_spill] sm:$0xff] }
 0x236   :  { %v2534_v25 = vsel %vm8905_vm1, nan, %v2533_v61  ;;  %vm2631_vm2 = vcmp.eq.s32.totalorder %v2629_v13, 0  ;;  %vm2634_vm13 = vcmp.eq.s32.totalorder %v2629_v13, 2  ;;  %v2941_v32 = vand.u32 3, %v2940_v11 }
 0x237   :  { %v8907_v12 = vxor.u32 2147483648, %v8906_v63  ;;  %v8909_v37 = vxor.u32 2147483648, %v8908_v45  ;;  %vm2734_vm10 = vcmp.lt.s32.totalorder %v2733_v41, 2  ;;  %vm2735_vm4 = vcmp.eq.s32.totalorder %v2733_v41, 0  ;;  %4076 = vmatpush1.bf16.msra.mxu0 %v3473_v22  ;;  %5450 = vmatpush1.bf16.msra.mxu1 %v3473_v22  ;;  %v8917_v22 = vld [vmem:[#allocation10_spill] sm:$0xff] }
 0x238   :  { %v8911_v15 = vxor.u32 2147483648, %v8910_v46  ;;  %vm2738_vm14 = vcmp.eq.s32.totalorder %v2733_v41, 2  ;;  %vm2838_vm15 = vcmp.lt.s32.totalorder %v2837_v8, 2  ;;  %v8914_v30 = vxor.u32 2147483648, %v8912_v18  ;;  %4077 = vmatprep.subr.bf16.mxu0 %v8828_v58  ;;  %5435 = vmatprep.subr.bf16.mxu1 %v8828_v58 }
 0x239   :  { %v2633_v17 = vsel %vm2631_vm2, %v8908_v45, %v8907_v12  ;;  %v2636_v50 = vsel %vm2634_vm13, %v8909_v37, %v8906_v63  ;;  %vm2839_vm8 = vcmp.eq.s32.totalorder %v2837_v8, 0  ;;  %vm2842_vm6 = vcmp.eq.s32.totalorder %v2837_v8, 2 }
 0x23a   :  { %v2637_v21 = vsel %vm2630_vm5, %v2633_v17, %v2636_v50  ;;  %v2737_v35 = vsel %vm2735_vm4, %v8912_v18, %v8911_v15  ;;  %v2740_v59 = vsel %vm2738_vm14, %v8914_v30, %v8910_v46  ;;  %v8915_v2 = vxor.u32 2147483648, %v8860_v60 }
 0x23b   :  { %v2638_v23 = vsel %vm964_vm11, nan, %v2637_v21  ;;  %v2741_v4 = vsel %vm2734_vm10, %v2737_v35, %v2740_v59  ;;  %vm2942_vm3 = vcmp.lt.s32.totalorder %v2941_v32, 2  ;;  %vm8918_vm0 = vweird.f32 %v8917_v22  ;;  %v5546_v59 = vld [vmem:[%s8586_s2 + $0x134] ss:$8 sps:$4 sm:$0xff]   ;;  %v5555_v22 = vld [vmem:[%s8586_s2 + $0x140] ss:$8 sps:$4 sm:$0xff]  }
 0x23c   :  { %v3474_v53 = vpack.c.bf16 %v2638_v23, %v2534_v25  ;;  %v2841_v57 = vsel %vm2839_vm8, %v8916_v5, %v8915_v2  ;;  %v2742_v33 = vsel %vm8918_vm0, nan, %v2741_v4  ;;  %v8919_v55 = vxor.u32 2147483648, %v8916_v5  ;;  %v5549_v4 = vld [vmem:[%s8586_s2 + $0x130] ss:$8 sps:$4 sm:$0xff]   ;;  %v5550_v2 = vld [vmem:[%s8586_s2 + $0x34] ss:$8 sps:$4 sm:$0xff]  }
 0x23d   :  { %vm2943_vm11 = vcmp.eq.s32.totalorder %v2941_v32, 0  ;;  %vm2946_vm1 = vcmp.eq.s32.totalorder %v2941_v32, 2  ;;  %v8920_v31 = vxor.u32 2147483648, %v7331_v6  ;;  %v8921_v61 = vxor.u32 2147483648, %v8868_v62  ;;  %v5552_v5 = vld [vmem:[%s8586_s2 + $0x144] ss:$8 sps:$4 sm:$0xff]  }
 0x23e   :  { %v2844_v28 = vsel %vm2842_vm6, %v8919_v55, %v8860_v60  ;;  %v3045_v11 = vand.u32 3, %v3044_v0  ;;  %4078 = vmatpush1.bf16.msra.mxu0 %v3474_v53  ;;  %5451 = vmatpush1.bf16.msra.mxu1 %v3474_v53  ;;  %vm8922_vm5 = vweird.f32 %v8859_v3  ;;  %v3149_v60 = vand.u32 3, %v3148_v7  ;;  %v5548_v53 = vld [vmem:[%s8586_s2 + $0x20] ss:$8 sps:$4 sm:$0xff]   ;;  %v5558_v55 = vld [vmem:[%s8586_s2 + $0x154] ss:$8 sps:$4 sm:$0xff]  }
 0x23f   :  { %v2845_v40 = vsel %vm2838_vm15, %v2841_v57, %v2844_v28  ;;  %v2945_v10 = vsel %vm2943_vm11, %v8868_v62, %v8920_v31  ;;  %v2948_v13 = vsel %vm2946_vm1, %v8921_v61, %v7331_v6  ;;  %v3252_v41 = vadd.s32 3, %v7772_v26  ;;  %4079 = vmatprep.subr.bf16.mxu0 %v8828_v58  ;;  %5436 = vmatprep.subr.bf16.mxu1 %v8828_v58  ;;  %v5554_v57 = vld [vmem:[%s8586_s2 + $0x30] ss:$8 sps:$4 sm:$0xff]   ;;  %v5560_v28 = vld [vmem:[%s8586_s2 + $0x40] ss:$8 sps:$4 sm:$0xff]  }
 0x240   :  { %v2846_v56 = vsel %vm8922_vm5, nan, %v2845_v40  ;;  %v2949_v25 = vsel %vm2942_vm3, %v2945_v10, %v2948_v13  ;;  %vm8923_vm2 = vweird.f32 %v8866_v48  ;;  %vm3046_vm13 = vcmp.lt.s32.totalorder %v3045_v11, 2  ;;  %v5561_v40 = vld [vmem:[%s8586_s2 + $0x150] ss:$8 sps:$4 sm:$0xff]   ;;  %v5562_v31 = vld [vmem:[%s8586_s2 + $0x54] ss:$8 sps:$4 sm:$0xff]  }
 0x241   :  { %v3475_v8 = vpack.c.bf16 %v2846_v56, %v2742_v33  ;;  %v2950_v32 = vsel %vm8923_vm2, nan, %v2949_v25  ;;  %vm3047_vm10 = vcmp.eq.s32.totalorder %v3045_v11, 0  ;;  %v8924_v6 = vxor.u32 2147483648, %v8870_v36  ;;  %v5556_v33 = vld [vmem:[%s8586_s2 + $0x44] ss:$8 sps:$4 sm:$0xff]  }
 0x242   :  { %vm3050_vm4 = vcmp.eq.s32.totalorder %v3045_v11, 2  ;;  %vm3150_vm14 = vcmp.lt.s32.totalorder %v3149_v60, 2  ;;  %vm3151_vm15 = vcmp.eq.s32.totalorder %v3149_v60, 0  ;;  %v8925_v26 = vxor.u32 2147483648, %v7493_v47  ;;  %v5564_v10 = vld [vmem:[%s8586_s2 + $0x164] ss:$8 sps:$4 sm:$0xff]  }
 0x243   :  { %v3049_v62 = vsel %vm3047_vm10, %v8879_v1, %v8924_v6  ;;  %v3052_v3 = vsel %vm3050_vm4, %v1383_v20, %v8870_v36  ;;  %vm3154_vm8 = vcmp.eq.s32.totalorder %v3149_v60, 2  ;;  %v3253_v48 = vand.u32 3, %v3252_v41  ;;  %4080 = vmatpush1.bf16.msra.mxu0 %v3475_v8  ;;  %5452 = vmatpush1.bf16.msra.mxu1 %v3475_v8  ;;  %v5566_v61 = vld [vmem:[%s8586_s2 + $0x50] ss:$8 sps:$4 sm:$0xff]   ;;  %v5567_v13 = vld [vmem:[%s8586_s2 + $0x160] ss:$8 sps:$4 sm:$0xff]  }
 0x244   :  { %v3153_v0 = vsel %vm3151_vm15, %v7478_v42, %v8925_v26  ;;  %v3053_v7 = vsel %vm3046_vm13, %v3049_v62, %v3052_v3  ;;  %v8926_v63 = vxor.u32 2147483648, %v7478_v42  ;;  %v3356_v45 = vadd.s32 3, %v7777_v38  ;;  %4081 = vmatprep.subr.bf16.mxu0 %v8828_v58  ;;  %5437 = vmatprep.subr.bf16.mxu1 %v8828_v58  ;;  %v5568_v11 = vld [vmem:[%s8586_s2 + $0x64] ss:$8 sps:$4 sm:$0xff]   ;;  %v5570_v56 = vld [vmem:[%s8586_s2 + $0x174] ss:$8 sps:$4 sm:$0xff]  }
 0x245   :  { %v3460_v17 = vadd.s32 3, %v7810_v19  ;;  %vm8927_vm6 = vweird.f32 %v8875_v39  ;;  %vm3255_vm3 = vcmp.eq.s32.totalorder %v3253_v48, 0  ;;  %vm3254_vm0 = vcmp.lt.s32.totalorder %v3253_v48, 2  ;;  %v5572_v25 = vld [vmem:[%s8586_s2 + $0x60] ss:$8 sps:$4 sm:$0xff]  }
 0x246   :  { %v3156_v12 = vsel %vm3154_vm8, %v8926_v63, %v7493_v47  ;;  %v3054_v20 = vsel %vm8927_vm6, nan, %v3053_v7  ;;  %v8928_v37 = vxor.u32 2147483648, %v7453_v29  ;;  %vm3258_vm11 = vcmp.eq.s32.totalorder %v3253_v48, 2  ;;  %v5573_v60 = vld [vmem:[%s8586_s2 + $0x170] ss:$8 sps:$4 sm:$0xff]  }
 0x247   :  { %v3157_v36 = vsel %vm3150_vm14, %v3153_v0, %v3156_v12  ;;  %v3476_v1 = vpack.c.bf16 %v3054_v20, %v2950_v32  ;;  %vm8929_vm1 = vweird.f32 %v7029_v49  ;;  %v8930_v38 = vxor.u32 2147483648, %v7391_v14  ;;  %v5574_v41 = vld [vmem:[%s8586_s2 + $0x74] ss:$8 sps:$4 sm:$0xff]   ;;  %v5576_v8 = vld [vmem:[%s8586_s2 + $0x70] ss:$8 sps:$4 sm:$0xff]  }
 0x248   :  { %v3257_v42 = vsel %vm3255_vm3, %v7391_v14, %v8928_v37  ;;  %v3158_v47 = vsel %vm8929_vm1, nan, %v3157_v36  ;;  %v3357_v50 = vand.u32 3, %v3356_v45  ;;  %v3461_v21 = vand.u32 3, %v3460_v17  ;;  %v5577_v32 = vld [vmem:[%s8586_s2 + $0x84] ss:$8 sps:$4 sm:$0xff]  }
 0x249   :  { %v3260_v19 = vsel %vm3258_vm11, %v8930_v38, %v7453_v29  ;;  %4082 = vmatpush1.bf16.msra.mxu0 %v3476_v1  ;;  %5453 = vmatpush1.bf16.msra.mxu1 %v3476_v1  ;;  %v8931_v15 = vxor.u32 2147483648, %v7699_v51  ;;  %v8932_v29 = vxor.u32 2147483648, %v7689_v52  ;;  %v5579_v6 = vld [vmem:[%s8586_s2 + $0x80] ss:$8 sps:$4 sm:$0xff]   ;;  %v5580_v62 = vld [vmem:[%s8586_s2 + $0x94] ss:$8 sps:$4 sm:$0xff]   ;;  %v3578_v38 = vpop.permute.xlu0 %3577 }
 0x24a   :  { %v3261_v39 = vsel %vm3254_vm0, %v3257_v42, %v3260_v19  ;;  %4083 = vmatprep.subr.bf16.mxu0 %v8828_v58  ;;  %5438 = vmatprep.subr.bf16.mxu1 %v8828_v58  ;;  %vm3359_vm5 = vcmp.eq.s32.totalorder %v3357_v50, 0  ;;  %vm3362_vm2 = vcmp.eq.s32.totalorder %v3357_v50, 2  ;;  %vm3358_vm13 = vcmp.lt.s32.totalorder %v3357_v50, 2  ;;  %v5582_v3 = vld [vmem:[%s8586_s2 + $0x90] ss:$8 sps:$4 sm:$0xff]   ;;  %v3583_v19 = vpop.permute.xlu1 %3582 }
 0x24b   :  { %v3262_v46 = vsel %vm1582_vm12, nan, %v3261_v39  ;;  %v3361_v14 = vsel %vm3359_vm5, %v7689_v52, %v8931_v15  ;;  %v3364_v18 = vsel %vm3362_vm2, %v8932_v29, %v7699_v51  ;;  %vm3463_vm10 = vcmp.eq.s32.totalorder %v3461_v21, 0  ;;  %v5583_v26 = vld [vmem:[%s8586_s2 + $0xa4] ss:$8 sps:$4 sm:$0xff]   ;;  %v5585_v0 = vld [vmem:[%s8586_s2 + $0xa0] ss:$8 sps:$4 sm:$0xff]  }
 0x24c   :  { %v3477_v49 = vpack.c.bf16 %v3262_v46, %v3158_v47  ;;  %v3365_v35 = vsel %vm3358_vm13, %v3361_v14, %v3364_v18  ;;  %vm3466_vm4 = vcmp.eq.s32.totalorder %v3461_v21, 2  ;;  %vm3462_vm12 = vcmp.lt.s32.totalorder %v3461_v21, 2  ;;  %v5586_v48 = vld [vmem:[%s8586_s2 + $0xb4] ss:$8 sps:$4 sm:$0xff]   ;;  %v5588_v7 = vld [vmem:[%s8586_s2 + $0xb0] ss:$8 sps:$4 sm:$0xff]  }
 0x24d   :  { %v3366_v44 = vsel %vm1685_vm7, nan, %v3365_v35  ;;  %v3465_v54 = vsel %vm3463_vm10, %v7598_v16, %v1792_v43  ;;  %v3468_v23 = vsel %vm3466_vm4, %v1795_v9, %v7621_v27  ;;  %v5535_v43 = vld [vmem:[%s8586_s2 + $0x110] ss:$8 sps:$4 sm:$0xff]   ;;  %v5538_v27 = vld [vmem:[%s8586_s2 + $0x14] ss:$8 sps:$4 sm:$0xff]   ;;  %v8110_v50 = vpop.permute.xlu0 %3657  ;;  %vm5876_vm7 = vmmov 0  }
 0x24e   :  { %4084 = vmatpush1.bf16.msra.mxu0 %v3477_v49  ;;  %5454 = vmatpush1.bf16.msra.mxu1 %v3477_v49  ;;  %v3469_v51 = vsel %vm3462_vm12, %v3465_v54, %v3468_v23  ;;  %v5543_v16 = vld [vmem:[%s8586_s2 + $0x120] ss:$8 sps:$4 sm:$0xff]   ;;  %v5544_v9 = vld [vmem:[%s8586_s2 + $0x24] ss:$8 sps:$4 sm:$0xff]   ;;  %v5592_v45 = vld [vmem:[%s8586_s2 + $0xd4] ss:$8 sps:$4 sm:$0xff]   ;;  %v8112_v21 = vpop.permute.xlu1 %3662 }
 0x24f   :  { %4085 = vmatprep.subr.bf16.mxu0 %v8828_v58  ;;  %5439 = vmatprep.subr.bf16.mxu1 %v8828_v58  ;;  %v3470_v52 = vsel %vm1788_vm9, nan, %v3469_v51  ;;  %v5542_v58 = vld [vmem:[%s8586_s2 + $0x10] ss:$8 sps:$4 sm:$0xff]   ;;  %v5589_v63 = vld [vmem:[%s8586_s2 + $0xc4] ss:$8 sps:$4 sm:$0xff]   ;;  %8933 = vst [vmem:[#allocation8_spill] sm:$0xff] %v8112_v21 }
 0x250   :  { %v3478_v30 = vpack.c.bf16 %v3470_v52, %v3366_v44  ;;  %v5591_v12 = vld [vmem:[%s8586_s2 + $0xc0] ss:$8 sps:$4 sm:$0xff]   ;;  %v5594_v17 = vld [vmem:[%s8586_s2 + $0xd0] ss:$8 sps:$4 sm:$0xff]   ;;  %v5595_v20 = vld [vmem:[%s8586_s2 + $0xe4] ss:$8 sps:$4 sm:$0xff]  }
 0x251   :  { %v5597_v36 = vld [vmem:[%s8586_s2 + $0xe0] ss:$8 sps:$4 sm:$0xff]   ;;  %v5598_v1 = vld [vmem:[%s8586_s2 + $0xf4] ss:$8 sps:$4 sm:$0xff]   ;;  %v5600_v37 = vld [vmem:[%s8586_s2 + $0xf0] ss:$8 sps:$4 sm:$0xff]   ;;  %v8114_v39 = vpop.permute.xlu0 %3737 }
 0x252   :  { %4086 = vmatpush1.bf16.msra.mxu0 %v3478_v30  ;;  %5455 = vmatpush1.bf16.msra.mxu1 %v3478_v30  ;;  %v5601_v42 = vld [vmem:[%s8586_s2 + $0x104] ss:$8 sps:$4 sm:$0xff]   ;;  %v5603_v47 = vld [vmem:[%s8586_s2 + $0x100] ss:$8 sps:$4 sm:$0xff]   ;;  %8934 = vst [vmem:[#allocation5_spill] sm:$0xff] %v8114_v39  ;;  %v8116_v46 = vpop.permute.xlu1 %3742 }
 0x253   :  { %8935 = vst [vmem:[#allocation18_spill] sm:$0xff] %v8116_v46 }
 0x255   :  { %4088 = vmatmul.mubr.bf16.vlgmr.msra.gmra.mrb[0].mxu0 %v5532_v34  ;;  %4224 = vmatmul.mubr.bf16.vlgmr.msra.gmra.mrb[0].mxu1 %v5535_v43  ;;  %v8118_v49 = vpop.permute.xlu0 %3587 }
 0x256   :  { %4095 = vmatprep.mubr.bf16.mxu0 %v5538_v27  ;;  %4231 = vmatprep.mubr.bf16.mxu1 %v5540_v24  ;;  %v8120_v15 = vpop.permute.xlu1 %3592 }
 0x259   :  { %v8122_v14 = vpop.permute.xlu0 %3667 }
 0x25a   :  { %v8124_v29 = vpop.permute.xlu1 %3672 }
 0x25d   :  { %4096 = vmatmul.mubr.bf16.gmra.mrb[4].mxu0 %v5542_v58  ;;  %4232 = vmatmul.mubr.bf16.gmra.mrb[4].mxu1 %v5543_v16  ;;  %v8126_v18 = vpop.permute.xlu0 %3747 }
 0x25e   :  { %4103 = vmatprep.mubr.bf16.mxu0 %v5544_v9  ;;  %4239 = vmatprep.mubr.bf16.mxu1 %v5546_v59  ;;  %v8128_v35 = vpop.permute.xlu1 %3752 }
 0x261   :  { %v8130_v44 = vpop.permute.xlu0 %3597 }
 0x262   :  { %v8140_v16 = vpop.permute.xlu1 %3602 }
 0x265   :  { %4104 = vmatmul.mubr.bf16.gmra.mrb[8].mxu0 %v5548_v53  ;;  %4240 = vmatmul.mubr.bf16.gmra.mrb[8].mxu1 %v5549_v4  ;;  %v8142_v9 = vpop.permute.xlu0 %3677 }
 0x266   :  { %4111 = vmatprep.mubr.bf16.mxu0 %v5550_v2  ;;  %4247 = vmatprep.mubr.bf16.mxu1 %v5552_v5 }
 0x26d   :  { %4112 = vmatmul.mubr.bf16.gmra.mrb[12].mxu0 %v5554_v57  ;;  %4248 = vmatmul.mubr.bf16.gmra.mrb[12].mxu1 %v5555_v22 }
 0x26e   :  { %4119 = vmatprep.mubr.bf16.mxu0 %v5556_v33  ;;  %4255 = vmatprep.mubr.bf16.mxu1 %v5558_v55  ;;  %v8152_v55 = vpop.permute.xlu1 %3682 }
 0x275   :  { %4120 = vmatmul.mubr.bf16.gmra.mrb[16].mxu0 %v5560_v28  ;;  %4256 = vmatmul.mubr.bf16.gmra.mrb[16].mxu1 %v5561_v40  ;;  %v8154_v28 = vpop.permute.xlu0 %3757 }
 0x276   :  { %4127 = vmatprep.mubr.bf16.mxu0 %v5562_v31  ;;  %4263 = vmatprep.mubr.bf16.mxu1 %v5564_v10 }
 0x27d   :  { %4128 = vmatmul.mubr.bf16.gmra.mrb[20].mxu0 %v5566_v61  ;;  %4264 = vmatmul.mubr.bf16.gmra.mrb[20].mxu1 %v5567_v13 }
 0x27e   :  { %4135 = vmatprep.mubr.bf16.mxu0 %v5568_v11  ;;  %4271 = vmatprep.mubr.bf16.mxu1 %v5570_v56 }
 0x285   :  { %4136 = vmatmul.mubr.bf16.gmra.mrb[24].mxu0 %v5572_v25  ;;  %4272 = vmatmul.mubr.bf16.gmra.mrb[24].mxu1 %v5573_v60  ;;  %v8164_v60 = vpop.permute.xlu1 %3762 }
 0x286   :  { %4143 = vmatprep.mubr.bf16.mxu0 %v5574_v41  ;;  %v8166_v41 = vpop.permute.xlu0 %3607 }
 0x28d   :  { %4144 = vmatmul.mubr.bf16.gmra.mrb[28].mxu0 %v5576_v8 }
 0x28e   :  { %4151 = vmatprep.mubr.bf16.mxu0 %v5577_v32 }
 0x295   :  { %4152 = vmatmul.mubr.bf16.gmra.mrb[32].mxu0 %v5579_v6 }
 0x296   :  { %4159 = vmatprep.mubr.bf16.mxu0 %v5580_v62 }
 0x29d   :  { %4160 = vmatmul.mubr.bf16.gmra.mrb[36].mxu0 %v5582_v3 }
 0x29e   :  { %4167 = vmatprep.mubr.bf16.mxu0 %v5583_v26 }
 0x2a5   :  { %4168 = vmatmul.mubr.bf16.gmra.mrb[40].mxu0 %v5585_v0 }
 0x2a6   :  { %4175 = vmatprep.mubr.bf16.mxu0 %v5586_v48 }
 0x2ad   :  { %4176 = vmatmul.mubr.bf16.gmra.mrb[44].mxu0 %v5588_v7  ;;  %v8176_v7 = vpop.permute.xlu1 %3612 }
 0x2ae   :  { %4183 = vmatprep.mubr.bf16.mxu0 %v5589_v63  ;;  %v8178_v63 = vpop.permute.xlu0 %3687 }
 0x2b5   :  { %4184 = vmatmul.mubr.bf16.gmra.mrb[48].mxu0 %v5591_v12 }
 0x2b6   :  { %4191 = vmatprep.mubr.bf16.mxu0 %v5592_v45 }
 0x2bd   :  { %4192 = vmatmul.mubr.bf16.gmra.mrb[52].mxu0 %v5594_v17 }
 0x2be   :  { %4199 = vmatprep.mubr.bf16.mxu0 %v5595_v20 }
 0x2c5   :  { %4200 = vmatmul.mubr.bf16.gmra.mrb[56].mxu0 %v5597_v36 }
 0x2c6   :  { %4207 = vmatprep.mubr.bf16.mxu0 %v5598_v1 }
 0x2cd   :  { %4208 = vmatmul.mubr.bf16.gmra.mrb[60].mxu0 %v5600_v37 }
 0x2ce   :  { %4215 = vmatprep.mubr.bf16.mxu0 %v5601_v42 }
 0x2d5   :  { %4216 = vmatmul.mubr.bf16.gmra.mrb[64].mxu0 %v5603_v47  ;;  %v8188_v47 = vpop.permute.xlu1 %3692 }
 0x328   :  { %v4089_v54 = vpop.f32.mrb[0].mxu0  ;;  %v8132_v23 = vpop.f32.mrb[0].mxu1 }
 0x329   :  { %v8134_v51 = vadd.f32 %v4089_v54, %v3578_v38  ;;  %v4091_v52 = vpop.f32.mrb[1].mxu0  ;;  %v4227_v30 = vpop.f32.mrb[1].mxu1 }
 0x32a   :  { %v4092_v34 = vpop.f32.mrb[2].mxu0  ;;  %v8136_v43 = vpop.f32.mrb[2].mxu1 }
 0x32b   :  { %8936 = vst [vmem:[#allocation12_spill] sm:$0xff] %v8134_v51  ;;  %v8138_v27 = vadd.f32 %v4092_v34, %v3583_v19  ;;  %v4094_v24 = vpop.f32.mrb[3].mxu0  ;;  %v4230_v58 = vpop.f32.mrb[3].mxu1 }
 0x32c   :  { %v8190_v38 = vpop.permute.xlu0 %3767 }
 0x32d   :  { %8937 = vst [vmem:[#allocation17_spill] sm:$0xff] %v8138_v27 }
 0x330   :  { %v8144_v59 = vpop.f32.mrb[4].mxu0  ;;  %v8146_v53 = vpop.f32.mrb[4].mxu1 }
 0x331   :  { %v4099_v4 = vpop.f32.mrb[5].mxu0  ;;  %v4235_v2 = vpop.f32.mrb[5].mxu1 }
 0x332   :  { %v8148_v5 = vpop.f32.mrb[6].mxu0  ;;  %v8150_v57 = vpop.f32.mrb[6].mxu1 }
 0x333   :  { %v4102_v22 = vpop.f32.mrb[7].mxu0  ;;  %v4238_v33 = vpop.f32.mrb[7].mxu1  ;;  %v4101_v27 = vadd.f32 %v8148_v5, %v8120_v15  ;;  %v4234_v15 = vadd.f32 %v8146_v53, %v8154_v28  ;;  %v4237_v28 = vadd.f32 %v8150_v57, %v8164_v60 }
 0x334   :  { %v8200_v2 = vpop.permute.xlu1 %3772  ;;  %v8202_v22 = vpop.permute.xlu0 %3617 }
 0x338   :  { %v8156_v40 = vpop.f32.mrb[8].mxu0  ;;  %v8158_v31 = vpop.f32.mrb[8].mxu1 }
 0x339   :  { %v4107_v10 = vpop.f32.mrb[9].mxu0  ;;  %v4243_v61 = vpop.f32.mrb[9].mxu1 }
 0x33a   :  { %v8160_v13 = vpop.f32.mrb[10].mxu0  ;;  %v8162_v11 = vpop.f32.mrb[10].mxu1 }
 0x33b   :  { %v4110_v56 = vpop.f32.mrb[11].mxu0  ;;  %v4246_v25 = vpop.f32.mrb[11].mxu1 }
 0x340   :  { %v8168_v8 = vpop.f32.mrb[12].mxu0  ;;  %v8170_v32 = vpop.f32.mrb[12].mxu1 }
 0x341   :  { %v4115_v6 = vpop.f32.mrb[13].mxu0  ;;  %v4251_v62 = vpop.f32.mrb[13].mxu1  ;;  %v4114_v57 = vadd.f32 %v8168_v8, %v8166_v41 }
 0x342   :  { %v8172_v3 = vpop.f32.mrb[14].mxu0  ;;  %v8174_v26 = vpop.f32.mrb[14].mxu1 }
 0x343   :  { %v4118_v0 = vpop.f32.mrb[15].mxu0  ;;  %v4254_v48 = vpop.f32.mrb[15].mxu1 }
 0x344   :  { %v5604_v48 = vld [vmem:[%s8588_s4] sm:$0xff]  }
 0x345   :  { %5356 = vmatprep.mubr.bf16.mxu1 %v5604_v48 }
 0x348   :  { %v8180_v12 = vpop.f32.mrb[16].mxu0  ;;  %v8182_v45 = vpop.f32.mrb[16].mxu1 }
 0x349   :  { %v4123_v17 = vpop.f32.mrb[17].mxu0  ;;  %v4259_v20 = vpop.f32.mrb[17].mxu1 }
 0x34a   :  { %v8184_v36 = vpop.f32.mrb[18].mxu0  ;;  %v8186_v1 = vpop.f32.mrb[18].mxu1 }
 0x34b   :  { %v4126_v37 = vpop.f32.mrb[19].mxu0  ;;  %v4262_v42 = vpop.f32.mrb[19].mxu1 }
 0x34c   :  { %v8215_v17 = vpop.permute.xlu1 %3622  ;;  %v8217_v20 = vpop.permute.xlu0 %3697 }
 0x350   :  { %v8192_v19 = vpop.f32.mrb[20].mxu0  ;;  %v8194_v54 = vpop.f32.mrb[20].mxu1 }
 0x351   :  { %v4131_v52 = vpop.f32.mrb[21].mxu0  ;;  %v4267_v30 = vpop.f32.mrb[21].mxu1 }
 0x352   :  { %v8196_v34 = vpop.f32.mrb[22].mxu0  ;;  %v8198_v24 = vpop.f32.mrb[22].mxu1 }
 0x353   :  { %v4134_v58 = vpop.f32.mrb[23].mxu0  ;;  %v4270_v4 = vpop.f32.mrb[23].mxu1 }
 0x354   :  { %v8223_v58 = vpop.permute.xlu1 %3702  ;;  %v8225_v4 = vpop.permute.xlu0 %3777 }
 0x358   :  { %v8204_v33 = vpop.f32.mrb[24].mxu0  ;;  %v8206_v10 = vpop.f32.mrb[24].mxu1 }
 0x359   :  { %v4139_v61 = vpop.f32.mrb[25].mxu0  ;;  %v4275_v56 = vpop.f32.mrb[25].mxu1 }
 0x35a   :  { %v8208_v25 = vpop.f32.mrb[26].mxu0  ;;  %v8210_v6 = vpop.f32.mrb[26].mxu1 }
 0x35b   :  { %v4142_v62 = vpop.f32.mrb[27].mxu0  ;;  %v4278_v0 = vpop.f32.mrb[27].mxu1 }
 0x35c   :  { %v8231_v0 = vpop.permute.xlu1 %3782  ;;  %v8233_v46 = vpop.permute.xlu0 %3627 }
 0x360   :  { %v8219_v37 = vpop.f32.mrb[28].mxu0  ;;  %v8241_v51 = vpop.permute.xlu1 %3632 }
 0x361   :  { %v4147_v42 = vpop.f32.mrb[29].mxu0  ;;  %v8244_v21 = vpop.permute.xlu0 %3707 }
 0x362   :  { %v8221_v52 = vpop.f32.mrb[30].mxu0  ;;  %v4226_v42 = vadd.f32 %v8132_v23, %v8126_v18  ;;  %v4229_v18 = vadd.f32 %v8136_v43, %v8128_v35  ;;  %v4109_v35 = vadd.f32 %v8160_v13, %v8140_v16 }
 0x363   :  { %v4150_v30 = vpop.f32.mrb[31].mxu0 }
 0x364   :  { %v4098_v30 = vadd.f32 %v8144_v59, %v8118_v49  ;;  %5684 = vtanh.f32 %v4226_v42 }
 0x365   :  { %v8255_v59 = vpop.permute.xlu0 %3787 }
 0x366   :  { %5686 = vtanh.f32 %v4098_v30 }
 0x368   :  { %v8227_v61 = vpop.f32.mrb[32].mxu0 }
 0x369   :  { %v4155_v56 = vpop.f32.mrb[33].mxu0  ;;  %v8271_v30 = vpop.permute.xlu0 %3637 }
 0x36a   :  { %v8229_v62 = vpop.f32.mrb[34].mxu0 }
 0x36b   :  { %8938 = vst [vmem:[#allocation13_spill] sm:$0xff] %v8229_v62  ;;  %v4158_v48 = vpop.f32.mrb[35].mxu0 }
 0x36e   :  { %v5685_v53 = vpop.eup %5684 }
 0x370   :  { %v4161_v39 = vpop.f32.mrb[36].mxu0 }
 0x371   :  { %v4162_v56 = vadd.f32 %v4161_v39, %v8122_v14  ;;  %v4163_v62 = vpop.f32.mrb[37].mxu0  ;;  %v4106_v39 = vadd.f32 %v8156_v40, %v8130_v44  ;;  %v8253_v14 = vpop.permute.xlu1 %3712 }
 0x372   :  { %v4164_v48 = vpop.f32.mrb[38].mxu0  ;;  %v8263_v62 = vpop.eup %5686 }
 0x373   :  { %5688 = vtanh.f32 %v4162_v56  ;;  %v4165_v49 = vadd.f32 %v4164_v48, %v8124_v29  ;;  %v4166_v23 = vpop.f32.mrb[39].mxu0  ;;  %v4117_v56 = vadd.f32 %v8172_v3, %v8176_v7  ;;  %v4245_v3 = vadd.f32 %v8162_v11, %v8200_v2 }
 0x374   :  { %5690 = vtanh.f32 %v4101_v27  ;;  %v4122_v11 = vadd.f32 %v8180_v12, %v8202_v22 }
 0x375   :  { %5692 = vtanh.f32 %v4165_v49  ;;  %v8265_v16 = vpop.permute.xlu1 %3792 }
 0x376   :  { %5694 = vtanh.f32 %v4229_v18 }
 0x377   :  { %5696 = vtanh.f32 %v4234_v15 }
 0x378   :  { %v4169_v43 = vpop.f32.mrb[40].mxu0  ;;  %5698 = vtanh.f32 %v4106_v39 }
 0x379   :  { %v4170_v29 = vadd.f32 %v4169_v43, %v8142_v9  ;;  %v4171_v27 = vpop.f32.mrb[41].mxu0  ;;  %v4242_v9 = vadd.f32 %v8158_v31, %v8190_v38  ;;  %v8286_v39 = vpop.permute.xlu1 %3642 }
 0x37a   :  { %v4172_v5 = vpop.f32.mrb[42].mxu0 }
 0x37b   :  { %5700 = vtanh.f32 %v4170_v29  ;;  %v4173_v44 = vadd.f32 %v4172_v5, %v8152_v55  ;;  %v4174_v40 = vpop.f32.mrb[43].mxu0  ;;  %v8293_v29 = vpop.permute.xlu0 %3717 }
 0x37c   :  { %5702 = vtanh.f32 %v4109_v35  ;;  %v4125_v40 = vadd.f32 %v8184_v36, %v8215_v17  ;;  %v4253_v36 = vadd.f32 %v8174_v26, %v8231_v0  ;;  %v4130_v26 = vadd.f32 %v8192_v19, %v8233_v46 }
 0x37d   :  { %v5689_v42 = vpop.eup %5688  ;;  %5704 = vtanh.f32 %v4173_v44 }
 0x37e   :  { %v8269_v13 = vpop.eup %5690  ;;  %v8276_v55 = vsub.f32 %v5689_v42, %v8263_v62  ;;  %5706 = vtanh.f32 %v4237_v28 }
 0x37f   :  { %v5693_v60 = vpop.eup %5692  ;;  %5708 = vtanh.f32 %v4242_v9 }
 0x380   :  { %v8281_v48 = vsub.f32 %v5693_v60, %v8269_v13  ;;  %v4177_v31 = vpop.f32.mrb[44].mxu0  ;;  %v4346_v38 = vmul.f32 %v5685_v53, %v8276_v55  ;;  %v5695_v18 = vpop.eup %5694  ;;  %5710 = vtanh.f32 %v4114_v57  ;;  %v4250_v53 = vadd.f32 %v8170_v32, %v8225_v4 }
 0x381   :  { %v4178_v49 = vadd.f32 %v4177_v31, %v8178_v63  ;;  %v4179_v23 = vpop.f32.mrb[45].mxu0  ;;  %v5697_v15 = vpop.eup %5696 }
 0x382   :  { %v4180_v41 = vpop.f32.mrb[46].mxu0  ;;  %v4347_v8 = vmul.f32 %v5695_v18, %v8281_v48  ;;  %v8291_v43 = vpop.eup %5698  ;;  %v4362_v63 = vadd.f32 %v8263_v62, %v4346_v38 }
 0x383   :  { %5712 = vtanh.f32 %v4178_v49  ;;  %v4181_v7 = vadd.f32 %v4180_v41, %v8188_v47  ;;  %v4182_v35 = vpop.f32.mrb[47].mxu0  ;;  %v8314_v57 = vpop.permute.xlu1 %3722 }
 0x384   :  { %5714 = vtanh.f32 %v4117_v56  ;;  %v4363_v27 = vadd.f32 %v8269_v13, %v4347_v8  ;;  %v3798_v60 = vpop.permute.xlu0 %3797  ;;  %v4258_v8 = vadd.f32 %v8182_v45, %v8255_v59 }
 0x385   :  { %v5701_v5 = vpop.eup %5700  ;;  %5716 = vtanh.f32 %v4181_v7 }
 0x386   :  { %v8299_v28 = vpop.eup %5702  ;;  %v8304_v47 = vsub.f32 %v5701_v5, %v8291_v43  ;;  %v8306_v2 = vpack.c.bf16 %v4363_v27, %v4362_v63  ;;  %5718 = vtanh.f32 %v4245_v3  ;;  %v4133_v63 = vadd.f32 %v8196_v34, %v8241_v51 }
 0x387   :  { %v5705_v44 = vpop.eup %5704  ;;  %5720 = vtanh.f32 %v4250_v53  ;;  %v3803_v7 = vpop.permute.xlu1 %3802 }
 0x388   :  { %v8311_v42 = vsub.f32 %v5705_v44, %v8299_v28  ;;  %v4185_v32 = vpop.f32.mrb[48].mxu0  ;;  %v4348_v4 = vmul.f32 %v5697_v15, %v8304_v47  ;;  %v5707_v9 = vpop.eup %5706  ;;  %5722 = vtanh.f32 %v4122_v11 }
 0x389   :  { %v4186_v12 = vadd.f32 %v4185_v32, %v8217_v20  ;;  %v4187_v22 = vpop.f32.mrb[49].mxu0  ;;  %v5709_v38 = vpop.eup %5708 }
 0x38a   :  { %v4188_v56 = vpop.f32.mrb[50].mxu0  ;;  %v4349_v31 = vmul.f32 %v5707_v9, %v8311_v42  ;;  %v8321_v49 = vpop.eup %5710  ;;  %v4364_v23 = vadd.f32 %v8291_v43, %v4348_v4  ;;  %v4266_v22 = vadd.f32 %v8194_v54, %v3798_v60 }
 0x38b   :  { %5724 = vtanh.f32 %v4186_v12  ;;  %v4189_v17 = vadd.f32 %v4188_v56, %v8223_v58  ;;  %v4190_v18 = vpop.f32.mrb[51].mxu0  ;;  %v3648_v35 = vpop.permute.xlu0 %3647 }
 0x38c   :  { %5726 = vtanh.f32 %v4125_v40  ;;  %v4365_v20 = vadd.f32 %v8299_v28, %v4349_v31  ;;  %v4261_v40 = vadd.f32 %v8186_v1, %v8265_v16  ;;  %v3653_v12 = vpop.permute.xlu1 %3652  ;;  %v4138_v1 = vadd.f32 %v8204_v33, %v8271_v30 }
 0x38d   :  { %v5713_v41 = vpop.eup %5712  ;;  %5728 = vtanh.f32 %v4189_v17 }
 0x38e   :  { %v8327_v15 = vpop.eup %5714  ;;  %v8332_v58 = vsub.f32 %v5713_v41, %v8321_v49  ;;  %v8334_v0 = vpack.c.bf16 %v4365_v20, %v4364_v23  ;;  %5730 = vtanh.f32 %v4253_v36  ;;  %v4141_v36 = vadd.f32 %v8208_v25, %v8286_v39 }
 0x38f   :  { %v5717_v3 = vpop.eup %5716  ;;  %5732 = vtanh.f32 %v4258_v8  ;;  %v3728_v31 = vpop.permute.xlu0 %3727 }
 0x390   :  { %v8339_v45 = vsub.f32 %v5717_v3, %v8327_v15  ;;  %v4193_v59 = vpop.f32.mrb[52].mxu0  ;;  %v4350_v27 = vmul.f32 %v5709_v38, %v8332_v58  ;;  %v5719_v5 = vpop.eup %5718  ;;  %5734 = vtanh.f32 %v4130_v26  ;;  %v4269_v26 = vadd.f32 %v8198_v24, %v3803_v7 }
 0x391   :  { %v4194_v46 = vadd.f32 %v4193_v59, %v8244_v21  ;;  %v4195_v19 = vpop.f32.mrb[53].mxu0  ;;  %v5721_v44 = vpop.eup %5720  ;;  %v4146_v24 = vadd.f32 %v8219_v37, %v3648_v35 }
 0x392   :  { %v4196_v53 = vpop.f32.mrb[54].mxu0  ;;  %v4351_v11 = vmul.f32 %v5719_v5, %v8339_v45  ;;  %v8347_v32 = vpop.eup %5722  ;;  %v4366_v4 = vadd.f32 %v8321_v49, %v4350_v27 }
 0x393   :  { %5736 = vtanh.f32 %v4194_v46  ;;  %v4197_v51 = vadd.f32 %v4196_v53, %v8253_v14  ;;  %v4198_v34 = vpop.f32.mrb[55].mxu0  ;;  %v3733_v8 = vpop.permute.xlu1 %3732  ;;  %v4149_v53 = vadd.f32 %v8221_v52, %v3653_v12  ;;  %v4154_v52 = vadd.f32 %v8227_v61, %v8110_v50 }
 0x394   :  { %5738 = vtanh.f32 %v4133_v63  ;;  %v4367_v21 = vadd.f32 %v8327_v15, %v4351_v11  ;;  %v3808_v63 = vpop.permute.xlu0 %3807 }
 0x395   :  { %v5725_v9 = vpop.eup %5724  ;;  %5740 = vtanh.f32 %v4197_v51  ;;  %v4274_v5 = vadd.f32 %v8206_v10, %v3808_v63  ;;  %v8943_v63 = vld [vmem:[#allocation17_spill] sm:$0xff] }
 0x396   :  { %v8352_v56 = vpop.eup %5726  ;;  %v8357_v14 = vsub.f32 %v5725_v9, %v8347_v32  ;;  %v8359_v16 = vpack.c.bf16 %v4367_v21, %v4366_v4  ;;  %5742 = vtanh.f32 %v4261_v40 }
 0x397   :  { %v5729_v38 = vpop.eup %5728  ;;  %5744 = vtanh.f32 %v4266_v22  ;;  %v3813_v51 = vpop.permute.xlu1 %3812 }
 0x398   :  { %v8364_v17 = vsub.f32 %v5729_v38, %v8352_v56  ;;  %v4201_v54 = vpop.f32.mrb[56].mxu0  ;;  %v4352_v60 = vmul.f32 %v5721_v44, %v8357_v14  ;;  %v5731_v18 = vpop.eup %5730  ;;  %5746 = vtanh.f32 %v4138_v1  ;;  %v4277_v35 = vadd.f32 %v8210_v6, %v3813_v51  ;;  %v8939_v6 = vld [vmem:[#allocation8_spill] sm:$0xff] }
 0x399   :  { %v4202_v33 = vadd.f32 %v4201_v54, %v8293_v29  ;;  %v4203_v30 = vpop.f32.mrb[57].mxu0  ;;  %v5733_v41 = vpop.eup %5732  ;;  %v8940_v54 = vld [vmem:[#allocation13_spill] sm:$0xff] }
 0x39a   :  { %v4204_v23 = vpop.f32.mrb[58].mxu0  ;;  %v4353_v20 = vmul.f32 %v5731_v18, %v8364_v17  ;;  %v8371_v3 = vpop.eup %5734  ;;  %v4368_v59 = vadd.f32 %v8347_v32, %v4352_v60  ;;  %v4157_v60 = vadd.f32 %v8940_v54, %v8939_v6  ;;  %v8941_v30 = vld [vmem:[#allocation12_spill] sm:$0xff] }
 0x39b   :  { %5748 = vtanh.f32 %v4202_v33  ;;  %v4205_v25 = vadd.f32 %v4204_v23, %v8314_v57  ;;  %v4206_v39 = vpop.f32.mrb[59].mxu0 }
 0x39c   :  { %5750 = vtanh.f32 %v4141_v36  ;;  %v4369_v29 = vadd.f32 %v8352_v56, %v4353_v20 }
 0x39d   :  { %v5737_v27 = vpop.eup %5736  ;;  %5752 = vtanh.f32 %v4205_v25 }
 0x39e   :  { %v8376_v46 = vpop.eup %5738  ;;  %v8380_v7 = vsub.f32 %v5737_v27, %v8371_v3  ;;  %v8382_v57 = vpack.c.bf16 %v4369_v29, %v4368_v59  ;;  %5754 = vtanh.f32 %v4269_v26  ;;  %v8942_v26 = vld [vmem:[#allocation5_spill] sm:$0xff] }
 0x39f   :  { %v5741_v19 = vpop.eup %5740  ;;  %5756 = vtanh.f32 %v4274_v5  ;;  %v8944_v5 = vld [vmem:[#allocation18_spill] sm:$0xff] }
 0x3a0   :  { %v8386_v11 = vsub.f32 %v5741_v19, %v8376_v46  ;;  %v4209_v44 = vpop.f32.mrb[60].mxu0  ;;  %v4354_v10 = vmul.f32 %v5733_v41, %v8380_v7  ;;  %v5743_v40 = vpop.eup %5742  ;;  %5758 = vtanh.f32 %v4146_v24 }
 0x3a1   :  { %v4210_v34 = vadd.f32 %v4209_v44, %v3728_v31  ;;  %v4211_v37 = vpop.f32.mrb[61].mxu0  ;;  %v5745_v9 = vpop.eup %5744 }
 0x3a2   :  { %v4212_v4 = vpop.f32.mrb[62].mxu0  ;;  %v4355_v21 = vmul.f32 %v5743_v40, %v8386_v11  ;;  %v8393_v1 = vpop.eup %5746  ;;  %v4370_v38 = vadd.f32 %v8371_v3, %v4354_v10 }
 0x3a3   :  { %5760 = vtanh.f32 %v4210_v34  ;;  %v4213_v12 = vadd.f32 %v4212_v4, %v3733_v8  ;;  %v4214_v22 = vpop.f32.mrb[63].mxu0 }
 0x3a4   :  { %5762 = vtanh.f32 %v4149_v53  ;;  %v4371_v31 = vadd.f32 %v8376_v46, %v4355_v21 }
 0x3a5   :  { %v5749_v36 = vpop.eup %5748  ;;  %5764 = vtanh.f32 %v4213_v12 }
 0x3a6   :  { %v8399_v18 = vpop.eup %5750  ;;  %5766 = vtanh.f32 %v4277_v35  ;;  %v8402_v50 = vsub.f32 %v5749_v36, %v8393_v1  ;;  %v4397_v61 = vpack.c.bf16 %v4371_v31, %v4370_v38 }
 0x3a7   :  { %v5753_v33 = vpop.eup %5752  ;;  %5768 = vtanh.f32 %v4154_v52 }
 0x3a8   :  { %5770 = vtanh.f32 %v8941_v30  ;;  %v8406_v23 = vsub.f32 %v5753_v33, %v8399_v18  ;;  %v4217_v20 = vpop.f32.mrb[64].mxu0  ;;  %v4356_v41 = vmul.f32 %v5745_v9, %v8402_v50  ;;  %v5755_v8 = vpop.eup %5754 }
 0x3a9   :  { %5772 = vtanh.f32 %v4157_v60  ;;  %v4218_v25 = vadd.f32 %v4217_v20, %v8942_v26  ;;  %v4219_v39 = vpop.f32.mrb[65].mxu0  ;;  %v5757_v27 = vpop.eup %5756 }
 0x3aa   :  { %5774 = vtanh.f32 %v8943_v63  ;;  %v4220_v59 = vpop.f32.mrb[66].mxu0  ;;  %v4357_v29 = vmul.f32 %v5755_v8, %v8406_v23  ;;  %v8413_v53 = vpop.eup %5758  ;;  %v4372_v44 = vadd.f32 %v8393_v1, %v4356_v41  ;;  %v5610_v63 = vld [vmem:[%s8588_s4 + $0x30] sm:$0xff]  }
 0x3ab   :  { %5776 = vtanh.f32 %v4218_v25  ;;  %v4221_v24 = vadd.f32 %v4220_v59, %v8944_v5  ;;  %v4222_v19 = vpop.f32.mrb[67].mxu0  ;;  %v5611_v59 = vld [vmem:[%s8588_s4 + $0x38] sm:$0xff]   ;;  %v4424_v5 = vpop.permute.xlu1 %4423 }
 0x3ac   :  { %v4373_v10 = vadd.f32 %v8399_v18, %v4357_v29  ;;  %v5612_v29 = vld [vmem:[%s8588_s4 + $0x40] sm:$0xff]  }
 0x3ad   :  { %v5761_v40 = vpop.eup %5760  ;;  %5778 = vtanh.f32 %v4221_v24 }
 0x3ae   :  { %v8417_v51 = vpop.eup %5762  ;;  %v8420_v34 = vsub.f32 %v5761_v40, %v8413_v53  ;;  %v4398_v37 = vpack.c.bf16 %v4373_v10, %v4372_v44 }
 0x3af   :  { %v5765_v35 = vpop.eup %5764  ;;  %v4434_v19 = vpop.permute.xlu1 %4433 }
 0x3b0   :  { %v5767_v4 = vpop.eup %5766  ;;  %v8423_v21 = vsub.f32 %v5765_v35, %v8417_v51  ;;  %v4358_v9 = vmul.f32 %v5757_v27, %v8420_v34  ;;  %v4419_v27 = vpop.permute.xlu0 %4418 }
 0x3b1   :  { %v5769_v52 = vpop.eup %5768 }
 0x3b2   :  { %v8426_v12 = vpop.eup %5770  ;;  %v4359_v22 = vmul.f32 %v5767_v4, %v8423_v21  ;;  %v4374_v6 = vadd.f32 %v8413_v53, %v4358_v9 }
 0x3b3   :  { %v5773_v38 = vpop.eup %5772  ;;  %v8432_v36 = vsub.f32 %v5769_v52, %v8426_v12  ;;  %v4444_v10 = vpop.permute.xlu1 %4443 }
 0x3b4   :  { %v8429_v31 = vpop.eup %5774  ;;  %v4375_v54 = vadd.f32 %v8417_v51, %v4359_v22  ;;  %v4429_v24 = vpop.permute.xlu0 %4428 }
 0x3b5   :  { %v5777_v60 = vpop.eup %5776  ;;  %v8437_v33 = vsub.f32 %v5773_v38, %v8429_v31 }
 0x3b6   :  { %v4344_v30 = vmul.f32 %v5777_v60, %v8432_v36  ;;  %v4399_v20 = vpack.c.bf16 %v4375_v54, %v4374_v6 }
 0x3b7   :  { %v5779_v41 = vpop.eup %5778  ;;  %v4454_v9 = vpop.permute.xlu1 %4453 }
 0x3b8   :  { %v4345_v8 = vmul.f32 %v5779_v41, %v8437_v33  ;;  %v4360_v26 = vadd.f32 %v8426_v12, %v4344_v30  ;;  %v4439_v44 = vpop.permute.xlu0 %4438 }
 0x3ba   :  { %v4361_v25 = vadd.f32 %v8429_v31, %v4345_v8 }
 0x3bb   :  { %v4464_v30 = vpop.permute.xlu1 %4463 }
 0x3bc   :  { %v4392_v39 = vpack.c.bf16 %v4361_v25, %v4360_v26  ;;  %v4449_v40 = vpop.permute.xlu0 %4448 }
 0x3be   :  { %5340 = vmatprep.subr.bf16.mxu1 %v4392_v39 }
 0x3bf   :  { %5341 = vmatpush3.bf16.msra.mxu1 %v4392_v39 }
 0x3c0   :  { %5342 = vmatprep.subr.bf16.mxu1 %v8306_v2  ;;  %v4459_v60 = vpop.permute.xlu0 %4458 }
 0x3c3   :  { %5343 = vmatpush3.bf16.msra.mxu1 %v8306_v2  ;;  %v5605_v2 = vld [vmem:[%s8588_s4 + $0x8] sm:$0xff]  }
 0x3c4   :  { %5344 = vmatprep.subr.bf16.mxu1 %v8334_v0 }
 0x3c7   :  { %5345 = vmatpush3.bf16.msra.mxu1 %v8334_v0  ;;  %v5606_v0 = vld [vmem:[%s8588_s4 + $0x10] sm:$0xff]  }
 0x3c8   :  { %5346 = vmatprep.subr.bf16.mxu1 %v8359_v16 }
 0x3cb   :  { %5347 = vmatpush3.bf16.msra.mxu1 %v8359_v16  ;;  %v5607_v16 = vld [vmem:[%s8588_s4 + $0x18] sm:$0xff]  }
 0x3cc   :  { %5348 = vmatprep.subr.bf16.mxu1 %v8382_v57 }
 0x3cf   :  { %5349 = vmatpush3.bf16.msra.mxu1 %v8382_v57  ;;  %v5608_v57 = vld [vmem:[%s8588_s4 + $0x20] sm:$0xff]  }
 0x3d0   :  { %5350 = vmatprep.subr.bf16.mxu1 %v4397_v61 }
 0x3d3   :  { %5351 = vmatpush3.bf16.msra.mxu1 %v4397_v61  ;;  %v5609_v61 = vld [vmem:[%s8588_s4 + $0x28] sm:$0xff]  }
 0x3d4   :  { %5352 = vmatprep.subr.bf16.mxu1 %v4398_v37 }
 0x3d7   :  { %5353 = vmatpush3.bf16.msra.mxu1 %v4398_v37 }
 0x3d8   :  { %5354 = vmatprep.subr.bf16.mxu1 %v4399_v20 }
 0x3db   :  { %5355 = vmatpush3.bf16.msra.mxu1 %v4399_v20 }
 0x3de   :  { %5357 = vmatmul.mubr.bf16.vlgmr.msra.gmra.mrb[28].mxu1 %v5605_v2 }
 0x3df   :  { %5360 = vmatprep.mubr.bf16.mxu1 %v5606_v0  ;;  %v4469_v0 = vpop.permute.xlu0 %4468 }
 0x3e6   :  { %5361 = vmatmul.mubr.bf16.gmra.mrb[32].mxu1 %v5607_v16 }
 0x3e7   :  { %5364 = vmatprep.mubr.bf16.mxu1 %v5608_v57 }
 0x3ee   :  { %5365 = vmatmul.mubr.bf16.gmra.mrb[36].mxu1 %v5609_v61 }
 0x3ef   :  { %5368 = vmatprep.mubr.bf16.mxu1 %v5610_v63  ;;  %v4474_v63 = vpop.permute.xlu1 %4473 }
 0x3f6   :  { %5369 = vmatmul.mubr.bf16.gmra.mrb[40].mxu1 %v5611_v59 }
 0x3f7   :  { %5388 = vmatprep.mubr.bf16.mxu1 %v5612_v29 }
 0x4b1   :  { %v5358_v37 = vpop.f32.mrb[28].mxu1 }
 0x4b2   :  { %v4587_v35 = vadd.f32 %v5358_v37, %v4429_v24  ;;  %v4578_v4 = vpop.f32.mrb[29].mxu1 }
 0x4b3   :  { %v4579_v52 = vadd.f32 %v4578_v4, %v4419_v27  ;;  %v5359_v22 = vpop.f32.mrb[30].mxu1 }
 0x4b4   :  { %5780 = vtanh.f32 %v4587_v35  ;;  %v4590_v38 = vadd.f32 %v5359_v22, %v4434_v19  ;;  %v4581_v6 = vpop.f32.mrb[31].mxu1  ;;  %v4479_v35 = vpop.permute.xlu0 %4478 }
 0x4b5   :  { %5782 = vtanh.f32 %v4579_v52  ;;  %v4582_v54 = vadd.f32 %v4581_v6, %v4424_v5 }
 0x4b6   :  { %5784 = vtanh.f32 %v4590_v38 }
 0x4b7   :  { %5786 = vtanh.f32 %v4582_v54 }
 0x4b9   :  { %v5362_v20 = vpop.f32.mrb[32].mxu1 }
 0x4ba   :  { %v4603_v41 = vadd.f32 %v5362_v20, %v4449_v40  ;;  %v4594_v8 = vpop.f32.mrb[33].mxu1  ;;  %v4484_v20 = vpop.permute.xlu1 %4483 }
 0x4bb   :  { %v4595_v26 = vadd.f32 %v4594_v8, %v4439_v44  ;;  %v5363_v25 = vpop.f32.mrb[34].mxu1 }
 0x4bc   :  { %5788 = vtanh.f32 %v4603_v41  ;;  %v4606_v39 = vadd.f32 %v5363_v25, %v4454_v9  ;;  %v4597_v2 = vpop.f32.mrb[35].mxu1 }
 0x4bd   :  { %5790 = vtanh.f32 %v4595_v26  ;;  %v4598_v16 = vadd.f32 %v4597_v2, %v4444_v10 }
 0x4be   :  { %v5781_v57 = vpop.eup %5780  ;;  %5792 = vtanh.f32 %v4606_v39 }
 0x4bf   :  { %v5783_v61 = vpop.eup %5782  ;;  %5794 = vtanh.f32 %v4598_v16  ;;  %v4659_v59 = vmul.f32 %v5781_v57, %v8276_v55  ;;  %v4489_v57 = vpop.permute.xlu0 %4488 }
 0x4c0   :  { %v5785_v29 = vpop.eup %5784  ;;  %v4657_v27 = vmul.f32 %v5783_v61, %v8432_v36 }
 0x4c1   :  { %v5787_v5 = vpop.eup %5786  ;;  %v5366_v24 = vpop.f32.mrb[36].mxu1  ;;  %v4660_v19 = vmul.f32 %v5785_v29, %v8281_v48  ;;  %v4675_v9 = vadd.f32 %v8263_v62, %v4659_v59 }
 0x4c2   :  { %v4619_v44 = vadd.f32 %v5366_v24, %v4469_v0  ;;  %v4610_v40 = vpop.f32.mrb[37].mxu1  ;;  %v4658_v37 = vmul.f32 %v5787_v5, %v8437_v33  ;;  %v4673_v6 = vadd.f32 %v8426_v12, %v4657_v27  ;;  %v4494_v27 = vpop.permute.xlu1 %4493 }
 0x4c3   :  { %v4611_v10 = vadd.f32 %v4610_v40, %v4459_v60  ;;  %v5367_v4 = vpop.f32.mrb[38].mxu1  ;;  %v4676_v52 = vadd.f32 %v8269_v13, %v4660_v19 }
 0x4c4   :  { %5796 = vtanh.f32 %v4619_v44  ;;  %v4622_v22 = vadd.f32 %v5367_v4, %v4474_v63  ;;  %v4613_v38 = vpop.f32.mrb[39].mxu1  ;;  %v4674_v54 = vadd.f32 %v8429_v31, %v4658_v37 }
 0x4c5   :  { %5798 = vtanh.f32 %v4611_v10  ;;  %v4614_v41 = vadd.f32 %v4613_v38, %v4464_v30  ;;  %v4707_v8 = vpack.c.bf16 %v4676_v52, %v4675_v9 }
 0x4c6   :  { %v5789_v26 = vpop.eup %5788  ;;  %5800 = vtanh.f32 %v4622_v22  ;;  %v4706_v25 = vpack.c.bf16 %v4674_v54, %v4673_v6 }
 0x4c7   :  { %v5791_v60 = vpop.eup %5790  ;;  %5802 = vtanh.f32 %v4614_v41  ;;  %v4663_v39 = vmul.f32 %v5789_v26, %v8332_v58 }
 0x4c8   :  { %v5793_v2 = vpop.eup %5792  ;;  %5372 = vmatprep.subr.bf16.mxu1 %v4706_v25  ;;  %v4661_v0 = vmul.f32 %v5791_v60, %v8304_v47 }
 0x4c9   :  { %v5795_v16 = vpop.eup %5794  ;;  %v5370_v61 = vpop.f32.mrb[40].mxu1  ;;  %5373 = vmatpush3.bf16.msra.mxu1 %v4706_v25  ;;  %v4664_v63 = vmul.f32 %v5793_v2, %v8339_v45  ;;  %v4679_v19 = vadd.f32 %v8321_v49, %v4663_v39 }
 0x4ca   :  { %v4635_v59 = vadd.f32 %v5370_v61, %v4489_v57  ;;  %v4626_v30 = vpop.f32.mrb[41].mxu1  ;;  %5374 = vmatprep.subr.bf16.mxu1 %v4707_v8  ;;  %v4662_v29 = vmul.f32 %v5795_v16, %v8311_v42  ;;  %v4677_v10 = vadd.f32 %v8291_v43, %v4661_v0 }
 0x4cb   :  { %v4627_v5 = vadd.f32 %v4626_v30, %v4479_v35  ;;  %v5371_v24 = vpop.f32.mrb[42].mxu1  ;;  %v4680_v44 = vadd.f32 %v8327_v15, %v4664_v63 }
 0x4cc   :  { %5804 = vtanh.f32 %v4635_v59  ;;  %v4638_v40 = vadd.f32 %v5371_v24, %v4494_v27  ;;  %v4629_v37 = vpop.f32.mrb[43].mxu1  ;;  %v4678_v4 = vadd.f32 %v8299_v28, %v4662_v29 }
 0x4cd   :  { %5806 = vtanh.f32 %v4627_v5  ;;  %v4630_v9 = vadd.f32 %v4629_v37, %v4484_v20  ;;  %5375 = vmatpush3.bf16.msra.mxu1 %v4707_v8  ;;  %v4709_v52 = vpack.c.bf16 %v4680_v44, %v4679_v19 }
 0x4ce   :  { %v5797_v22 = vpop.eup %5796  ;;  %5808 = vtanh.f32 %v4638_v40  ;;  %v4708_v38 = vpack.c.bf16 %v4678_v4, %v4677_v10  ;;  %v5613_v4 = vld [vmem:[%s8588_s4 + $0x48] sm:$0xff]  }
 0x4cf   :  { %v5799_v35 = vpop.eup %5798  ;;  %5810 = vtanh.f32 %v4630_v9  ;;  %v4667_v6 = vmul.f32 %v5797_v22, %v8380_v7  ;;  %v5614_v9 = vld [vmem:[%s8588_s4 + $0x50] sm:$0xff]   ;;  %v5616_v22 = vld [vmem:[%s8588_s4 + $0x60] sm:$0xff]  }
 0x4d0   :  { %v5801_v54 = vpop.eup %5800  ;;  %5376 = vmatprep.subr.bf16.mxu1 %v4708_v38  ;;  %v4665_v41 = vmul.f32 %v5799_v35, %v8357_v14  ;;  %v5618_v35 = vld [vmem:[%s8588_s4 + $0x70] sm:$0xff]  }
 0x4d1   :  { %v5803_v26 = vpop.eup %5802  ;;  %5377 = vmatpush3.bf16.msra.mxu1 %v4708_v38  ;;  %v4668_v25 = vmul.f32 %v5801_v54, %v8386_v11  ;;  %v4683_v8 = vadd.f32 %v8371_v3, %v4667_v6  ;;  %v5617_v38 = vld [vmem:[%s8588_s4 + $0x68] sm:$0xff]   ;;  %v5619_v6 = vld [vmem:[%s8588_s4 + $0x78] sm:$0xff]   ;;  %v5875_v54 = vmov 0.0  }
 0x4d2   :  { %5378 = vmatprep.subr.bf16.mxu1 %v4709_v52  ;;  %v4666_v20 = vmul.f32 %v5803_v26, %v8364_v17  ;;  %v4681_v39 = vadd.f32 %v8347_v32, %v4665_v41  ;;  %v4734_v41 = vpop.permute.xlu0 %4733  ;;  %v4739_v26 = vpop.permute.xlu1 %4738 }
 0x4d3   :  { %v4684_v60 = vadd.f32 %v8376_v46, %v4668_v25 }
 0x4d4   :  { %v4682_v2 = vadd.f32 %v8352_v56, %v4666_v20 }
 0x4d5   :  { %5379 = vmatpush3.bf16.msra.mxu1 %v4709_v52  ;;  %v4711_v0 = vpack.c.bf16 %v4684_v60, %v4683_v8  ;;  %v5615_v52 = vld [vmem:[%s8588_s4 + $0x58] sm:$0xff]  }
 0x4d6   :  { %v5805_v16 = vpop.eup %5804  ;;  %v4710_v57 = vpack.c.bf16 %v4682_v2, %v4681_v39  ;;  %v4744_v25 = vpop.permute.xlu0 %4743 }
 0x4d7   :  { %v5807_v61 = vpop.eup %5806  ;;  %v4671_v63 = vmul.f32 %v5805_v16, %v8420_v34  ;;  %v4749_v20 = vpop.permute.xlu1 %4748 }
 0x4d8   :  { %v5809_v59 = vpop.eup %5808  ;;  %5380 = vmatprep.subr.bf16.mxu1 %v4710_v57  ;;  %v4669_v30 = vmul.f32 %v5807_v61, %v8402_v50 }
 0x4d9   :  { %v5811_v29 = vpop.eup %5810  ;;  %5381 = vmatpush3.bf16.msra.mxu1 %v4710_v57  ;;  %v4672_v27 = vmul.f32 %v5809_v59, %v8423_v21  ;;  %v4687_v24 = vadd.f32 %v8413_v53, %v4671_v63 }
 0x4da   :  { %5382 = vmatprep.subr.bf16.mxu1 %v4711_v0  ;;  %v4670_v5 = vmul.f32 %v5811_v29, %v8406_v23  ;;  %v4685_v44 = vadd.f32 %v8393_v1, %v4669_v30  ;;  %v4754_v8 = vpop.permute.xlu0 %4753 }
 0x4db   :  { %v4688_v19 = vadd.f32 %v8417_v51, %v4672_v27  ;;  %v4759_v60 = vpop.permute.xlu1 %4758 }
 0x4dc   :  { %v4686_v40 = vadd.f32 %v8399_v18, %v4670_v5 }
 0x4dd   :  { %5383 = vmatpush3.bf16.msra.mxu1 %v4711_v0  ;;  %v4713_v37 = vpack.c.bf16 %v4688_v19, %v4687_v24 }
 0x4de   :  { %v4712_v10 = vpack.c.bf16 %v4686_v40, %v4685_v44  ;;  %v4764_v39 = vpop.permute.xlu0 %4763 }
 0x4df   :  { %v4769_v57 = vpop.permute.xlu1 %4768 }
 0x4e0   :  { %5384 = vmatprep.subr.bf16.mxu1 %v4712_v10 }
 0x4e1   :  { %5385 = vmatpush3.bf16.msra.mxu1 %v4712_v10 }
 0x4e2   :  { %5386 = vmatprep.subr.bf16.mxu1 %v4713_v37  ;;  %v4774_v27 = vpop.permute.xlu0 %4773 }
 0x4e3   :  { %v4779_v5 = vpop.permute.xlu1 %4778 }
 0x4e5   :  { %5387 = vmatpush3.bf16.msra.mxu1 %v4713_v37 }
 0x4e6   :  { %5404 = vmatprep.subr.bf16.mxu1 %v5875_v54 }
 0x4e8   :  { %5389 = vmatmul.mubr.bf16.vlgmr.msra.gmra.mrb[44].mxu1 %v5613_v4 }
 0x4e9   :  { %5392 = vmatprep.mubr.bf16.mxu1 %v5614_v9  ;;  %v4784_v9 = vpop.permute.xlu0 %4783 }
 0x4f0   :  { %5393 = vmatmul.mubr.bf16.gmra.mrb[48].mxu1 %v5615_v52 }
 0x4f1   :  { %5396 = vmatprep.mubr.bf16.mxu1 %v5616_v22 }
 0x4f8   :  { %5397 = vmatmul.mubr.bf16.gmra.mrb[52].mxu1 %v5617_v38 }
 0x4f9   :  { %5400 = vmatprep.mubr.bf16.mxu1 %v5618_v35  ;;  %v4789_v35 = vpop.permute.xlu1 %4788 }
 0x500   :  { %5401 = vmatmul.mubr.bf16.gmra.mrb[56].mxu1 %v5619_v6 }
 0x501   :  { %5420 = vmatprep.mubr.msk.bf16.mxu1 %vm5876_vm7, %v5875_v54 }
 0x5bb   :  { %v5390_v2 = vpop.f32.mrb[44].mxu1 }
 0x5bc   :  { %v4902_v0 = vadd.f32 %v5390_v2, %v4744_v25  ;;  %v4893_v16 = vpop.f32.mrb[45].mxu1 }
 0x5bd   :  { %v4894_v61 = vadd.f32 %v4893_v16, %v4734_v41  ;;  %v5391_v63 = vpop.f32.mrb[46].mxu1  ;;  %v4794_v16 = vpop.permute.xlu0 %4793 }
 0x5be   :  { %5812 = vtanh.f32 %v4902_v0  ;;  %v4905_v59 = vadd.f32 %v5391_v63, %v4749_v20  ;;  %v4896_v30 = vpop.f32.mrb[47].mxu1 }
 0x5bf   :  { %5814 = vtanh.f32 %v4894_v61  ;;  %v4897_v29 = vadd.f32 %v4896_v30, %v4739_v26 }
 0x5c0   :  { %5816 = vtanh.f32 %v4905_v59 }
 0x5c1   :  { %5818 = vtanh.f32 %v4897_v29  ;;  %v4799_v29 = vpop.permute.xlu1 %4798 }
 0x5c3   :  { %v5394_v24 = vpop.f32.mrb[48].mxu1 }
 0x5c4   :  { %v4918_v19 = vadd.f32 %v5394_v24, %v4764_v39  ;;  %v4909_v44 = vpop.f32.mrb[49].mxu1 }
 0x5c5   :  { %v4910_v40 = vadd.f32 %v4909_v44, %v4754_v8  ;;  %v5395_v37 = vpop.f32.mrb[50].mxu1 }
 0x5c6   :  { %5820 = vtanh.f32 %v4918_v19  ;;  %v4921_v10 = vadd.f32 %v5395_v37, %v4769_v57  ;;  %v4912_v4 = vpop.f32.mrb[51].mxu1  ;;  %v4804_v37 = vpop.permute.xlu0 %4803 }
 0x5c7   :  { %5822 = vtanh.f32 %v4910_v40  ;;  %v4913_v52 = vadd.f32 %v4912_v4, %v4759_v60 }
 0x5c8   :  { %v5813_v22 = vpop.eup %5812  ;;  %5824 = vtanh.f32 %v4921_v10 }
 0x5c9   :  { %v5815_v38 = vpop.eup %5814  ;;  %5826 = vtanh.f32 %v4913_v52  ;;  %v4974_v6 = vmul.f32 %v5813_v22, %v8276_v55 }
 0x5ca   :  { %v5817_v41 = vpop.eup %5816  ;;  %v4972_v26 = vmul.f32 %v5815_v38, %v8432_v36 }
 0x5cb   :  { %v5819_v25 = vpop.eup %5818  ;;  %v5398_v20 = vpop.f32.mrb[52].mxu1  ;;  %v4975_v8 = vmul.f32 %v5817_v41, %v8281_v48  ;;  %v4990_v61 = vadd.f32 %v8263_v62, %v4974_v6 }
 0x5cc   :  { %v4934_v39 = vadd.f32 %v5398_v20, %v4784_v9  ;;  %v4925_v2 = vpop.f32.mrb[53].mxu1  ;;  %v4973_v0 = vmul.f32 %v5819_v25, %v8437_v33  ;;  %v4988_v36 = vadd.f32 %v8426_v12, %v4972_v26  ;;  %v4809_v9 = vpop.permute.xlu1 %4808 }
 0x5cd   :  { %v4926_v60 = vadd.f32 %v4925_v2, %v4774_v27  ;;  %v5399_v57 = vpop.f32.mrb[54].mxu1  ;;  %v4991_v63 = vadd.f32 %v8269_v13, %v4975_v8 }
 0x5ce   :  { %5828 = vtanh.f32 %v4934_v39  ;;  %v4937_v55 = vadd.f32 %v5399_v57, %v4789_v35  ;;  %v4928_v59 = vpop.f32.mrb[55].mxu1  ;;  %v4989_v30 = vadd.f32 %v8429_v31, %v4973_v0 }
 0x5cf   :  { %5830 = vtanh.f32 %v4926_v60  ;;  %v4929_v48 = vadd.f32 %v4928_v59, %v4779_v5  ;;  %v5006_v24 = vpack.c.bf16 %v4991_v63, %v4990_v61 }
 0x5d0   :  { %v5821_v19 = vpop.eup %5820  ;;  %5832 = vtanh.f32 %v4937_v55  ;;  %v5005_v33 = vpack.c.bf16 %v4989_v30, %v4988_v36 }
 0x5d1   :  { %v5823_v27 = vpop.eup %5822  ;;  %5834 = vtanh.f32 %v4929_v48  ;;  %v4978_v62 = vmul.f32 %v5821_v19, %v8332_v58 }
 0x5d2   :  { %v5825_v44 = vpop.eup %5824  ;;  %5405 = vmatpush3.bf16.msra.mxu1 %v5005_v33  ;;  %v4976_v13 = vmul.f32 %v5823_v27, %v8304_v47 }
 0x5d3   :  { %v5827_v40 = vpop.eup %5826  ;;  %v5402_v12 = vpop.f32.mrb[56].mxu1  ;;  %5406 = vmatprep.subr.bf16.mxu1 %v5875_v54  ;;  %v4979_v31 = vmul.f32 %v5825_v44, %v8339_v45  ;;  %v4994_v58 = vadd.f32 %v8321_v49, %v4978_v62 }
 0x5d4   :  { %v4950_v5 = vadd.f32 %v5402_v12, %v4804_v37  ;;  %v4941_v10 = vpop.f32.mrb[57].mxu1  ;;  %v4977_v4 = vmul.f32 %v5827_v40, %v8311_v42  ;;  %v4992_v6 = vadd.f32 %v8291_v43, %v4976_v13 }
 0x5d5   :  { %v4942_v52 = vadd.f32 %v4941_v10, %v4794_v16  ;;  %v5403_v22 = vpop.f32.mrb[58].mxu1  ;;  %v4995_v38 = vadd.f32 %v8327_v15, %v4979_v31 }
 0x5d6   :  { %5836 = vtanh.f32 %v4950_v5  ;;  %v4953_v47 = vadd.f32 %v5403_v22, %v4809_v9  ;;  %v4944_v35 = vpop.f32.mrb[59].mxu1  ;;  %5407 = vmatpush3.bf16.msra.mxu1 %v5006_v24  ;;  %v4993_v41 = vadd.f32 %v8299_v28, %v4977_v4 }
 0x5d7   :  { %5838 = vtanh.f32 %v4942_v52  ;;  %v4945_v45 = vadd.f32 %v4944_v35, %v4799_v29  ;;  %5408 = vmatprep.subr.bf16.mxu1 %v5875_v54  ;;  %v5008_v42 = vpack.c.bf16 %v4995_v38, %v4994_v58 }
 0x5d8   :  { %v5829_v26 = vpop.eup %5828  ;;  %5840 = vtanh.f32 %v4953_v47  ;;  %v5007_v25 = vpack.c.bf16 %v4993_v41, %v4992_v6 }
 0x5d9   :  { %v5831_v20 = vpop.eup %5830  ;;  %5842 = vtanh.f32 %v4945_v45  ;;  %v4982_v49 = vmul.f32 %v5829_v26, %v8380_v7 }
 0x5da   :  { %v5833_v15 = vpop.eup %5832  ;;  %5409 = vmatpush3.bf16.msra.mxu1 %v5007_v25  ;;  %v4980_v8 = vmul.f32 %v5831_v20, %v8357_v14 }
 0x5db   :  { %v5835_v39 = vpop.eup %5834  ;;  %5410 = vmatprep.subr.bf16.mxu1 %v5875_v54  ;;  %v4983_v43 = vmul.f32 %v5833_v15, %v8386_v11  ;;  %v4998_v2 = vadd.f32 %v8371_v3, %v4982_v49 }
 0x5dc   :  { %v4981_v28 = vmul.f32 %v5835_v39, %v8364_v17  ;;  %v4996_v16 = vadd.f32 %v8347_v32, %v4980_v8 }
 0x5dd   :  { %v4999_v0 = vadd.f32 %v8376_v46, %v4983_v43 }
 0x5de   :  { %5411 = vmatpush3.bf16.msra.mxu1 %v5008_v42  ;;  %v4997_v7 = vadd.f32 %v8352_v56, %v4981_v28 }
 0x5df   :  { %5412 = vmatprep.subr.bf16.mxu1 %v5875_v54  ;;  %v5010_v60 = vpack.c.bf16 %v4999_v0, %v4998_v2 }
 0x5e0   :  { %v5837_v14 = vpop.eup %5836  ;;  %v5009_v57 = vpack.c.bf16 %v4997_v7, %v4996_v16 }
 0x5e1   :  { %v5839_v61 = vpop.eup %5838  ;;  %v4986_v63 = vmul.f32 %v5837_v14, %v8420_v34 }
 0x5e2   :  { %v5841_v11 = vpop.eup %5840  ;;  %5413 = vmatpush3.bf16.msra.mxu1 %v5009_v57  ;;  %v4984_v17 = vmul.f32 %v5839_v61, %v8402_v50 }
 0x5e3   :  { %v5843_v3 = vpop.eup %5842  ;;  %5414 = vmatprep.subr.bf16.mxu1 %v5875_v54  ;;  %v4987_v46 = vmul.f32 %v5841_v11, %v8423_v21  ;;  %v5002_v56 = vadd.f32 %v8413_v53, %v4986_v63  ;;  %v5017_v53 = vpop.permute.xlu0 %5016 }
 0x5e4   :  { %v4985_v32 = vmul.f32 %v5843_v3, %v8406_v23  ;;  %v5000_v59 = vadd.f32 %v8393_v1, %v4984_v17  ;;  %v5004_v23 = vld [vmem:[%s8590_s6] sm:$0xf] }
 0x5e5   :  { %v5003_v55 = vadd.f32 %v8417_v51, %v4987_v46 }
 0x5e6   :  { %5415 = vmatpush3.bf16.msra.mxu1 %v5010_v60  ;;  %v5001_v34 = vadd.f32 %v8399_v18, %v4985_v32 }
 0x5e7   :  { %5416 = vmatprep.subr.bf16.mxu1 %v5875_v54  ;;  %v5012_v36 = vpack.c.bf16 %v5003_v55, %v5002_v56 }
 0x5e8   :  { %v5011_v50 = vpack.c.bf16 %v5001_v34, %v5000_v59 }
 0x5ea   :  { %5417 = vmatpush3.bf16.msra.mxu1 %v5011_v50 }
 0x5eb   :  { %5418 = vmatprep.subr.bf16.mxu1 %v5875_v54 }
 0x5ee   :  { %5419 = vmatpush3.bf16.msra.mxu1 %v5012_v36 }
 0x5f1   :  { %5421 = vmatmul.mubr.bf16.vlgmr.msra.gmra.mrb[60].mxu1 %v5004_v23 }
 0x6c4   :  { %v5053_v51 = vpop.f32.mrb[60].mxu1 }
 0x6c5   :  { %v5054_v1 = vadd.f32 %v5053_v51, %v5017_v53  ;;  %v5422_v21 = vpop.f32.mrb[61].mxu1 }
 0x6c6   :  { %v5056_v18 = vpop.f32.mrb[62].mxu1 }
 0x6c7   :  { %5059 = vst [vmem:[#allocation2] sm:$0xff] %v5054_v1  ;;  %v5423_v30 = vpop.f32.mrb[63].mxu1 }
 0x6c8   :  { %5855 = shalt.err (!%p5852_p4)
}
 0x6c9   :  { %s5856_s30 = scalar_lea.hbm %s8592_s8, 128 }
 0x6ca   :  { %p5857_p5 = scmp.ne.s32.totalorder %s8592_s8, %s5856_s30  ;;  %p5860_p6 = scmp.lt.u32.totalorder %s5856_s30, %s8592_s8 }
 0x6cc   :  { %p5862_p7 = pnand %p5860_p6, %p5857_p5 }
 0x6ce   :  { %5865 = shalt.err (!%p5862_p7)
}
 0x6cf   :  { %5069 = dma.vmem_to_hbm [thread:$0]  %s5067_s27, 128, %s8592_s8, [#allocation3]  }
 0x6d0   :  { %5866 = dma.done.wait [#allocation3], 128  }
 0x6d1   :  { %5867 = vsyncadd [#allocation3], 4294967168 }
 0x6d2   :  { %5073 = vsyncpa [#allocation3], 1 }

</bundles_post_ra>
